<compile_context>
chip_gen: v5e
topology: v5e:2x2
jax: 0.10.0
libtpu: 0.0.40
codegen_flags: <defaults>
</compile_context>

<pallas_src>
import functools

import jax
import jax.numpy as jnp
from jax import lax
from jax.experimental import pallas as pl
from jax.experimental.pallas import tpu as pltpu


# ----------------------------- Pallas kernel ------------------------------ #
def _block_kernel(x_ref, gamma_ref, beta_ref, wfused_ref, wout_ref,
                  cosq_ref, sinq_ref, cosk_ref, sink_ref, o_ref,
                  *, block_b, heads, dim_head, dh_pad, ff_inner):
    bb, n, dim = x_ref.shape
    attn_inner = heads * dim_head
    half = dim_head // 2
    rows = bb * n
    nh = n * heads
    # packed column offsets (all multiples of 128 by construction)
    off_k = attn_inner
    off_v = attn_inner + dh_pad
    off_ff = attn_inner + 2 * dh_pad

    x = x_ref[...].reshape(rows, dim)

    # --- LayerNorm (F.layer_norm default eps = 1e-5); elementwise in f32 ---
    mean = jnp.mean(x, axis=-1, keepdims=True)
    var = jnp.mean(jnp.square(x - mean), axis=-1, keepdims=True)
    xn = (x - mean) * lax.rsqrt(var + 1e-5)
    xn = xn * gamma_ref[...] + beta_ref[...]

    # --- fused attn + ff projection: bf16 operands, f32 accumulation (MXU) ---
    proj = jnp.dot(xn.astype(jnp.bfloat16), wfused_ref[...],
                   preferred_element_type=jnp.float32)          # (rows, total_p)

    cos_q = cosq_ref[...]          # (n*heads, d)  xpos + attn-scale folded
    sin_q = sinq_ref[...]          # (n*heads, d)  ... + rotate_half sign folded
    cos_k = cosk_ref[...]          # (n, d)
    sin_k = sink_ref[...]          # (n, d)

    def rot_half(t):
        # rotate_half sign is folded into the sin tables, so this is a pure
        # rotation: XLU lane roll when the head dim is lane-tile aligned.
        if dim_head % 128 == 0:
            return pltpu.roll(t, half, axis=1)
        return jnp.concatenate([t[:, half:], t[:, :half]], axis=-1)

    # causal mask as an additive bias, shared across the batch sub-loop.
    # row r of the (n*heads, n) fold is sequence position r // heads, and
    # (r // heads < j)  <=>  (r < j * heads)  -- no division, no 3-D iota.
    row_i = lax.broadcasted_iota(jnp.int32, (nh, n), 0)
    col_i = lax.broadcasted_iota(jnp.int32, (nh, n), 1)
    neg_bias = jnp.where(row_i < col_i * heads, -1e30, 0.0)

    attn_folds = []
    for b in range(block_b):                   # static, small (per-step batch)
        r0 = b * n
        q2 = proj[r0:r0 + n, :attn_inner].reshape(nh, dim_head)   # (n*h, d)
        k = proj[r0:r0 + n, off_k:off_k + dim_head]                # (n, d)
        v = proj[r0:r0 + n, off_v:off_v + dim_head]                # (n, d)

        # rotary / xpos (scale + sign folded into the tables)
        q_rot = q2 * cos_q + rot_half(q2) * sin_q
        k_rot = k * cos_k + rot_half(k) * sin_k

        # batched multi-query attention: one MXU call for all heads
        sim = lax.dot_general(q_rot.astype(jnp.bfloat16),
                              k_rot.astype(jnp.bfloat16),
                              dimension_numbers=(((1,), (1,)), ((), ())),
                              preferred_element_type=jnp.float32)  # (n*h, n)
        sim = sim + neg_bias
        sim = sim - jnp.max(sim, axis=-1, keepdims=True)
        p = jnp.exp(sim)
        p = p * pl.reciprocal(jnp.sum(p, axis=-1, keepdims=True), approx=True)

        out = jnp.dot(p.astype(jnp.bfloat16), v.astype(jnp.bfloat16),
                      preferred_element_type=jnp.float32)          # (n*h, d)
        attn_folds.append(out.reshape(n, attn_inner).astype(jnp.bfloat16))

    attn_fold = (jnp.concatenate(attn_folds, axis=0)
                 if block_b > 1 else attn_folds[0])                # (rows, h*d)

    # --- SwiGLU feed-forward on the folded rows ---
    ff = proj[:, off_ff:]                                          # (rows, 2*ffi)
    ff_x = ff[:, :ff_inner]
    ff_gate = ff[:, ff_inner:]
    swiglu = (ff_x * (ff_gate * jax.nn.sigmoid(ff_gate))).astype(jnp.bfloat16)

    # --- single fused output projection: [attn | swiglu] @ [w_attn; w_ff] ---
    fused_in = jnp.concatenate([attn_fold, swiglu], axis=-1)       # lane-aligned
    y = jnp.dot(fused_in, wout_ref[...],
                preferred_element_type=jnp.float32)                # (rows, dim)

    o_ref[...] = y.reshape(bb, n, dim).astype(o_ref.dtype)


# --------------------- one-time parameter preparation ---------------------- #
def make_rotary_tables(n, dim_head, heads, scale_base=512.0):
    """Rotary cos/sin with xpos scale, q attention scale and the rotate_half
    sign pre-folded (so the kernel only needs a pure roll)."""
    half = dim_head // 2
    inv_freq = 1.0 / (10000.0 ** (jnp.arange(0, dim_head, 2, dtype=jnp.float32)
                                  / dim_head))
    t = jnp.arange(n, dtype=jnp.float32)
    freqs = jnp.einsum('i,j->ij', t, inv_freq)
    freqs = jnp.concatenate([freqs, freqs], axis=-1)                # (n, d)
    sv = (jnp.arange(0, dim_head, 2, dtype=jnp.float32)
          + 0.4 * dim_head) / (1.4 * dim_head)
    power = (t - n // 2) / scale_base
    xpos = sv[None, :] ** power[:, None]
    xpos = jnp.concatenate([xpos, xpos], axis=-1)                   # (n, d)
    cos, sin = jnp.cos(freqs), jnp.sin(freqs)
    sign = jnp.concatenate([-jnp.ones((half,), jnp.float32),
                            jnp.ones((half,), jnp.float32)])        # rotate_half sign
    qs = dim_head ** -0.5                                           # attn scale folded
    cos_q = jnp.repeat(cos * xpos * qs, heads, axis=0)               # (n*h, d)
    sin_q = jnp.repeat(sin * xpos * qs * sign[None, :], heads, axis=0)
    cos_k = cos / xpos                                               # (n, d)
    sin_k = sin * sign[None, :] / xpos                               # (n, d)
    return cos_q, sin_q, cos_k, sin_k


def prepare_params(params, *, n, heads, dim_head, ff_mult):
    """One-time (outside the per-call path): pack/pad fused-projection columns
    to 128-lane-aligned segments, fuse the two output weights, cast to bf16 and
    build the rotary tables."""
    gamma, beta, w_fused, w_attn, w_ff = params
    dim = w_fused.shape[0]
    attn_inner = heads * dim_head
    ff_inner = dim * ff_mult
    dh_pad = ((dim_head + 127) // 128) * 128

    wq = w_fused[:, :attn_inner]
    wk = w_fused[:, attn_inner:attn_inner + dim_head]
    wv = w_fused[:, attn_inner + dim_head:attn_inner + 2 * dim_head]
    wff = w_fused[:, attn_inner + 2 * dim_head:]
    pad = jnp.zeros((dim, dh_pad - dim_head), w_fused.dtype)
    # column layout: [ q | k (padded to 128) | v (padded to 128) | ff ]
    w_fused_packed = jnp.concatenate([wq, wk, pad, wv, pad, wff],
                                     axis=1).astype(jnp.bfloat16)
    w_out_packed = jnp.concatenate([w_attn, w_ff], axis=0).astype(jnp.bfloat16)

    cos_q, sin_q, cos_k, sin_k = make_rotary_tables(n, dim_head, heads)
    return (gamma.astype(jnp.float32), beta.astype(jnp.float32),
            w_fused_packed, w_out_packed, cos_q, sin_q, cos_k, sin_k)


# ------------------------------ JAX wrapper -------------------------------- #
def parallel_transformer_block(x, prepared, *, heads, dim_head, ff_mult,
                               block_b=None):
    b, n, dim = x.shape
    ff_inner = dim * ff_mult
    attn_inner = heads * dim_head
    dh_pad = ((dim_head + 127) // 128) * 128
    total_p = attn_inner + 2 * dh_pad + 2 * ff_inner

    assert n % 8 == 0 and dim % 128 == 0
    assert attn_inner % 128 == 0 and ff_inner % 128 == 0

    gamma, beta, w_fused_p, w_out_p, cos_q, sin_q, cos_k, sin_k = prepared

    if block_b is None:
        # fill the MXU M dimension, but keep >=2 grid steps when b >= 2 so the
        # two v7x TensorCores both get work under dimension_semantics=parallel.
        block_b, min_steps = 1, (2 if b >= 2 else 1)
        for cand in range(1, b + 1):
            if b % cand == 0 and cand * n <= 256 and (b // cand) >= min_steps:
                block_b = cand
    assert b % block_b == 0
    grid_b = b // block_b

    kernel = functools.partial(_block_kernel, block_b=block_b, heads=heads,
                               dim_head=dim_head, dh_pad=dh_pad,
                               ff_inner=ff_inner)

    # VMEM budget: invariant operands are single-buffered, x/out double-buffered,
    # plus in-kernel intermediates.  Capped at 48 MiB -- comfortably inside
    # v7x's 64 MiB physical VMEM (Mosaic needs internal scratch on top).
    w_bytes = (dim * total_p + (attn_inner + ff_inner) * dim) * 2      # bf16, 1-buf
    tbl_bytes = (2 * n * heads * dim_head + 2 * n * dim_head + 2 * dim) * 4
    io_bytes = 2 * 2 * block_b * n * dim * 4                            # 2-buf
    tmp_bytes = (block_b * n * (total_p + 2 * attn_inner + 6 * ff_inner) * 4
                 + block_b * n * heads * (3 * n + 6 * dim_head) * 4)
    vmem_limit = int(min(max(w_bytes + tbl_bytes + io_bytes + tmp_bytes
                             + (4 << 20), 16 << 20), 48 << 20))

    invariant = dict(pipeline_mode=pl.Buffered(1))   # no re-DMA, no 2x buffers

    return pl.pallas_call(
        kernel,
        out_shape=jax.ShapeDtypeStruct((b, n, dim), jnp.float32),
        grid=(grid_b,),
        in_specs=[
            pl.BlockSpec((block_b, n, dim), lambda i: (i, 0, 0)),          # x
            pl.BlockSpec((1, dim), lambda i: (0, 0), **invariant),         # gamma
            pl.BlockSpec((1, dim), lambda i: (0, 0), **invariant),         # beta
            pl.BlockSpec((dim, total_p), lambda i: (0, 0), **invariant),   # fused W
            pl.BlockSpec((attn_inner + ff_inner, dim), lambda i: (0, 0),
                         **invariant),                                     # out W
            pl.BlockSpec((n * heads, dim_head), lambda i: (0, 0), **invariant),
            pl.BlockSpec((n * heads, dim_head), lambda i: (0, 0), **invariant),
            pl.BlockSpec((n, dim_head), lambda i: (0, 0), **invariant),
            pl.BlockSpec((n, dim_head), lambda i: (0, 0), **invariant),
        ],
        out_specs=pl.BlockSpec((block_b, n, dim), lambda i: (i, 0, 0)),
        compiler_params=pltpu.CompilerParams(
            dimension_semantics=("parallel",),
            vmem_limit_bytes=vmem_limit),
    )(x, gamma, beta, w_fused_p, w_out_p, cos_q, sin_q, cos_k, sin_k)


# --------------------------- pure-JAX reference ----------------------------- #
def reference(x, params, *, heads, dim_head, ff_mult):
    """Module semantics; matmul operands cast to bf16 to mirror the kernel's
    MXU precision (f32 accumulation), with independent (unfolded) rotary."""
    b, n, dim = x.shape
    ff_inner = dim * ff_mult
    attn_inner = heads * dim_head
    gamma, beta, w_fused, w_attn, w_ff = params
    f32, bf16 = jnp.float32, jnp.bfloat16

    def mm(a, w):
        return jnp.dot(a.astype(bf16), w.astype(bf16), preferred_element_type=f32)

    mean = x.mean(-1, keepdims=True)
    var = ((x - mean) ** 2).mean(-1, keepdims=True)
    xn = (x - mean) / jnp.sqrt(var + 1e-5) * gamma + beta
    proj = mm(xn, w_fused)
    q, k, v, ff = jnp.split(
        proj, [attn_inner, attn_inner + dim_head, attn_inner + 2 * dim_head], axis=-1)

    inv_freq = 1.0 / (10000.0 ** (jnp.arange(0, dim_head, 2, dtype=f32) / dim_head))
    t = jnp.arange(n, dtype=f32)
    freqs = jnp.einsum('i,j->ij', t, inv_freq)
    freqs = jnp.concatenate([freqs, freqs], axis=-1)
    sv = (jnp.arange(0, dim_head, 2, dtype=f32) + 0.4 * dim_head) / (1.4 * dim_head)
    power = (t - n // 2) / 512.0
    xpos = sv[None, :] ** power[:, None]
    xpos = jnp.concatenate([xpos, xpos], axis=-1)
    cos, sin = jnp.cos(freqs), jnp.sin(freqs)

    def rot_half(u):
        u1, u2 = jnp.split(u, 2, axis=-1)
        return jnp.concatenate([-u2, u1], axis=-1)

    q = q.reshape(b, n, heads, dim_head).transpose(0, 2, 1, 3) * dim_head ** -0.5
    q = q * cos * xpos + rot_half(q) * sin * xpos
    k = k * cos / xpos + rot_half(k) * sin / xpos

    sim = jnp.einsum('bhid,bjd->bhij', q.astype(bf16), k.astype(bf16),
                     preferred_element_type=f32)
    mask = jnp.triu(jnp.ones((n, n), bool), 1)
    sim = jnp.where(mask, -jnp.finfo(f32).max, sim)
    attn = jax.nn.softmax(sim, axis=-1)
    out = jnp.einsum('bhij,bjd->bhid', attn.astype(bf16), v.astype(bf16),
                     preferred_element_type=f32)
    out = out.transpose(0, 2, 1, 3).reshape(b, n, attn_inner)
    attn_out = mm(out, w_attn)

    ff_x, ff_gate = jnp.split(ff, 2, axis=-1)
    ff_out = mm(jax.nn.silu(ff_gate) * ff_x, w_ff)
    return attn_out + ff_out


# ---------------------------------- main ----------------------------------- #
if __name__ == "__main__":
    B, N, DIM = 4, 16, 128
    HEADS, DIM_HEAD, FF_MULT = 4, 128, 4          # dim_head=128: lane-aligned heads
    FF_INNER = DIM * FF_MULT
    ATTN_INNER = HEADS * DIM_HEAD
    TOTAL = ATTN_INNER + 2 * DIM_HEAD + 2 * FF_INNER

    key = jax.random.PRNGKey(0)
    kx, k1, k2, k3 = jax.random.split(key, 4)

    x = jax.random.normal(kx, (B, N, DIM), dtype=jnp.float32)

    # Deterministic synthetic parameters (Linear weights stored as (in, out)).
    gamma = jnp.ones((1, DIM), dtype=jnp.float32)        # LayerNorm gamma (ones)
    beta = jnp.zeros((1, DIM), dtype=jnp.float32)        # LayerNorm beta buffer
    w_fused = jax.random.normal(k1, (DIM, TOTAL), dtype=jnp.float32) * DIM ** -0.5
    w_attn = jax.random.normal(k2, (ATTN_INNER, DIM), dtype=jnp.float32) * ATTN_INNER ** -0.5
    w_ff = jax.random.normal(k3, (FF_INNER, DIM), dtype=jnp.float32) * FF_INNER ** -0.5
    params = (gamma, beta, w_fused, w_attn, w_ff)

    # One-time weight packing / bf16 cast / rotary-table build (not per call).
    prepared = prepare_params(params, n=N, heads=HEADS, dim_head=DIM_HEAD,
                              ff_mult=FF_MULT)

    out = parallel_transformer_block(x, prepared, heads=HEADS,
                                     dim_head=DIM_HEAD, ff_mult=FF_MULT)
    out = jax.block_until_ready(out)

    ref = jax.block_until_ready(
        reference(x, params, heads=HEADS, dim_head=DIM_HEAD, ff_mult=FF_MULT))

    assert out.shape == (B, N, DIM)
    err = jnp.max(jnp.abs(out - ref))
    # bf16 MXU operands + approx reciprocal => slightly looser tolerance than f32.
    assert jnp.allclose(out, ref, atol=3e-2, rtol=3e-2), f"max abs err {err}"

    # Dropout layers (attn_dropout / ff_dropout) are identity at p=0.0 / eval;
    # finetune_modules (LoRA) path not exercised, matching the default call.
    print("KERNEL_OK")
</pallas_src>

<mosaic_0001>
module attributes {stable_mosaic.version = 11 : i64} {
  func.func @_block_kernel(%arg0: i32, %arg1: memref<2x16x128xf32, #tpu.memory_space<vmem>>, %arg2: memref<1x128xf32, #tpu.memory_space<vmem>>, %arg3: memref<1x128xf32, #tpu.memory_space<vmem>>, %arg4: memref<128x1792xbf16, #tpu.memory_space<vmem>>, %arg5: memref<1024x128xbf16, #tpu.memory_space<vmem>>, %arg6: memref<64x128xf32, #tpu.memory_space<vmem>>, %arg7: memref<64x128xf32, #tpu.memory_space<vmem>>, %arg8: memref<16x128xf32, #tpu.memory_space<vmem>>, %arg9: memref<16x128xf32, #tpu.memory_space<vmem>>, %arg10: memref<2x16x128xf32, #tpu.memory_space<vmem>>) attributes {dimension_semantics = [#tpu.dimension_semantics<parallel>], iteration_bounds = array<i64: 2>, scalar_prefetch = 0 : i64, scratch_operands = 0 : i64, tpu.core_type = #tpu.core_type<tc>, window_params = [{transform_indices = @transform_0, window_bounds = array<i64: 2, 16, 128>}, {pipeline_mode = #tpu.pipeline_mode<synchronous>, transform_indices = @transform_1, window_bounds = array<i64: 1, 128>}, {pipeline_mode = #tpu.pipeline_mode<synchronous>, transform_indices = @transform_2, window_bounds = array<i64: 1, 128>}, {pipeline_mode = #tpu.pipeline_mode<synchronous>, transform_indices = @transform_3, window_bounds = array<i64: 128, 1792>}, {pipeline_mode = #tpu.pipeline_mode<synchronous>, transform_indices = @transform_4, window_bounds = array<i64: 1024, 128>}, {pipeline_mode = #tpu.pipeline_mode<synchronous>, transform_indices = @transform_5, window_bounds = array<i64: 64, 128>}, {pipeline_mode = #tpu.pipeline_mode<synchronous>, transform_indices = @transform_6, window_bounds = array<i64: 64, 128>}, {pipeline_mode = #tpu.pipeline_mode<synchronous>, transform_indices = @transform_7, window_bounds = array<i64: 16, 128>}, {pipeline_mode = #tpu.pipeline_mode<synchronous>, transform_indices = @transform_8, window_bounds = array<i64: 16, 128>}, {transform_indices = @transform_9, window_bounds = array<i64: 2, 16, 128>}]} {
    %c0 = arith.constant 0 : index
    %c0_0 = arith.constant 0 : index
    %c0_1 = arith.constant 0 : index
    %0 = vector.load %arg1[%c0, %c0_0, %c0_1] : memref<2x16x128xf32, #tpu.memory_space<vmem>>, vector<2x16x128xf32>
    %1 = vector.shape_cast %0 : vector<2x16x128xf32> to vector<32x128xf32>
    %cst = arith.constant dense<0.000000e+00> : vector<32xf32>
    %2 = vector.multi_reduction <add>, %1, %cst [1] : vector<32x128xf32> to vector<32xf32>
    %3 = vector.shape_cast %2 : vector<32xf32> to vector<32x1xf32>
    %cst_2 = arith.constant 1.280000e+02 : f32
    %4 = vector.broadcast %cst_2 : f32 to vector<32x1xf32>
    %5 = arith.divf %3, %4 : vector<32x1xf32>
    %6 = vector.broadcast %5 : vector<32x1xf32> to vector<32x128xf32>
    %7 = arith.subf %1, %6 : vector<32x128xf32>
    %8 = arith.mulf %7, %7 : vector<32x128xf32>
    %cst_3 = arith.constant dense<0.000000e+00> : vector<32xf32>
    %9 = vector.multi_reduction <add>, %8, %cst_3 [1] : vector<32x128xf32> to vector<32xf32>
    %10 = vector.shape_cast %9 : vector<32xf32> to vector<32x1xf32>
    %cst_4 = arith.constant 1.280000e+02 : f32
    %11 = vector.broadcast %cst_4 : f32 to vector<32x1xf32>
    %12 = arith.divf %10, %11 : vector<32x1xf32>
    %13 = vector.broadcast %5 : vector<32x1xf32> to vector<32x128xf32>
    %14 = arith.subf %1, %13 : vector<32x128xf32>
    %cst_5 = arith.constant 9.99999974E-6 : f32
    %15 = vector.broadcast %cst_5 : f32 to vector<32x1xf32>
    %16 = arith.addf %12, %15 : vector<32x1xf32>
    %17 = math.rsqrt %16 : vector<32x1xf32>
    %18 = vector.broadcast %17 : vector<32x1xf32> to vector<32x128xf32>
    %19 = arith.mulf %14, %18 : vector<32x128xf32>
    %c0_6 = arith.constant 0 : index
    %c0_7 = arith.constant 0 : index
    %20 = vector.load %arg2[%c0_6, %c0_7] : memref<1x128xf32, #tpu.memory_space<vmem>>, vector<1x128xf32>
    %21 = vector.broadcast %20 : vector<1x128xf32> to vector<32x128xf32>
    %22 = arith.mulf %19, %21 : vector<32x128xf32>
    %c0_8 = arith.constant 0 : index
    %c0_9 = arith.constant 0 : index
    %23 = vector.load %arg3[%c0_8, %c0_9] : memref<1x128xf32, #tpu.memory_space<vmem>>, vector<1x128xf32>
    %24 = vector.broadcast %23 : vector<1x128xf32> to vector<32x128xf32>
    %25 = arith.addf %22, %24 : vector<32x128xf32>
    %26 = arith.truncf %25 : vector<32x128xf32> to vector<32x128xbf16>
    %c0_10 = arith.constant 0 : index
    %c0_11 = arith.constant 0 : index
    %27 = vector.load %arg4[%c0_10, %c0_11] : memref<128x1792xbf16, #tpu.memory_space<vmem>>, vector<128x1792xbf16>
    %cst_12 = arith.constant dense<0.000000e+00> : vector<32x1792xf32>
    %28 = tpu.matmul %26, %27, %cst_12 {dimension_numbers = #tpu.dot_dimension_numbers<[1], [0], [0], [1], [0, 0, 1, 1], [], []>} : vector<32x128xbf16>, vector<128x1792xbf16>, vector<32x1792xf32> -> vector<32x1792xf32>
    %c0_13 = arith.constant 0 : index
    %c0_14 = arith.constant 0 : index
    %29 = vector.load %arg6[%c0_13, %c0_14] : memref<64x128xf32, #tpu.memory_space<vmem>>, vector<64x128xf32>
    %c0_15 = arith.constant 0 : index
    %c0_16 = arith.constant 0 : index
    %30 = vector.load %arg7[%c0_15, %c0_16] : memref<64x128xf32, #tpu.memory_space<vmem>>, vector<64x128xf32>
    %c0_17 = arith.constant 0 : index
    %c0_18 = arith.constant 0 : index
    %31 = vector.load %arg8[%c0_17, %c0_18] : memref<16x128xf32, #tpu.memory_space<vmem>>, vector<16x128xf32>
    %c0_19 = arith.constant 0 : index
    %c0_20 = arith.constant 0 : index
    %32 = vector.load %arg9[%c0_19, %c0_20] : memref<16x128xf32, #tpu.memory_space<vmem>>, vector<16x128xf32>
    %33 = tpu.iota {dimensions = array<i32: 0>} : vector<64x16xi32>
    %34 = tpu.iota {dimensions = array<i32: 1>} : vector<64x16xi32>
    %c4_i32 = arith.constant 4 : i32
    %35 = vector.broadcast %c4_i32 : i32 to vector<64x16xi32>
    %36 = arith.muli %34, %35 : vector<64x16xi32>
    %37 = arith.cmpi slt, %33, %36 : vector<64x16xi32>
    %cst_21 = arith.constant -1.000000e+30 : f32
    %cst_22 = arith.constant 0.000000e+00 : f32
    %38 = vector.broadcast %cst_21 : f32 to vector<64x16xf32>
    %39 = vector.broadcast %cst_22 : f32 to vector<64x16xf32>
    %40 = arith.select %37, %38, %39 : vector<64x16xi1>, vector<64x16xf32>
    %41 = vector.extract_strided_slice %28 {offsets = [0, 0], sizes = [16, 512], strides = [1, 1]} : vector<32x1792xf32> to vector<16x512xf32>
    %42 = vector.shape_cast %41 : vector<16x512xf32> to vector<64x128xf32>
    %43 = vector.extract_strided_slice %28 {offsets = [0, 512], sizes = [16, 128], strides = [1, 1]} : vector<32x1792xf32> to vector<16x128xf32>
    %44 = vector.extract_strided_slice %28 {offsets = [0, 640], sizes = [16, 128], strides = [1, 1]} : vector<32x1792xf32> to vector<16x128xf32>
    %45 = arith.mulf %42, %29 : vector<64x128xf32>
    %c64_i32 = arith.constant 64 : i32
    %46 = tpu.dynamic_rotate %42 by %c64_i32 dim 1 : vector<64x128xf32>, i32 -> vector<64x128xf32>
    %47 = arith.mulf %46, %30 : vector<64x128xf32>
    %48 = arith.addf %45, %47 : vector<64x128xf32>
    %49 = arith.mulf %43, %31 : vector<16x128xf32>
    %c64_i32_23 = arith.constant 64 : i32
    %50 = tpu.dynamic_rotate %43 by %c64_i32_23 dim 1 : vector<16x128xf32>, i32 -> vector<16x128xf32>
    %51 = arith.mulf %50, %32 : vector<16x128xf32>
    %52 = arith.addf %49, %51 : vector<16x128xf32>
    %53 = arith.truncf %48 : vector<64x128xf32> to vector<64x128xbf16>
    %54 = arith.truncf %52 : vector<16x128xf32> to vector<16x128xbf16>
    %cst_24 = arith.constant dense<0.000000e+00> : vector<64x16xf32>
    %55 = tpu.matmul %53, %54, %cst_24 {dimension_numbers = #tpu.dot_dimension_numbers<[1], [1], [0], [0], [0, 0, 1, 0], [], []>} : vector<64x128xbf16>, vector<16x128xbf16>, vector<64x16xf32> -> vector<64x16xf32>
    %56 = arith.addf %55, %40 : vector<64x16xf32>
    %cst_25 = arith.constant dense<0xFF800000> : vector<64xf32>
    %57 = vector.multi_reduction <maximumf>, %56, %cst_25 [1] : vector<64x16xf32> to vector<64xf32>
    %58 = vector.shape_cast %57 : vector<64xf32> to vector<64x1xf32>
    %59 = vector.broadcast %58 : vector<64x1xf32> to vector<64x16xf32>
    %60 = arith.subf %56, %59 : vector<64x16xf32>
    %61 = math.exp %60 : vector<64x16xf32>
    %cst_26 = arith.constant dense<0.000000e+00> : vector<64xf32>
    %62 = vector.multi_reduction <add>, %61, %cst_26 [1] : vector<64x16xf32> to vector<64xf32>
    %63 = vector.shape_cast %62 : vector<64xf32> to vector<64x1xf32>
    %64 = tpu.reciprocal %63 {approx = true} : vector<64x1xf32> -> vector<64x1xf32>
    %65 = vector.broadcast %64 : vector<64x1xf32> to vector<64x16xf32>
    %66 = arith.mulf %61, %65 : vector<64x16xf32>
    %67 = arith.truncf %66 : vector<64x16xf32> to vector<64x16xbf16>
    %68 = arith.truncf %44 : vector<16x128xf32> to vector<16x128xbf16>
    %cst_27 = arith.constant dense<0.000000e+00> : vector<64x128xf32>
    %69 = tpu.matmul %67, %68, %cst_27 {dimension_numbers = #tpu.dot_dimension_numbers<[1], [0], [0], [1], [0, 0, 1, 1], [], []>} : vector<64x16xbf16>, vector<16x128xbf16>, vector<64x128xf32> -> vector<64x128xf32>
    %70 = vector.shape_cast %69 : vector<64x128xf32> to vector<16x512xf32>
    %71 = arith.truncf %70 : vector<16x512xf32> to vector<16x512xbf16>
    %72 = vector.extract_strided_slice %28 {offsets = [16, 0], sizes = [16, 512], strides = [1, 1]} : vector<32x1792xf32> to vector<16x512xf32>
    %73 = vector.shape_cast %72 : vector<16x512xf32> to vector<64x128xf32>
    %74 = vector.extract_strided_slice %28 {offsets = [16, 512], sizes = [16, 128], strides = [1, 1]} : vector<32x1792xf32> to vector<16x128xf32>
    %75 = vector.extract_strided_slice %28 {offsets = [16, 640], sizes = [16, 128], strides = [1, 1]} : vector<32x1792xf32> to vector<16x128xf32>
    %76 = arith.mulf %73, %29 : vector<64x128xf32>
    %c64_i32_28 = arith.constant 64 : i32
    %77 = tpu.dynamic_rotate %73 by %c64_i32_28 dim 1 : vector<64x128xf32>, i32 -> vector<64x128xf32>
    %78 = arith.mulf %77, %30 : vector<64x128xf32>
    %79 = arith.addf %76, %78 : vector<64x128xf32>
    %80 = arith.mulf %74, %31 : vector<16x128xf32>
    %c64_i32_29 = arith.constant 64 : i32
    %81 = tpu.dynamic_rotate %74 by %c64_i32_29 dim 1 : vector<16x128xf32>, i32 -> vector<16x128xf32>
    %82 = arith.mulf %81, %32 : vector<16x128xf32>
    %83 = arith.addf %80, %82 : vector<16x128xf32>
    %84 = arith.truncf %79 : vector<64x128xf32> to vector<64x128xbf16>
    %85 = arith.truncf %83 : vector<16x128xf32> to vector<16x128xbf16>
    %cst_30 = arith.constant dense<0.000000e+00> : vector<64x16xf32>
    %86 = tpu.matmul %84, %85, %cst_30 {dimension_numbers = #tpu.dot_dimension_numbers<[1], [1], [0], [0], [0, 0, 1, 0], [], []>} : vector<64x128xbf16>, vector<16x128xbf16>, vector<64x16xf32> -> vector<64x16xf32>
    %87 = arith.addf %86, %40 : vector<64x16xf32>
    %cst_31 = arith.constant dense<0xFF800000> : vector<64xf32>
    %88 = vector.multi_reduction <maximumf>, %87, %cst_31 [1] : vector<64x16xf32> to vector<64xf32>
    %89 = vector.shape_cast %88 : vector<64xf32> to vector<64x1xf32>
    %90 = vector.broadcast %89 : vector<64x1xf32> to vector<64x16xf32>
    %91 = arith.subf %87, %90 : vector<64x16xf32>
    %92 = math.exp %91 : vector<64x16xf32>
    %cst_32 = arith.constant dense<0.000000e+00> : vector<64xf32>
    %93 = vector.multi_reduction <add>, %92, %cst_32 [1] : vector<64x16xf32> to vector<64xf32>
    %94 = vector.shape_cast %93 : vector<64xf32> to vector<64x1xf32>
    %95 = tpu.reciprocal %94 {approx = true} : vector<64x1xf32> -> vector<64x1xf32>
    %96 = vector.broadcast %95 : vector<64x1xf32> to vector<64x16xf32>
    %97 = arith.mulf %92, %96 : vector<64x16xf32>
    %98 = arith.truncf %97 : vector<64x16xf32> to vector<64x16xbf16>
    %99 = arith.truncf %75 : vector<16x128xf32> to vector<16x128xbf16>
    %cst_33 = arith.constant dense<0.000000e+00> : vector<64x128xf32>
    %100 = tpu.matmul %98, %99, %cst_33 {dimension_numbers = #tpu.dot_dimension_numbers<[1], [0], [0], [1], [0, 0, 1, 1], [], []>} : vector<64x16xbf16>, vector<16x128xbf16>, vector<64x128xf32> -> vector<64x128xf32>
    %101 = vector.shape_cast %100 : vector<64x128xf32> to vector<16x512xf32>
    %102 = arith.truncf %101 : vector<16x512xf32> to vector<16x512xbf16>
    %103 = tpu.concatenate %71, %102 in 0 : vector<16x512xbf16>, vector<16x512xbf16> -> vector<32x512xbf16>
    %104 = vector.extract_strided_slice %28 {offsets = [0, 768], sizes = [32, 1024], strides = [1, 1]} : vector<32x1792xf32> to vector<32x1024xf32>
    %105 = vector.extract_strided_slice %104 {offsets = [0, 0], sizes = [32, 512], strides = [1, 1]} : vector<32x1024xf32> to vector<32x512xf32>
    %106 = vector.extract_strided_slice %104 {offsets = [0, 512], sizes = [32, 512], strides = [1, 1]} : vector<32x1024xf32> to vector<32x512xf32>
    %107 = arith.negf %106 : vector<32x512xf32>
    %108 = math.exp %107 : vector<32x512xf32>
    %cst_34 = arith.constant 1.000000e+00 : f32
    %109 = vector.broadcast %cst_34 : f32 to vector<32x512xf32>
    %110 = arith.addf %109, %108 : vector<32x512xf32>
    %111 = arith.divf %109, %110 : vector<32x512xf32>
    %112 = arith.mulf %106, %111 : vector<32x512xf32>
    %113 = arith.mulf %105, %112 : vector<32x512xf32>
    %114 = arith.truncf %113 : vector<32x512xf32> to vector<32x512xbf16>
    %115 = tpu.concatenate %103, %114 in 1 : vector<32x512xbf16>, vector<32x512xbf16> -> vector<32x1024xbf16>
    %c0_35 = arith.constant 0 : index
    %c0_36 = arith.constant 0 : index
    %116 = vector.load %arg5[%c0_35, %c0_36] : memref<1024x128xbf16, #tpu.memory_space<vmem>>, vector<1024x128xbf16>
    %cst_37 = arith.constant dense<0.000000e+00> : vector<32x128xf32>
    %117 = tpu.matmul %115, %116, %cst_37 {dimension_numbers = #tpu.dot_dimension_numbers<[1], [0], [0], [1], [0, 0, 1, 1], [], []>} : vector<32x1024xbf16>, vector<1024x128xbf16>, vector<32x128xf32> -> vector<32x128xf32>
    %118 = vector.shape_cast %117 : vector<32x128xf32> to vector<2x16x128xf32>
    %c0_38 = arith.constant 0 : index
    %c0_39 = arith.constant 0 : index
    %c0_40 = arith.constant 0 : index
    %119 = vector.load %arg10[%c0_38, %c0_39, %c0_40] : memref<2x16x128xf32, #tpu.memory_space<vmem>>, vector<2x16x128xf32>
    tpu.vector_store %arg10[%c0_38, %c0_39, %c0_40], %118 {strides = array<i32>} : memref<2x16x128xf32, #tpu.memory_space<vmem>>, vector<2x16x128xf32>,
    return
  }
  func.func @transform_0(%arg0: i32) -> (i32, i32, i32) {
    %c0_i32 = arith.constant 0 : i32
    %c0_i32_0 = arith.constant 0 : i32
    %c0_i32_1 = arith.constant 0 : i32
    return %arg0, %c0_i32, %c0_i32_0 : i32, i32, i32
  }
  func.func @transform_1(%arg0: i32) -> (i32, i32) {
    %c0_i32 = arith.constant 0 : i32
    %c0_i32_0 = arith.constant 0 : i32
    %c0_i32_1 = arith.constant 0 : i32
    return %c0_i32, %c0_i32_0 : i32, i32
  }
  func.func @transform_2(%arg0: i32) -> (i32, i32) {
    %c0_i32 = arith.constant 0 : i32
    %c0_i32_0 = arith.constant 0 : i32
    %c0_i32_1 = arith.constant 0 : i32
    return %c0_i32, %c0_i32_0 : i32, i32
  }
  func.func @transform_3(%arg0: i32) -> (i32, i32) {
    %c0_i32 = arith.constant 0 : i32
    %c0_i32_0 = arith.constant 0 : i32
    %c0_i32_1 = arith.constant 0 : i32
    return %c0_i32, %c0_i32_0 : i32, i32
  }
  func.func @transform_4(%arg0: i32) -> (i32, i32) {
    %c0_i32 = arith.constant 0 : i32
    %c0_i32_0 = arith.constant 0 : i32
    %c0_i32_1 = arith.constant 0 : i32
    return %c0_i32, %c0_i32_0 : i32, i32
  }
  func.func @transform_5(%arg0: i32) -> (i32, i32) {
    %c0_i32 = arith.constant 0 : i32
    %c0_i32_0 = arith.constant 0 : i32
    %c0_i32_1 = arith.constant 0 : i32
    return %c0_i32, %c0_i32_0 : i32, i32
  }
  func.func @transform_6(%arg0: i32) -> (i32, i32) {
    %c0_i32 = arith.constant 0 : i32
    %c0_i32_0 = arith.constant 0 : i32
    %c0_i32_1 = arith.constant 0 : i32
    return %c0_i32, %c0_i32_0 : i32, i32
  }
  func.func @transform_7(%arg0: i32) -> (i32, i32) {
    %c0_i32 = arith.constant 0 : i32
    %c0_i32_0 = arith.constant 0 : i32
    %c0_i32_1 = arith.constant 0 : i32
    return %c0_i32, %c0_i32_0 : i32, i32
  }
  func.func @transform_8(%arg0: i32) -> (i32, i32) {
    %c0_i32 = arith.constant 0 : i32
    %c0_i32_0 = arith.constant 0 : i32
    %c0_i32_1 = arith.constant 0 : i32
    return %c0_i32, %c0_i32_0 : i32, i32
  }
  func.func @transform_9(%arg0: i32) -> (i32, i32, i32) {
    %c0_i32 = arith.constant 0 : i32
    %c0_i32_0 = arith.constant 0 : i32
    %c0_i32_1 = arith.constant 0 : i32
    return %arg0, %c0_i32, %c0_i32_0 : i32, i32, i32
  }
}

</mosaic_0001>

<bundles_post_ra>
// kernel: tpu_custom_call.1
= control target key start
LH: loop header
LB: loop body
LE: loop exit
PB: predicated region body
PF: predicated region fallthrough
CT: control target
= control target key end

     0   :  { %s6312_s0 = inlined_call_operand.hbm [shape: f32[4,16,128], index: 0, kind: input, shape index: {}]   ;;  %s6313_s1 = inlined_call_operand.hbm [shape: f32[1,128], index: 1, kind: input, shape index: {}]   ;;  %s6314_s2 = inlined_call_operand.vmem [shape: f32[1,128], index: 2, kind: input, shape index: {}]   ;;  %s6315_s3 = inlined_call_operand.hbm [shape: bf16[128,1792], index: 3, kind: input, shape index: {}]   ;;  %s6316_s4 = inlined_call_operand.hbm [shape: bf16[1024,128], index: 4, kind: input, shape index: {}]   ;;  %s6317_s5 = inlined_call_operand.hbm [shape: f32[64,128], index: 5, kind: input, shape index: {}]   ;;  %s6318_s6 = inlined_call_operand.hbm [shape: f32[64,128], index: 6, kind: input, shape index: {}]   ;;  %s6319_s7 = inlined_call_operand.hbm [shape: f32[16,128], index: 7, kind: input, shape index: {}]   ;;  %s6320_s8 = inlined_call_operand.hbm [shape: f32[16,128], index: 8, kind: input, shape index: {}]   ;;  %s6321_s9 = inlined_call_operand.hbm [shape: f32[4,16,128], index: 9, kind: output, shape index: {}]  }
   0x1   :  { %6324 = sst [smem:[#allocation27_spill]] %s6313_s1 }
   0x2   :  { %6325 = sst [smem:[#allocation28_spill]] %s6315_s3 }
   0x3   :  { %6326 = sst [smem:[#allocation29_spill]] %s6316_s4 }
   0x4   :  { %14 = vsyncpa [#allocation3], 0 }
   0x5   :  { %16 = vsyncpa [#allocation3 + $0x1], 0 }
   0x6   :  { %17 = vsyncpa [#allocation6], 0 }
   0x7   :  { %18 = vsyncpa [#allocation9], 0 }
   0x8   :  { %19 = vsyncpa [#allocation12], 0 }
   0x9   :  { %20 = vsyncpa [#allocation15], 0 }
   0xa   :  { %21 = vsyncpa [#allocation4], 0 }
   0xb   :  { %23 = vsyncpa [#allocation4 + $0x1], 0  ;;  %s5194_s30 = smov 0   ;;  %s5196_s10 = smov 0  }
   0xc   :  { %s5198_s11 = smov 0   ;;  %s5200_s12 = smov 0  }
   0xd LB: > { %s6327_s1 = sld [smem:[#allocation27_spill]]  ;;  %s5218_s16 = sadd.s32 4294967295, %s5122_s12   ;;  %s5122_s12 = sphi %s5200_s12, %s6378_s12   ;;  %s5118_s11 = sphi %s5198_s11, %s6377_s11   ;;  %s5114_s10 = sphi %s5196_s10, %s6376_s10   ;;  %s5110_s30 = sphi %s5194_s30, %s6375_s30  }
   0xe   : > { %p3577_p0 = scmp.ge.s32.totalorder %s5122_s12, 1  ;;  %p50_p1 = scmp.eq.s32.totalorder %s5218_s16, 0 }
   0xf   : > { %p254_p2 = scmp.lt.s32.totalorder %s5122_s12, 3  ;;  %s5124_s18 = smov [#allocation5]  }
  0x10   : > { %s268_s19 = sshll.u32 %s5124_s18, 4  ;;  %s6329_s4 = sld [smem:[#allocation29_spill]]  ;;  %s269_s19 = int_to_ptr.vmem [resolvable:$true] %s268_s19 }
  0x11   : > { %p5223_p3 = pnand %p3577_p0, %p254_p2  ;;  %s5125_s24 = smov [#allocation8]  }
  0x12   : > { %s296_s25 = sshll.u32 %s5125_s24, 4  ;;  %s5126_s26 = smov 64   ;;  %s297_s25 = int_to_ptr.vmem [resolvable:$true] %s296_s25 }
  0x13   : > { %s266_s15 = sshll.u32 %s6327_s1, 4  ;;  %p4562_p5 = pneg %p5223_p3  ;;  %s267_s15 = int_to_ptr.hbm [resolvable:$true] %s266_s15 }
  0x14   : > { %s5127_s27 = smov 4   ;;  %s322_s13 = sshll.u32 %s6318_s6, 4  ;;  %s323_s13 = int_to_ptr.hbm [resolvable:$true] %s322_s13 }
  0x15   : > { %p5235_p6 = pnand %p4562_p5, %p50_p1  ;;  %s5128_s14 = smov [#allocation11]  }
  0x16   : > { %s294_s22 = sshll.u32 %s6329_s4, 4  ;;  %s324_s18 = sshll.u32 %s5128_s14, 4  ;;  %s295_s22 = int_to_ptr.hbm [resolvable:$true] %s294_s22  ;;  %s325_s18 = int_to_ptr.vmem [resolvable:$true] %s324_s18 }
  0x17   : > { %4565 = dma.hbm_to_vmem [thread:$0]  (!%p5235_p6), %s267_s15, 16, %s269_s19, [#allocation6]  }
  0x18   : > { %4571 = dma.hbm_to_vmem [thread:$0]  (!%p5235_p6), %s295_s22, 8192, %s297_s25, [#allocation9], %s5126_s26, %s5126_s26, %s5127_s27  }
  0x19   : > { %s6331_s3 = sld [smem:[#allocation28_spill]]  ;;  %s6322_s1 = smov 128  }
  0x1a   : > { %s6323_s15 = smov 8   ;;  %s5131_s19 = smov [#allocation7]  }
  0x1b   : > { %4577 = dma.hbm_to_vmem [thread:$0]  (!%p5235_p6), %s323_s13, 1024, %s325_s18, [#allocation12], %s6322_s1, %s6322_s1, %s6323_s15  }
  0x1c   : > { %s282_s22 = sshll.u32 %s5131_s19, 4  ;;  %s5132_s25 = smov 896   ;;  %s283_s22 = int_to_ptr.vmem [resolvable:$true] %s282_s22 }
  0x1d   : > { %s5133_s26 = smov 56   ;;  %s308_s29 = sshll.u32 %s6317_s5, 4  ;;  %s309_s29 = int_to_ptr.hbm [resolvable:$true] %s308_s29 }
  0x1e   : > { %s5134_s14 = smov [#allocation10]   ;;  %s336_s21 = sshll.u32 %s6319_s7, 4  ;;  %s337_s21 = int_to_ptr.hbm [resolvable:$true] %s336_s21 }
  0x1f   : > { %s280_s24 = sshll.u32 %s6331_s3, 4  ;;  %s310_s20 = sshll.u32 %s5134_s14, 4  ;;  %s281_s24 = int_to_ptr.hbm [resolvable:$true] %s280_s24  ;;  %s311_s20 = int_to_ptr.vmem [resolvable:$true] %s310_s20 }
  0x20   : > { %4568 = dma.hbm_to_vmem [thread:$0]  (!%p5235_p6), %s281_s24, 14336, %s283_s22, [#allocation6], %s5132_s25, %s5132_s25, %s5133_s26  }
  0x21   : > { %4574 = dma.hbm_to_vmem [thread:$0]  (!%p5235_p6), %s309_s29, 1024, %s311_s20, [#allocation9], %s6322_s1, %s6322_s1, %s6323_s15  }
  0x22   : > { %s5135_s24 = smov [#allocation13]   ;;  %s350_s26 = sshll.u32 %s6320_s8, 4  ;;  %s351_s26 = int_to_ptr.hbm [resolvable:$true] %s350_s26 }
  0x23   : > { %s338_s19 = sshll.u32 %s5135_s24, 4  ;;  %s5136_s27 = smov [#allocation14]   ;;  %s339_s19 = int_to_ptr.vmem [resolvable:$true] %s338_s19 }
  0x24   : > { %4580 = dma.hbm_to_vmem [thread:$0]  (!%p5235_p6), %s337_s21, 256, %s339_s19, [#allocation12], %s6322_s1, %s6322_s1, %s6323_s15  }
  0x25   : > { %s352_s28 = sshll.u32 %s5136_s27, 4  ;;  %s3576_s29 = sadd.s32 4294967294, %s5122_s12   ;;  %s353_s28 = int_to_ptr.vmem [resolvable:$true] %s352_s28 }
  0x26   : > { %4583 = dma.hbm_to_vmem [thread:$0]  (!%p5235_p6), %s351_s26, 256, %s353_s28, [#allocation15], %s6322_s1, %s6322_s1, %s6323_s15  }
  0x27   : > { %s5282_s14 = sadd.s32 1, %s5122_s12   ;;  %s36_s20 = sadd.s32 1, %s5118_s11 }
  0x28   : > { %s33_s13 = ssub.s32 %s5122_s12, %s5282_s14  ;;  %p43_p7 = scmp.ne.s32.totalorder %s5118_s11, %s5114_s10 }
  0x29   : > { %p34_p8 = scmp.eq.s32.totalorder %s33_s13, 0  ;;  %p44_p9 = scmp.eq.s32.totalorder %s5122_s12, 0 }
  0x2a   : > { %p49_p10 = scmp.ne.s32.totalorder %s5114_s10, %s5110_s30  ;;  %p241_p11 = scmp.eq.s32.totalorder %s5218_s16, 1 }
  0x2b   : > { %s5294_s18 = scalar_select %p34_p8, %s5118_s11, %s36_s20  }
  0x2c   : > { %p5298_p12 = por %p50_p1, %p49_p10  ;;  %p5302_p13 = por %p241_p11, %p43_p7 }
  0x2d   : > { %p247_p0 = scmp.eq.s32.totalorder %s3576_s29, 1  ;;  %p45_p2 = por %p44_p9, %p43_p7 }
  0x2e   : > { %s366_s24 = sand.u32 1, %s5118_s11   ;;  %p4599_p6 = scmp.lt.s32.totalorder %s5122_s12, 2 }
  0x2f   : > { %p5307_p5 = por %p247_p0, %p49_p10  ;;  %s3586_s22 = sshll.u32 %s366_s24, 5 }
  0x30   : > { %s4335_s25 = sshll.u32 %s5122_s12, 5  ;;  %s370_s13 = scalar_lea.vmem [#allocation2], %s3586_s22 }
  0x31   : > { %s376_s28 = scalar_lea.hbm %s6312_s0, %s4335_s25  ;;  %s379_s1 = sshll.u32 %s370_s13, 4  ;;  %s380_s1 = int_to_ptr.vmem [resolvable:$true] %s379_s1 }
  0x32   : > { %s377_s20 = sshll.u32 %s376_s28, 4  ;;  %p5316_p8 = pnand %p4599_p6, %p45_p2  ;;  %s378_s20 = int_to_ptr.hbm [resolvable:$true] %s377_s20 }
  0x33   : > { %s367_s15 = scalar_lea.sflag [#allocation3], %s366_s24  ;;  %s5010_s3 = sshra.s32 %s378_s20, 4  ;;  %s5011_s3 = int_to_ptr.hbm [resolvable:$true] %s5010_s3 }
  0x34   : > { %s5012_s4 = scalar_lea.hbm %s5011_s3, 32  ;;  %p5014_p9 = pneg %p5316_p8 }
  0x35   : > { %p5013_p7 = scmp.ne.s32.totalorder %s5011_s3, %s5012_s4  ;;  %s5017_s22 = scalar_lea.hbm %s6312_s0, 64 }
  0x36   : > { %p5018_p0 = scmp.lt.s32.totalorder %s5011_s3, %s6312_s0  ;;  %p5019_p2 = scmp.lt.s32.totalorder %s5017_s22, %s5012_s4 }
  0x37   : > { %p5015_p10 = pnand %p5014_p9, %p5013_p7 }
  0x38   : > { %p5020_p6 = por %p5019_p2, %p5018_p0 }
  0x39   : > { %p5016_p11 = pneg %p5015_p10 }
  0x3b   : > { %p5021_p4 = pnand %p5020_p6, %p5016_p11 }
  0x3d   : > { %5024 = shalt.err (!%p5021_p4)
}
  0x3e   : > { %s6336_s24 = smov 8   ;;  %s6337_s13 = smov 128  }
  0x3f   : > { %4587 = dma.hbm_to_vmem [thread:$0]  (!%p5316_p8), %s378_s20, 512, %s380_s1, %s367_s15, %s6337_s13, %s6337_s13, %s6336_s24  }
  0x40   : > { %391 = sbr.rel (%p5223_p3) target bundleno = 1529 (0x5f9), region = 56 }
  0x45   : > { %s5336_s25 = sand.u32 1, %s5114_s10  }
  0x46   : > { %s3591_s3 = sshll.u32 %s5336_s25, 5  ;;  %s394_s4 = scalar_lea.sflag [#allocation3], %s5336_s25 }
  0x47   : > { %s397_s26 = scalar_lea.vmem [#allocation2], %s3591_s3 }
  0x48   : > { %5085 = dma.done.wait (%p5298_p12), %s394_s4, 512  }
  0x49   : > { %5087 = vsyncadd (%p5298_p12), %s394_s4, 4294966784 }
  0x4a   : > { %5089 = dma.done.wait (%p50_p1), [#allocation6], 14352  }
  0x4b   : > { %5091 = vsyncadd (%p50_p1), [#allocation6], 4294952944 }
  0x4c   : > { %5093 = dma.done.wait (%p50_p1), [#allocation9], 9216  }
  0x4d   : > { %5095 = vsyncadd (%p50_p1), [#allocation9], 4294958080 }
  0x4e   : > { %5097 = dma.done.wait (%p50_p1), [#allocation12], 1280  }
  0x4f   : > { %5099 = vsyncadd (%p50_p1), [#allocation12], 4294966016 }
  0x50   : > { %5101 = dma.done.wait (%p50_p1), [#allocation15], 256  }
  0x51   : > { %5103 = vsyncadd (%p50_p1), [#allocation15], 4294967040  ;;  %v473_v0 = vld [vmem:[%s397_s26 + $0x10] sm:$0xff]  ;;  %v471_v1 = vld [vmem:[%s397_s26] sm:$0xff]  ;;  %v5137_v4 = vmov 128.0   ;;  %vm1580_vm13 = vcmask 1041408  }
  0x52   : > { %479 = vadd.xlane.f32.xlu1 %v473_v0  ;;  %475 = vadd.xlane.f32.xlu0 %v471_v1  ;;  %v474_v2 = vld [vmem:[%s397_s26 + $0x18] sm:$0xff]  ;;  %v472_v3 = vld [vmem:[%s397_s26 + $0x8] sm:$0xff]  ;;  %4662 = vrcp.f32 %v5137_v4  ;;  %v3994_v27 = vld [vmem:[#allocation7 + $0x310] sm:$0xf]  ;;  %vm1584_vm14 = vcmask 1043456   ;;  %vm1582_vm15 = vcmask 1045508  }
  0x53   : > { %v4441_v28 = vld [vmem:[#allocation7 + $0x344] sm:$0xf0]  ;;  %v4434_v29 = vld [vmem:[#allocation7 + $0x314] sm:$0xf]  ;;  %v3996_v31 = vld [vmem:[#allocation7 + $0x348] sm:$0xf0] }
  0x54   : > { %v3995_v30 = vor.u32 %v4441_v28, %v3994_v27  ;;  %v4002_v32 = vld [vmem:[#allocation7 + $0x318] sm:$0xf]  ;;  %v4442_v33 = vld [vmem:[#allocation7 + $0x34c] sm:$0xf0]  ;;  %v3999_v34 = vor.u32 %v4434_v29, %v3996_v31  ;;  %v4435_v36 = vld [vmem:[#allocation7 + $0x31c] sm:$0xf] }
  0x55   : > { %v4003_v35 = vor.u32 %v4442_v33, %v4002_v32  ;;  %v4004_v37 = vld [vmem:[#allocation7 + $0x350] sm:$0xf0]  ;;  %v3938_v39 = vld [vmem:[#allocation7 + $0x2a0] sm:$0xf]  ;;  %v4427_v40 = vld [vmem:[#allocation7 + $0x2d4] sm:$0xf0] }
  0x56   : > { %1252 = vmatpush.bf16.msra.mxu0 %v3995_v30  ;;  %v4007_v38 = vor.u32 %v4435_v36, %v4004_v37  ;;  %1271 = vmatpush.bf16.msra.mxu1 %v3999_v34  ;;  %v4420_v41 = vld [vmem:[#allocation7 + $0x2a4] sm:$0xf]  ;;  %v3939_v42 = vor.u32 %v4427_v40, %v3938_v39  ;;  %v3940_v43 = vld [vmem:[#allocation7 + $0x2d8] sm:$0xf0]  ;;  %v3946_v44 = vld [vmem:[#allocation7 + $0x2a8] sm:$0xf] }
  0x57   : > { %1290 = vmatpush.bf16.msra.mxu2 %v4003_v35  ;;  %v4428_v45 = vld [vmem:[#allocation7 + $0x2dc] sm:$0xf0]  ;;  %v3943_v46 = vor.u32 %v4420_v41, %v3940_v43  ;;  %v4421_v48 = vld [vmem:[#allocation7 + $0x2ac] sm:$0xf]  ;;  %v3948_v49 = vld [vmem:[#allocation7 + $0x2e0] sm:$0xf0] }
  0x58   : > { %v4663_v5 = vpop.eup %4662  ;;  %1309 = vmatpush.bf16.msra.mxu3 %v4007_v38  ;;  %v3947_v47 = vor.u32 %v4428_v45, %v3946_v44  ;;  %v3951_v50 = vor.u32 %v4421_v48, %v3948_v49  ;;  %v3882_v51 = vld [vmem:[#allocation7 + $0x230] sm:$0xf]  ;;  %v4413_v52 = vld [vmem:[#allocation7 + $0x264] sm:$0xf0]  ;;  %v4406_v53 = vld [vmem:[#allocation7 + $0x234] sm:$0xf] }
  0x59   : > { %v484_v6 = vmul.f32 128.0, %v4663_v5  ;;  %vm488_vm0 = vweird.f32 %v4663_v5  ;;  %v3883_v54 = vor.u32 %v4413_v52, %v3882_v51  ;;  %v3884_v55 = vld [vmem:[#allocation7 + $0x268] sm:$0xf0]  ;;  %v3890_v56 = vld [vmem:[#allocation7 + $0x238] sm:$0xf]  ;;  %s5139_s15 = smov 64  }
  0x5a   : > { %481 = vadd.xlane.f32.xlu1 %v474_v2  ;;  %477 = vadd.xlane.f32.xlu0 %v472_v3  ;;  %v4414_v57 = vld [vmem:[#allocation7 + $0x26c] sm:$0xf0]  ;;  %v3887_v58 = vor.u32 %v4406_v53, %v3884_v55  ;;  %v4407_v60 = vld [vmem:[#allocation7 + $0x23c] sm:$0xf]  ;;  %v3892_v61 = vld [vmem:[#allocation7 + $0x270] sm:$0xf0] }
  0x5b   : > { %v485_v7 = vsub.f32 1.0, %v484_v6  ;;  %1253 = vmatpush.bf16.msra.mxu0 %v3939_v42  ;;  %1272 = vmatpush.bf16.msra.mxu1 %v3943_v46  ;;  %v3891_v59 = vor.u32 %v4414_v57, %v3890_v56  ;;  %v3895_v62 = vor.u32 %v4407_v60, %v3892_v61  ;;  %v3826_v63 = vld [vmem:[#allocation7 + $0x1c0] sm:$0xf]  ;;  %v3834_v4 = vld [vmem:[#allocation7 + $0x1c8] sm:$0xf]  ;;  %s6272_s23 = scalar_lea.vmem [#allocation16], %s3591_s3 }
  0x5c   : > { %1291 = vmatpush.bf16.msra.mxu2 %v3947_v47  ;;  %1310 = vmatpush.bf16.msra.mxu3 %v3951_v50  ;;  %v3714_v28 = vld [vmem:[#allocation7 + $0xe0] sm:$0xf]  ;;  %v4371_v29 = vld [vmem:[#allocation7 + $0x114] sm:$0xf0]  ;;  %v4364_v30 = vld [vmem:[#allocation7 + $0xe4] sm:$0xf] }
  0x5d   : > { %v486_v8 = vmul.f32 %v4663_v5, %v485_v7  ;;  %v3715_v31 = vor.u32 %v4371_v29, %v3714_v28  ;;  %v3716_v32 = vld [vmem:[#allocation7 + $0x118] sm:$0xf0]  ;;  %v3722_v33 = vld [vmem:[#allocation7 + $0xe8] sm:$0xf]  ;;  %v4372_v34 = vld [vmem:[#allocation7 + $0x11c] sm:$0xf0] }
  0x5e   : > { %v3719_v35 = vor.u32 %v4364_v30, %v3716_v32  ;;  %v3723_v36 = vor.u32 %v4372_v34, %v3722_v33  ;;  %v4365_v37 = vld [vmem:[#allocation7 + $0xec] sm:$0xf]  ;;  %v3724_v38 = vld [vmem:[#allocation7 + $0x120] sm:$0xf0]  ;;  %v3658_v40 = vld [vmem:[#allocation7 + $0x70] sm:$0xf] }
  0x5f   : > { %v487_v9 = vadd.f32 %v4663_v5, %v486_v8  ;;  %1254 = vmatpush.bf16.msra.mxu0 %v3883_v54  ;;  %1273 = vmatpush.bf16.msra.mxu1 %v3887_v58  ;;  %v4393_v8 = vld [vmem:[#allocation7 + $0x1cc] sm:$0xf]  ;;  %v3727_v39 = vor.u32 %v4365_v37, %v3724_v38  ;;  %v4357_v41 = vld [vmem:[#allocation7 + $0xa4] sm:$0xf0]  ;;  %v4350_v42 = vld [vmem:[#allocation7 + $0x74] sm:$0xf] }
  0x60   : > { %1292 = vmatpush.bf16.msra.mxu2 %v3891_v59  ;;  %1311 = vmatpush.bf16.msra.mxu3 %v3895_v62  ;;  %v3659_v43 = vor.u32 %v4357_v41, %v3658_v40  ;;  %v3660_v44 = vld [vmem:[#allocation7 + $0xa8] sm:$0xf0]  ;;  %v3666_v45 = vld [vmem:[#allocation7 + $0x78] sm:$0xf]  ;;  %v4358_v46 = vld [vmem:[#allocation7 + $0xac] sm:$0xf0] }
  0x61   : > { %v5362_v10 = vsel %vm488_vm0, %v4663_v5, %v487_v9  ;;  %v4400_v5 = vld [vmem:[#allocation7 + $0x1fc] sm:$0xf0]  ;;  %v3836_v9 = vld [vmem:[#allocation7 + $0x200] sm:$0xf0]  ;;  %v3663_v49 = vor.u32 %v4350_v42, %v3660_v44  ;;  %v3667_v50 = vor.u32 %v4358_v46, %v3666_v45  ;;  %v4351_v51 = vld [vmem:[#allocation7 + $0x7c] sm:$0xf] }
  0x62   : > { %v3835_v7 = vor.u32 %v4400_v5, %v3834_v4  ;;  %v3668_v52 = vld [vmem:[#allocation7 + $0xb0] sm:$0xf0]  ;;  %v3602_v56 = vld [vmem:[#allocation7] sm:$0xf]  ;;  %v4343_v57 = vld [vmem:[#allocation7 + $0x34] sm:$0xf0] }
  0x63   : > { %v3671_v55 = vor.u32 %v4351_v51, %v3668_v52  ;;  %v4336_v58 = vld [vmem:[#allocation7 + $0x4] sm:$0xf]  ;;  %v3603_v61 = vor.u32 %v4343_v57, %v3602_v56  ;;  %v3604_v62 = vld [vmem:[#allocation7 + $0x38] sm:$0xf0]  ;;  %v4429_v28 = vld [vmem:[#allocation7 + $0x2e4] sm:$0xf0] }
  0x64   : > { %1293 = vmatpush.bf16.msra.mxu2 %v3835_v7  ;;  %v3612_v4 = vld [vmem:[#allocation7 + $0x40] sm:$0xf0]  ;;  %v4443_v7 = vld [vmem:[#allocation7 + $0x354] sm:$0xf0]  ;;  %v4422_v29 = vld [vmem:[#allocation7 + $0x2b4] sm:$0xf] }
  0x65   : > { %v3956_v30 = vld [vmem:[#allocation7 + $0x2e8] sm:$0xf0]  ;;  %v4430_v37 = vld [vmem:[#allocation7 + $0x2ec] sm:$0xf0]  ;;  %v4423_v38 = vld [vmem:[#allocation7 + $0x2bc] sm:$0xf] }
  0x66   : > { %v3898_v40 = vld [vmem:[#allocation7 + $0x240] sm:$0xf]  ;;  %v4415_v41 = vld [vmem:[#allocation7 + $0x274] sm:$0xf0]  ;;  %v4408_v45 = vld [vmem:[#allocation7 + $0x244] sm:$0xf] }
  0x67   : > { %v3900_v46 = vld [vmem:[#allocation7 + $0x278] sm:$0xf0]  ;;  %v4416_v51 = vld [vmem:[#allocation7 + $0x27c] sm:$0xf0]  ;;  %v4409_v52 = vld [vmem:[#allocation7 + $0x24c] sm:$0xf] }
  0x68   : > { %v3842_v56 = vld [vmem:[#allocation7 + $0x1d0] sm:$0xf]  ;;  %vm1586_vm0 = vcmask 1043458   ;;  %s4513_s20 = sshll.u32 %s5218_s16, 5  ;;  %s3433_s28 = sshll.u32 %s6272_s23, 4  ;;  %s3434_s28 = int_to_ptr.vmem [resolvable:$true] %s3433_s28 }
  0x69   : > { %s3432_s27 = scalar_lea.hbm %s6321_s9, %s4513_s20  ;;  %s3420_s16 = scalar_lea.sflag [#allocation4], %s5336_s25 }
  0x6a   : > { %s3435_s24 = sshll.u32 %s3432_s27, 4  ;;  %s5060_s1 = scalar_lea.hbm %s6321_s9, 64  ;;  %s3436_s24 = int_to_ptr.hbm [resolvable:$true] %s3435_s24 }
  0x6b   : > { %s5054_s13 = sshra.s32 %s3436_s24, 4  ;;  %s5055_s13 = int_to_ptr.hbm [resolvable:$true] %s5054_s13 }
  0x6c   : > { %s5056_s3 = scalar_lea.hbm %s5055_s13, 32  ;;  %p5061_p12 = scmp.lt.s32.totalorder %s5055_s13, %s6321_s9 }
  0x6d   : > { %p5057_p1 = scmp.ne.s32.totalorder %s5055_s13, %s5056_s3  ;;  %p5062_p8 = scmp.lt.s32.totalorder %s5060_s1, %s5056_s3 }
  0x6f   : > { %p5058_p3 = pnand %p5057_p1, %p5302_p13  ;;  %p5063_p7 = por %p5062_p8, %p5061_p12 }
  0x71   : > { %p5059_p4 = pneg %p5058_p3 }
  0x73   : > { %p5064_p9 = pnand %p5063_p7, %p5059_p4 }
  0xc5   : > { %v480_v11 = vpop.xlane.xlu1 %479  ;;  %v476_v12 = vpop.xlane.xlu0 %475 }
  0xc6   : > { %v492_v13 = vmul.f32 %v5362_v10, %v480_v11  ;;  %v490_v14 = vmul.f32 %v5362_v10, %v476_v12  ;;  %v3839_v11 = vor.u32 %v4393_v8, %v3836_v9  ;;  %v3770_v12 = vld [vmem:[#allocation7 + $0x150] sm:$0xf]  ;;  %v4436_v8 = vld [vmem:[#allocation7 + $0x324] sm:$0xf] }
  0xc8   : > { %v5366_v15 = vsub.f32 %v473_v0, %v492_v13  ;;  %v5368_v16 = vsub.f32 %v471_v1, %v490_v14  ;;  %v4399_v0 = vld [vmem:[#allocation7 + $0x1f4] sm:$0xf0]  ;;  %v4392_v1 = vld [vmem:[#allocation7 + $0x1c4] sm:$0xf]  ;;  %v4385_v13 = vld [vmem:[#allocation7 + $0x184] sm:$0xf0]  ;;  %1312 = vmatpush.bf16.msra.mxu3 %v3839_v11 }
  0xc9   : > { %v4378_v14 = vld [vmem:[#allocation7 + $0x154] sm:$0xf] }
  0xca   : > { %v500_v17 = vmul.f32 %v5366_v15, %v5366_v15  ;;  %v498_v18 = vmul.f32 %v5368_v16, %v5368_v16 }
  0xcc   : > { %506 = vadd.xlane.f32.xlu0 %v500_v17  ;;  %502 = vadd.xlane.f32.xlu2 %v498_v18  ;;  %v3771_v17 = vor.u32 %v4385_v13, %v3770_v12  ;;  %v3772_v18 = vld [vmem:[#allocation7 + $0x188] sm:$0xf0]  ;;  %v4012_v13 = vld [vmem:[#allocation7 + $0x358] sm:$0xf0] }
  0xcd   : > { %v482_v19 = vpop.xlane.xlu1 %481  ;;  %v478_v20 = vpop.xlane.xlu0 %477 }
  0xce   : > { %v493_v21 = vmul.f32 %v5362_v10, %v482_v19  ;;  %v491_v22 = vmul.f32 %v5362_v10, %v478_v20  ;;  %v3778_v19 = vld [vmem:[#allocation7 + $0x158] sm:$0xf]  ;;  %v4386_v20 = vld [vmem:[#allocation7 + $0x18c] sm:$0xf0] }
  0xd0   : > { %v5376_v23 = vsub.f32 %v474_v2, %v493_v21  ;;  %v5378_v24 = vsub.f32 %v472_v3, %v491_v22  ;;  %v3827_v2 = vor.u32 %v4399_v0, %v3826_v63  ;;  %v3828_v3 = vld [vmem:[#allocation7 + $0x1f8] sm:$0xf0]  ;;  %v3775_v21 = vor.u32 %v4378_v14, %v3772_v18  ;;  %v3610_v0 = vld [vmem:[#allocation7 + $0x8] sm:$0xf] }
  0xd1   : > { %v3831_v6 = vor.u32 %v4392_v1, %v3828_v3  ;;  %v3779_v22 = vor.u32 %v4386_v20, %v3778_v19  ;;  %v3607_v63 = vor.u32 %v4336_v58, %v3604_v62  ;;  %v4344_v1 = vld [vmem:[#allocation7 + $0x3c] sm:$0xf0]  ;;  %v4018_v14 = vld [vmem:[#allocation7 + $0x328] sm:$0xf]  ;;  %v4015_v20 = vor.u32 %v4436_v8, %v4012_v13 }
  0xd2   : > { %v501_v25 = vmul.f32 %v5376_v23, %v5376_v23  ;;  %v499_v26 = vmul.f32 %v5378_v24, %v5378_v24  ;;  %1255 = vmatpush.bf16.msra.mxu0 %v3827_v2  ;;  %v4337_v2 = vld [vmem:[#allocation7 + $0xc] sm:$0xf]  ;;  %v3611_v3 = vor.u32 %v4344_v1, %v3610_v0  ;;  %v4401_v58 = vld [vmem:[#allocation7 + $0x204] sm:$0xf0] }
  0xd3   : > { %1274 = vmatpush.bf16.msra.mxu1 %v3831_v6  ;;  %1294 = vmatpush.bf16.msra.mxu2 %v3779_v22  ;;  %v3615_v5 = vor.u32 %v4337_v2, %v3612_v4  ;;  %v4010_v6 = vld [vmem:[#allocation7 + $0x320] sm:$0xf]  ;;  %v4437_v22 = vld [vmem:[#allocation7 + $0x32c] sm:$0xf]  ;;  %v3843_v0 = vor.u32 %v4401_v58, %v3842_v56  ;;  %v3850_v2 = vld [vmem:[#allocation7 + $0x1d8] sm:$0xf] }
  0xd4   : > { %508 = vadd.xlane.f32.xlu1 %v501_v25  ;;  %504 = vadd.xlane.f32.xlu2 %v499_v26  ;;  %v4379_v25 = vld [vmem:[#allocation7 + $0x15c] sm:$0xf]  ;;  %v3780_v26 = vld [vmem:[#allocation7 + $0x190] sm:$0xf0]  ;;  %v4011_v12 = vor.u32 %v4443_v7, %v4010_v6  ;;  %v3844_v1 = vld [vmem:[#allocation7 + $0x208] sm:$0xf0] }
  0xd5   : > { %v3783_v27 = vor.u32 %v4379_v25, %v3780_v26  ;;  %v4020_v25 = vld [vmem:[#allocation7 + $0x360] sm:$0xf0]  ;;  %v3954_v26 = vld [vmem:[#allocation7 + $0x2b0] sm:$0xf]  ;;  %v4395_v6 = vld [vmem:[#allocation7 + $0x1dc] sm:$0xf] }
  0xd6   : > { %1256 = vmatpush.bf16.msra.mxu0 %v3771_v17  ;;  %v4444_v17 = vld [vmem:[#allocation7 + $0x35c] sm:$0xf0]  ;;  %v3955_v34 = vor.u32 %v4429_v28, %v3954_v26  ;;  %v3788_v28 = vld [vmem:[#allocation7 + $0x198] sm:$0xf0]  ;;  %v4359_v58 = vld [vmem:[#allocation7 + $0xb4] sm:$0xf0] }
  0xd7   : > { %1275 = vmatpush.bf16.msra.mxu1 %v3775_v21  ;;  %1313 = vmatpush.bf16.msra.mxu3 %v3783_v27  ;;  %v4019_v21 = vor.u32 %v4444_v17, %v4018_v14  ;;  %v4023_v27 = vor.u32 %v4437_v22, %v4020_v25  ;;  %v4380_v22 = vld [vmem:[#allocation7 + $0x164] sm:$0xf]  ;;  %v3674_v56 = vld [vmem:[#allocation7 + $0x80] sm:$0xf]  ;;  %v4346_v25 = vld [vmem:[#allocation7 + $0x4c] sm:$0xf0] }
  0xd8   : > { %1295 = vmatpush.bf16.msra.mxu2 %v3723_v36 }
  0xda   : > { %1257 = vmatpush.bf16.msra.mxu0 %v3715_v31 }
  0xdb   : > { %1276 = vmatpush.bf16.msra.mxu1 %v3719_v35  ;;  %1314 = vmatpush.bf16.msra.mxu3 %v3727_v39  ;;  %v3962_v35 = vld [vmem:[#allocation7 + $0x2b8] sm:$0xf]  ;;  %v3964_v39 = vld [vmem:[#allocation7 + $0x2f0] sm:$0xf0] }
  0xdc   : > { %1296 = vmatpush.bf16.msra.mxu2 %v3667_v50  ;;  %v3963_v44 = vor.u32 %v4430_v37, %v3962_v35  ;;  %v3906_v50 = vld [vmem:[#allocation7 + $0x248] sm:$0xf]  ;;  %v4381_v35 = vld [vmem:[#allocation7 + $0x16c] sm:$0xf] }
  0xde   : > { %1258 = vmatpush.bf16.msra.mxu0 %v3659_v43 }
  0xdf   : > { %1277 = vmatpush.bf16.msra.mxu1 %v3663_v49  ;;  %1315 = vmatpush.bf16.msra.mxu3 %v3671_v55  ;;  %v3903_v49 = vor.u32 %v4408_v45, %v3900_v46  ;;  %v3908_v55 = vld [vmem:[#allocation7 + $0x280] sm:$0xf0]  ;;  %v4373_v45 = vld [vmem:[#allocation7 + $0x124] sm:$0xf0]  ;;  %v4366_v46 = vld [vmem:[#allocation7 + $0xf4] sm:$0xf] }
  0xe0   : > { %1297 = vmatpush.bf16.msra.mxu2 %v3611_v3  ;;  %v3911_v57 = vor.u32 %v4409_v52, %v3908_v55  ;;  %v3740_v55 = vld [vmem:[#allocation7 + $0x130] sm:$0xf0] }
  0xe2   : > { %1259 = vmatpush.bf16.msra.mxu0 %v3603_v61  ;;  %v4394_v61 = vld [vmem:[#allocation7 + $0x1d4] sm:$0xf] }
  0xe3   : > { %1278 = vmatpush.bf16.msra.mxu1 %v3607_v63  ;;  %1316 = vmatpush.bf16.msra.mxu3 %v3615_v5  ;;  %v3847_v4 = vor.u32 %v4394_v61, %v3844_v1  ;;  %v4402_v5 = vld [vmem:[#allocation7 + $0x20c] sm:$0xf0]  ;;  %v4352_v61 = vld [vmem:[#allocation7 + $0x84] sm:$0xf] }
  0xe4   : > { %1366 = vmatpush.bf16.msrb.mxu2 %v4019_v21  ;;  %v4387_v21 = vld [vmem:[#allocation7 + $0x194] sm:$0xf0] }
  0xe6   : > { %1328 = vmatpush.bf16.msrb.mxu0 %v4011_v12 }
  0xe7   : > { %1347 = vmatpush.bf16.msrb.mxu1 %v4015_v20  ;;  %1385 = vmatpush.bf16.msrb.mxu3 %v4023_v27  ;;  %v3786_v20 = vld [vmem:[#allocation7 + $0x160] sm:$0xf] }
  0xe8   : > { %1367 = vmatpush.bf16.msrb.mxu2 %v3963_v44  ;;  %v3787_v27 = vor.u32 %v4387_v21, %v3786_v20 }
  0xea   : > { %1329 = vmatpush.bf16.msrb.mxu0 %v3955_v34  ;;  %v3791_v34 = vor.u32 %v4380_v22, %v3788_v28 }
 0x13f   : > { %v503_v47 = vpop.xlane.xlu2 %502  ;;  %v507_v48 = vpop.xlane.xlu0 %506 }
 0x140   : > { %v510_v53 = vmul.f32 %v503_v47, %v5362_v10  ;;  %v512_v54 = vmul.f32 %v507_v48, %v5362_v10  ;;  %v3967_v47 = vor.u32 %v4423_v38, %v3964_v39  ;;  %v3899_v48 = vor.u32 %v4415_v41, %v3898_v40  ;;  %v3796_v39 = vld [vmem:[#allocation7 + $0x1a0] sm:$0xf0]  ;;  %v3730_v40 = vld [vmem:[#allocation7 + $0xf0] sm:$0xf] }
 0x141   : > { %v3799_v44 = vor.u32 %v4381_v35, %v3796_v39  ;;  %v4438_v39 = vld [vmem:[#allocation7 + $0x334] sm:$0xf] }
 0x142   : > { %v5386_v59 = vadd.f32 1e-05, %v510_v53  ;;  %v5388_v60 = vadd.f32 1e-05, %v512_v54  ;;  %v3907_v54 = vor.u32 %v4416_v51, %v3906_v50  ;;  %1386 = vmatpush.bf16.msrb.mxu3 %v3967_v47  ;;  %1330 = vmatpush.bf16.msrb.mxu0 %v3899_v48  ;;  %v3732_v48 = vld [vmem:[#allocation7 + $0x128] sm:$0xf0] }
 0x143   : > { %v4374_v50 = vld [vmem:[#allocation7 + $0x12c] sm:$0xf0]  ;;  %v3735_v52 = vor.u32 %v4366_v46, %v3732_v48  ;;  %v4439_v46 = vld [vmem:[#allocation7 + $0x33c] sm:$0xf] }
 0x144   : > { %4664 = vrsqrt.f32 %v5386_v59  ;;  %1368 = vmatpush.bf16.msrb.mxu2 %v3907_v54  ;;  %vm524_vm2 = vweird.f32 %v5386_v59  ;;  %v4367_v54 = vld [vmem:[#allocation7 + $0xfc] sm:$0xf]  ;;  %vm544_vm9 = vweird.f32 %v5388_v60 }
 0x145   : > { %4666 = vrsqrt.f32 %v5388_v60 }
 0x146   : > { %1387 = vmatpush.bf16.msrb.mxu3 %v3911_v57  ;;  %1331 = vmatpush.bf16.msrb.mxu0 %v3843_v0  ;;  %v5450_v57 = vld [vmem:[%s6314_s2] ss:$0 sm:$0xff]  ;;  %v3675_v0 = vor.u32 %v4359_v58, %v3674_v56  ;;  %v4425_v56 = vld [vmem:[#allocation7 + $0x2cc] sm:$0xf] }
 0x147   : > { %v509_v9 = vpop.xlane.xlu1 %508  ;;  %v505_v11 = vpop.xlane.xlu2 %504 }
 0x148   : > { %v513_v18 = vmul.f32 %v509_v9, %v5362_v10  ;;  %v511_v19 = vmul.f32 %v505_v11, %v5362_v10  ;;  %v3959_v10 = vor.u32 %v4422_v29, %v3956_v30  ;;  %v3851_v9 = vor.u32 %v4402_v5, %v3850_v2  ;;  %v3852_v11 = vld [vmem:[#allocation7 + $0x210] sm:$0xf0]  ;;  %v3794_v29 = vld [vmem:[#allocation7 + $0x168] sm:$0xf]  ;;  %v4353_v5 = vld [vmem:[#allocation7 + $0x8c] sm:$0xf] }
 0x149   : > { %v3855_v14 = vor.u32 %v4395_v6, %v3852_v11  ;;  %v3682_v2 = vld [vmem:[#allocation7 + $0x88] sm:$0xf]  ;;  %v3684_v11 = vld [vmem:[#allocation7 + $0xc0] sm:$0xf0] }
 0x14a   : > { %v5394_v31 = vpop.eup %4664  ;;  %v5396_v32 = vadd.f32 1e-05, %v513_v18  ;;  %v5398_v33 = vadd.f32 1e-05, %v511_v19  ;;  %1348 = vmatpush.bf16.msrb.mxu1 %v3959_v10  ;;  %1369 = vmatpush.bf16.msrb.mxu2 %v3851_v9  ;;  %v4388_v10 = vld [vmem:[#allocation7 + $0x19c] sm:$0xf0] }
 0x14b   : > { %v519_v36 = vmul.f32 %v5394_v31, %v5386_v59  ;;  %v5403_v42 = vpop.eup %4666  ;;  %vm525_vm1 = vweird.f32 %v5394_v31  ;;  %1388 = vmatpush.bf16.msrb.mxu3 %v3855_v14  ;;  %1332 = vmatpush.bf16.msrb.mxu0 %v3787_v27  ;;  %v3795_v38 = vor.u32 %v4388_v10, %v3794_v29  ;;  %v3628_v27 = vld [vmem:[#allocation7 + $0x50] sm:$0xf0] }
 0x14c   : > { %4668 = vrsqrt.f32 %v5396_v32  ;;  %v539_v63 = vmul.f32 %v5403_v42, %v5388_v60  ;;  %vm5423_vm3 = vmor %vm524_vm2, %vm525_vm1  ;;  %vm534_vm5 = vweird.f32 %v5398_v33  ;;  %vm554_vm7 = vweird.f32 %v5396_v32 }
 0x14d   : > { %v520_v43 = vmul.f32 %v5394_v31, %v519_v36  ;;  %4670 = vrsqrt.f32 %v5398_v33  ;;  %v5433_v36 = vld [vmem:[#allocation5] ss:$0 sm:$0xff]  ;;  %vm545_vm10 = vweird.f32 %v5403_v42  ;;  %vm1588_vm1 = vcmask 1045504  }
 0x14e   : > { %1349 = vmatpush.bf16.msrb.mxu1 %v3903_v49  ;;  %v540_v17 = vmul.f32 %v5403_v42, %v539_v63  ;;  %1370 = vmatpush.bf16.msrb.mxu2 %v3795_v38  ;;  %v3738_v49 = vld [vmem:[#allocation7 + $0xf8] sm:$0xf]  ;;  %vm5475_vm12 = vmor %vm544_vm9, %vm545_vm10  ;;  %v4445_v38 = vld [vmem:[#allocation7 + $0x364] sm:$0xf0]  ;;  %vm1590_vm2 = vcmask 1045506  }
 0x14f   : > { %v521_v53 = vmul.f32 0.5, %v520_v43  ;;  %1389 = vmatpush.bf16.msrb.mxu3 %v3799_v44 }
 0x150   : > { %v5435_v37 = vmul.f32 0.5, %v540_v17  ;;  %v4338_v17 = vld [vmem:[#allocation7 + $0x14] sm:$0xf] }
 0x151   : > { %v522_v62 = vsub.f32 1.5, %v521_v53  ;;  %v3739_v53 = vor.u32 %v4374_v50, %v3738_v49  ;;  %v4431_v50 = vld [vmem:[#allocation7 + $0x2f4] sm:$0xf0] }
 0x152   : > { %v5409_v3 = vpop.eup %4668  ;;  %1350 = vmatpush.bf16.msrb.mxu1 %v3847_v4  ;;  %v4360_v4 = vld [vmem:[#allocation7 + $0xbc] sm:$0xf0]  ;;  %v542_v14 = vsub.f32 1.5, %v5435_v37  ;;  %v4026_v37 = vld [vmem:[#allocation7 + $0x330] sm:$0xf] }
 0x153   : > { %v5411_v7 = vpop.eup %4670  ;;  %v549_v8 = vmul.f32 %v5409_v3, %v5396_v32  ;;  %v523_v12 = vmul.f32 %v5394_v31, %v522_v62  ;;  %v3676_v62 = vld [vmem:[#allocation7 + $0xb8] sm:$0xf0]  ;;  %1371 = vmatpush.bf16.msrb.mxu2 %v3739_v53  ;;  %v3683_v9 = vor.u32 %v4360_v4, %v3682_v2  ;;  %vm555_vm8 = vweird.f32 %v5409_v3  ;;  %v3922_v2 = vld [vmem:[#allocation7 + $0x258] sm:$0xf] }
 0x154   : > { %v529_v13 = vmul.f32 %v5411_v7, %v5398_v33  ;;  %vm535_vm4 = vweird.f32 %v5411_v7  ;;  %v3731_v33 = vor.u32 %v4373_v45, %v3730_v40  ;;  %v3679_v1 = vor.u32 %v4352_v61, %v3676_v62  ;;  %vm5469_vm11 = vmor %vm554_vm7, %vm555_vm8  ;;  %v3980_v61 = vld [vmem:[#allocation7 + $0x300] sm:$0xf0]  ;;  %v4417_v62 = vld [vmem:[#allocation7 + $0x284] sm:$0xf0] }
 0x155   : > { %v550_v18 = vmul.f32 %v5409_v3, %v549_v8  ;;  %v527_v59 = vsel %vm5423_vm3, %v5394_v31, %v523_v12  ;;  %vm5441_vm6 = vmor %vm534_vm5, %vm535_vm4  ;;  %v3618_v12 = vld [vmem:[#allocation7 + $0x10] sm:$0xf]  ;;  %v4027_v40 = vor.u32 %v4445_v38, %v4026_v37  ;;  %v4383_v38 = vld [vmem:[#allocation7 + $0x17c] sm:$0xf] }
 0x156   : > { %v530_v19 = vmul.f32 %v5411_v7, %v529_v13  ;;  %1351 = vmatpush.bf16.msrb.mxu1 %v3791_v34  ;;  %v558_v47 = vmul.f32 %v527_v59, %v5368_v16  ;;  %1333 = vmatpush.bf16.msrb.mxu0 %v3731_v33  ;;  %v3743_v16 = vor.u32 %v4367_v54, %v3740_v55  ;;  %v4345_v13 = vld [vmem:[#allocation7 + $0x44] sm:$0xf0]  ;;  %v4446_v31 = vld [vmem:[#allocation7 + $0x36c] sm:$0xf0]  ;;  %v3970_v33 = vld [vmem:[#allocation7 + $0x2c0] sm:$0xf] }
 0x157   : > { %v5427_v26 = vmul.f32 0.5, %v550_v18  ;;  %v3620_v18 = vld [vmem:[#allocation7 + $0x48] sm:$0xf0]  ;;  %v3619_v20 = vor.u32 %v4345_v13, %v3618_v12  ;;  %1372 = vmatpush.bf16.msrb.mxu2 %v3683_v9  ;;  %v543_v59 = vmul.f32 %v5403_v42, %v542_v14  ;;  %v3978_v54 = vld [vmem:[#allocation7 + $0x2c8] sm:$0xf] }
 0x158   : > { %v531_v30 = vmul.f32 0.5, %v530_v19  ;;  %v566_v6 = vmul.f32 %v5433_v36, %v558_v47  ;;  %1390 = vmatpush.bf16.msrb.mxu3 %v3743_v16  ;;  %v3623_v22 = vor.u32 %v4338_v17, %v3620_v18  ;;  %v4036_v47 = vld [vmem:[#allocation7 + $0x370] sm:$0xf0]  ;;  %v4432_v55 = vld [vmem:[#allocation7 + $0x2fc] sm:$0xf0] }
 0x159   : > { %v552_v41 = vsub.f32 1.5, %v5427_v26  ;;  %v4339_v26 = vld [vmem:[#allocation7 + $0x1c] sm:$0xf]  ;;  %v547_v44 = vsel %vm5475_vm12, %v5403_v42, %v543_v59  ;;  %v4039_v49 = vor.u32 %v4439_v46, %v4036_v47  ;;  %v3971_v42 = vor.u32 %v4431_v50, %v3970_v33  ;;  %v4396_v17 = vld [vmem:[#allocation7 + $0x1e4] sm:$0xf] }
 0x15a   : > { %v532_v43 = vsub.f32 1.5, %v531_v30  ;;  %1352 = vmatpush.bf16.msrb.mxu1 %v3735_v52  ;;  %1334 = vmatpush.bf16.msrb.mxu0 %v3675_v0  ;;  %v574_v28 = vadd.f32 %v5450_v57, %v566_v6  ;;  %v3631_v35 = vor.u32 %v4339_v26, %v3628_v27  ;;  %v3972_v52 = vld [vmem:[#allocation7 + $0x2f8] sm:$0xf0]  ;;  %v560_v16 = vmul.f32 %v547_v44, %v5366_v15  ;;  %v4410_v0 = vld [vmem:[#allocation7 + $0x254] sm:$0xf] }
 0x15b   : > { %v553_v21 = vmul.f32 %v5409_v3, %v552_v41  ;;  %v4028_v41 = vld [vmem:[#allocation7 + $0x368] sm:$0xf0]  ;;  %v3979_v58 = vor.u32 %v4432_v55, %v3978_v54  ;;  %v4411_v6 = vld [vmem:[#allocation7 + $0x25c] sm:$0xf]  ;;  %v3858_v15 = vld [vmem:[#allocation7 + $0x1e0] sm:$0xf] }
 0x15c   : > { %v533_v51 = vmul.f32 %v5411_v7, %v532_v43  ;;  %v4034_v43 = vld [vmem:[#allocation7 + $0x338] sm:$0xf]  ;;  %v568_v12 = vmul.f32 %v5433_v36, %v560_v16  ;;  %v3860_v18 = vld [vmem:[#allocation7 + $0x218] sm:$0xf0]  ;;  %v3868_v26 = vld [vmem:[#allocation7 + $0x220] sm:$0xf0] }
 0x15d   : > { %v557_v32 = vsel %vm5469_vm11, %v5409_v3, %v553_v21  ;;  %v4031_v3 = vor.u32 %v4438_v39, %v4028_v41  ;;  %v4035_v45 = vor.u32 %v4446_v31, %v4034_v43  ;;  %v3863_v21 = vor.u32 %v4396_v17, %v3860_v18  ;;  %v4389_v59 = vld [vmem:[#allocation7 + $0x1a4] sm:$0xf0]  ;;  %v4382_v30 = vld [vmem:[#allocation7 + $0x174] sm:$0xf]  ;;  %v4390_v37 = vld [vmem:[#allocation7 + $0x1ac] sm:$0xf0] }
 0x15e   : > { %v537_v63 = vsel %vm5441_vm6, %v5411_v7, %v533_v51  ;;  %v3687_v7 = vor.u32 %v4353_v5, %v3684_v11  ;;  %1353 = vmatpush.bf16.msrb.mxu1 %v3679_v1  ;;  %1335 = vmatpush.bf16.msrb.mxu0 %v3619_v20  ;;  %v561_v48 = vmul.f32 %v557_v32, %v5376_v23  ;;  %v4424_v51 = vld [vmem:[#allocation7 + $0x2c4] sm:$0xf]  ;;  %v3914_v23 = vld [vmem:[#allocation7 + $0x250] sm:$0xf]  ;;  %v3916_v1 = vld [vmem:[#allocation7 + $0x288] sm:$0xf0] }
 0x15f   : > { %v559_v8 = vmul.f32 %v537_v63, %v5378_v24  ;;  %v3626_v24 = vld [vmem:[#allocation7 + $0x18] sm:$0xf]  ;;  %v3975_v53 = vor.u32 %v4424_v51, %v3972_v52  ;;  %v3983_v63 = vor.u32 %v4425_v56, %v3980_v61  ;;  %v4418_v5 = vld [vmem:[#allocation7 + $0x28c] sm:$0xf0]  ;;  %v3915_v9 = vor.u32 %v4417_v62, %v3914_v23  ;;  %v3866_v20 = vld [vmem:[#allocation7 + $0x1e8] sm:$0xf] }
 0x160   : > { %1391 = vmatpush.bf16.msrb.mxu3 %v3687_v7  ;;  %v3627_v10 = vor.u32 %v4346_v25, %v3626_v24  ;;  %v569_v4 = vmul.f32 %v5433_v36, %v561_v48  ;;  %v3919_v11 = vor.u32 %v4410_v0, %v3916_v1  ;;  %v3923_v13 = vor.u32 %v4418_v5, %v3922_v2  ;;  %v4403_v7 = vld [vmem:[#allocation7 + $0x214] sm:$0xf0]  ;;  %v4397_v25 = vld [vmem:[#allocation7 + $0x1ec] sm:$0xf]  ;;  %v3812_v39 = vld [vmem:[#allocation7 + $0x1b0] sm:$0xf0] }
 0x161   : > { %v567_v19 = vmul.f32 %v5433_v36, %v559_v8  ;;  %v3924_v8 = vld [vmem:[#allocation7 + $0x290] sm:$0xf0]  ;;  %v3859_v24 = vor.u32 %v4403_v7, %v3858_v15  ;;  %v576_v27 = vadd.f32 %v5450_v57, %v568_v12  ;;  %v3871_v29 = vor.u32 %v4397_v25, %v3868_v26  ;;  %v3810_v32 = vld [vmem:[#allocation7 + $0x178] sm:$0xf]  ;;  %v4368_v44 = vld [vmem:[#allocation7 + $0x104] sm:$0xf] }
 0x162   : > { %1354 = vmatpush.bf16.msrb.mxu1 %v3623_v22  ;;  %1373 = vmatpush.bf16.msrb.mxu2 %v3627_v10  ;;  %v3927_v14 = vor.u32 %v4411_v6, %v3924_v8  ;;  %v4404_v22 = vld [vmem:[#allocation7 + $0x21c] sm:$0xf0]  ;;  %v3811_v41 = vor.u32 %v4390_v37, %v3810_v32  ;;  %v3815_v43 = vor.u32 %v4383_v38, %v3812_v39  ;;  %v4375_v31 = vld [vmem:[#allocation7 + $0x134] sm:$0xf0]  ;;  %v3754_v47 = vld [vmem:[#allocation7 + $0x108] sm:$0xf] }
 0x163   : > { %v575_v60 = vadd.f32 %v5450_v57, %v567_v19  ;;  %v577_v19 = vadd.f32 %v5450_v57, %v569_v4  ;;  %v4376_v33 = vld [vmem:[#allocation7 + $0x13c] sm:$0xf0]  ;;  %v4369_v48 = vld [vmem:[#allocation7 + $0x10c] sm:$0xf]  ;;  %v3690_v50 = vld [vmem:[#allocation7 + $0x90] sm:$0xf] }
 0x164   : > { %1392 = vmatpush.bf16.msrb.mxu3 %v3631_v35  ;;  %v3804_v35 = vld [vmem:[#allocation7 + $0x1a8] sm:$0xf0]  ;;  %v4361_v51 = vld [vmem:[#allocation7 + $0xc4] sm:$0xf0]  ;;  %v4354_v52 = vld [vmem:[#allocation7 + $0x94] sm:$0xf] }
 0x165   : > { %v5479_v34 = vpack.c.bf16 %v575_v60, %v574_v28  ;;  %v5497_v36 = vpack.c.bf16 %v577_v19, %v576_v27  ;;  %v3867_v28 = vor.u32 %v4404_v22, %v3866_v20  ;;  %v3802_v60 = vld [vmem:[#allocation7 + $0x170] sm:$0xf]  ;;  %v3807_v57 = vor.u32 %v4382_v30, %v3804_v35  ;;  %v3698_v55 = vld [vmem:[#allocation7 + $0x98] sm:$0xf]  ;;  %v4355_v61 = vld [vmem:[#allocation7 + $0x9c] sm:$0xf] }
 0x166   : > { %v3803_v10 = vor.u32 %v4389_v59, %v3802_v60  ;;  %v4362_v56 = vld [vmem:[#allocation7 + $0xcc] sm:$0xf0]  ;;  %v3691_v16 = vor.u32 %v4361_v51, %v3690_v50  ;;  %v3700_v23 = vld [vmem:[#allocation7 + $0xd0] sm:$0xf0]  ;;  %v3634_v62 = vld [vmem:[#allocation7 + $0x20] sm:$0xf] }
 0x167   : > { %1260 = vmatmul.bf16.vlgmr.msra.gmra.mxu0 %v5479_v34  ;;  %1279 = vmatmul.bf16.vlgmr.msra.gmra.mxu1 %v5479_v34  ;;  %v4340_v0 = vld [vmem:[#allocation7 + $0x24] sm:$0xf]  ;;  %v3636_v1 = vld [vmem:[#allocation7 + $0x58] sm:$0xf0]  ;;  %v3699_v2 = vor.u32 %v4362_v56, %v3698_v55  ;;  %v3703_v4 = vor.u32 %v4355_v61, %v3700_v23  ;;  %v3642_v5 = vld [vmem:[#allocation7 + $0x28] sm:$0xf] }
 0x168   : > { %1298 = vmatmul.bf16.vlgmr.msra.gmra.mxu2 %v5479_v34  ;;  %1317 = vmatmul.bf16.vlgmr.msra.gmra.mxu3 %v5479_v34  ;;  %v3639_v8 = vor.u32 %v4340_v0, %v3636_v1  ;;  %v3644_v15 = vld [vmem:[#allocation7 + $0x60] sm:$0xf0]  ;;  %v4447_v7 = vld [vmem:[#allocation7 + $0x374] sm:$0xf0]  ;;  %v4044_v19 = vld [vmem:[#allocation7 + $0x378] sm:$0xf0] }
 0x169   : > { %1404 = vmatpush.bf16.msra.mxu0 %v4027_v40  ;;  %1423 = vmatpush.bf16.msra.mxu1 %v4031_v3  ;;  %v3746_v40 = vld [vmem:[#allocation7 + $0x100] sm:$0xf]  ;;  %v3748_v3 = vld [vmem:[#allocation7 + $0x138] sm:$0xf0]  ;;  %v4440_v17 = vld [vmem:[#allocation7 + $0x344] sm:$0xf] }
 0x16a   : > { %1442 = vmatpush.bf16.msra.mxu2 %v4035_v45  ;;  %1461 = vmatpush.bf16.msra.mxu3 %v4039_v49  ;;  %v3747_v45 = vor.u32 %v4375_v31, %v3746_v40  ;;  %v3751_v46 = vor.u32 %v4368_v44, %v3748_v3  ;;  %v3756_v49 = vld [vmem:[#allocation7 + $0x140] sm:$0xf0]  ;;  %v4047_v20 = vor.u32 %v4440_v17, %v4044_v19  ;;  %v4426_v22 = vld [vmem:[#allocation7 + $0x2d4] sm:$0xf]  ;;  %v3988_v25 = vld [vmem:[#allocation7 + $0x308] sm:$0xf0] }
 0x16b   : > { %v3759_v54 = vor.u32 %v4369_v48, %v3756_v49  ;;  %v3991_v27 = vor.u32 %v4426_v22, %v3988_v25  ;;  %v4412_v60 = vld [vmem:[#allocation7 + $0x264] sm:$0xf]  ;;  %v3932_v59 = vld [vmem:[#allocation7 + $0x298] sm:$0xf0]  ;;  %v3874_v35 = vld [vmem:[#allocation7 + $0x1f0] sm:$0xf] }
 0x16c   : > { %v4405_v32 = vld [vmem:[#allocation7 + $0x224] sm:$0xf0]  ;;  %v3876_v38 = vld [vmem:[#allocation7 + $0x228] sm:$0xf0]  ;;  %v3818_v40 = vld [vmem:[#allocation7 + $0x180] sm:$0xf] }
 0x16d   : > { %1405 = vmatpush.bf16.msra.mxu0 %v3971_v42  ;;  %1424 = vmatpush.bf16.msra.mxu1 %v3975_v53  ;;  %v3692_v42 = vld [vmem:[#allocation7 + $0xc8] sm:$0xf0]  ;;  %v3755_v53 = vor.u32 %v4376_v33, %v3754_v47  ;;  %v3875_v37 = vor.u32 %v4405_v32, %v3874_v35  ;;  %v3820_v44 = vld [vmem:[#allocation7 + $0x1b8] sm:$0xf0]  ;;  %v3762_v3 = vld [vmem:[#allocation7 + $0x110] sm:$0xf] }
 0x16e   : > { %1443 = vmatpush.bf16.msra.mxu2 %v3979_v58  ;;  %1462 = vmatpush.bf16.msra.mxu3 %v3983_v63  ;;  %v3695_v58 = vor.u32 %v4354_v52, %v3692_v42  ;;  %v4347_v63 = vld [vmem:[#allocation7 + $0x54] sm:$0xf0]  ;;  %v4370_v33 = vld [vmem:[#allocation7 + $0x114] sm:$0xf]  ;;  %v3764_v48 = vld [vmem:[#allocation7 + $0x148] sm:$0xf0] }
 0x16f   : > { %v3635_v6 = vor.u32 %v4347_v63, %v3634_v62  ;;  %v3706_v49 = vld [vmem:[#allocation7 + $0xa0] sm:$0xf]  ;;  %v4363_v50 = vld [vmem:[#allocation7 + $0xd4] sm:$0xf0]  ;;  %v3767_v51 = vor.u32 %v4370_v33, %v3764_v48  ;;  %v4356_v42 = vld [vmem:[#allocation7 + $0xa4] sm:$0xf] }
 0x170   : > { %v3707_v52 = vor.u32 %v4363_v50, %v3706_v49  ;;  %v4349_v55 = vld [vmem:[#allocation7 + $0x64] sm:$0xf0]  ;;  %v3652_v61 = vld [vmem:[#allocation7 + $0x68] sm:$0xf0]  ;;  %v5138_v0 = vmov 1966171168  }
 0x171   : > { %1406 = vmatpush.bf16.msra.mxu0 %v3915_v9  ;;  %1425 = vmatpush.bf16.msra.mxu1 %v3919_v11  ;;  %v4348_v9 = vld [vmem:[#allocation7 + $0x5c] sm:$0xf0]  ;;  %v4341_v11 = vld [vmem:[#allocation7 + $0x2c] sm:$0xf]  ;;  %v1625_v1 = vunpack.c.l.s4 %v5138_v0 }
 0x172   : > { %1444 = vmatpush.bf16.msra.mxu2 %v3923_v13  ;;  %1463 = vmatpush.bf16.msra.mxu3 %v3927_v14  ;;  %v3643_v12 = vor.u32 %v4348_v9, %v3642_v5  ;;  %v3647_v13 = vor.u32 %v4341_v11, %v3644_v15  ;;  %v4042_v14 = vld [vmem:[#allocation7 + $0x340] sm:$0xf] }
 0x173   : > { %v4043_v18 = vor.u32 %v4447_v7, %v4042_v14 }
 0x175   : > { %1407 = vmatpush.bf16.msra.mxu0 %v3859_v24  ;;  %1426 = vmatpush.bf16.msra.mxu1 %v3863_v21  ;;  %v3986_v24 = vld [vmem:[#allocation7 + $0x2d0] sm:$0xf]  ;;  %v4433_v21 = vld [vmem:[#allocation7 + $0x304] sm:$0xf0] }
 0x176   : > { %1445 = vmatpush.bf16.msra.mxu2 %v3867_v28  ;;  %1464 = vmatpush.bf16.msra.mxu3 %v3871_v29  ;;  %v3987_v26 = vor.u32 %v4433_v21, %v3986_v24  ;;  %v3930_v28 = vld [vmem:[#allocation7 + $0x260] sm:$0xf]  ;;  %v4419_v29 = vld [vmem:[#allocation7 + $0x294] sm:$0xf0] }
 0x177   : > { %1265 = vmatmul.bf16.gmra.mxu0 %v5497_v36  ;;  %1284 = vmatmul.bf16.gmra.mxu1 %v5497_v36  ;;  %v3931_v30 = vor.u32 %v4419_v29, %v3930_v28 }
 0x178   : > { %1303 = vmatmul.bf16.gmra.mxu2 %v5497_v36  ;;  %1322 = vmatmul.bf16.gmra.mxu3 %v5497_v36 }
 0x179   : > { %1408 = vmatpush.bf16.msra.mxu0 %v3803_v10  ;;  %1427 = vmatpush.bf16.msra.mxu1 %v3807_v57  ;;  %v3935_v10 = vor.u32 %v4412_v60, %v3932_v59  ;;  %v4398_v57 = vld [vmem:[#allocation7 + $0x1f4] sm:$0xf] }
 0x17a   : > { %1446 = vmatpush.bf16.msra.mxu2 %v3811_v41  ;;  %1465 = vmatpush.bf16.msra.mxu3 %v3815_v43  ;;  %v3879_v39 = vor.u32 %v4398_v57, %v3876_v38  ;;  %v4391_v41 = vld [vmem:[#allocation7 + $0x1b4] sm:$0xf0]  ;;  %v4384_v43 = vld [vmem:[#allocation7 + $0x184] sm:$0xf] }
 0x17b   : > { %v3819_v31 = vor.u32 %v4391_v41, %v3818_v40 }
 0x17d   : > { %1409 = vmatpush.bf16.msra.mxu0 %v3747_v45  ;;  %1428 = vmatpush.bf16.msra.mxu1 %v3751_v46  ;;  %v4377_v45 = vld [vmem:[#allocation7 + $0x144] sm:$0xf0]  ;;  %v3823_v46 = vor.u32 %v4384_v43, %v3820_v44 }
 0x17e   : > { %1447 = vmatpush.bf16.msra.mxu2 %v3755_v53  ;;  %1466 = vmatpush.bf16.msra.mxu3 %v3759_v54  ;;  %v3763_v47 = vor.u32 %v4377_v45, %v3762_v3  ;;  %v3708_v53 = vld [vmem:[#allocation7 + $0xd8] sm:$0xf0]  ;;  %v3650_v54 = vld [vmem:[#allocation7 + $0x30] sm:$0xf] }
 0x17f   : > { %v3711_v56 = vor.u32 %v4356_v42, %v3708_v53 }
 0x181   : > { %1410 = vmatpush.bf16.msra.mxu0 %v3691_v16  ;;  %1429 = vmatpush.bf16.msra.mxu1 %v3695_v58  ;;  %v3651_v16 = vor.u32 %v4349_v55, %v3650_v54  ;;  %v4342_v58 = vld [vmem:[#allocation7 + $0x34] sm:$0xf] }
 0x182   : > { %1448 = vmatpush.bf16.msra.mxu2 %v3699_v2  ;;  %1467 = vmatpush.bf16.msra.mxu3 %v3703_v4  ;;  %v3655_v23 = vor.u32 %v4342_v58, %v3652_v61 }
 0x185   : > { %1411 = vmatpush.bf16.msra.mxu0 %v3635_v6  ;;  %1430 = vmatpush.bf16.msra.mxu1 %v3639_v8 }
 0x186   : > { %1449 = vmatpush.bf16.msra.mxu2 %v3643_v12  ;;  %1468 = vmatpush.bf16.msra.mxu3 %v3647_v13 }
 0x187   : > { %1336 = vmatmul.bf16.vlgmr.msrb.gmra.mxu0 %v5479_v34  ;;  %1355 = vmatmul.bf16.vlgmr.msrb.gmra.mxu1 %v5479_v34 }
 0x188   : > { %1374 = vmatmul.bf16.vlgmr.msrb.gmra.mxu2 %v5479_v34  ;;  %1393 = vmatmul.bf16.vlgmr.msrb.gmra.mxu3 %v5479_v34 }
 0x189   : > { %1480 = vmatpush.bf16.msrb.mxu0 %v4043_v18  ;;  %1499 = vmatpush.bf16.msrb.mxu1 %v4047_v20 }
 0x18a   : > { %4514 = vmatpush.bf16.msrb.mxu2 %v4043_v18  ;;  %4522 = vmatpush.bf16.msrb.mxu3 %v4047_v20 }
 0x18d   : > { %1481 = vmatpush.bf16.msrb.mxu0 %v3987_v26  ;;  %1500 = vmatpush.bf16.msrb.mxu1 %v3991_v27 }
 0x18e   : > { %4515 = vmatpush.bf16.msrb.mxu2 %v3987_v26  ;;  %4523 = vmatpush.bf16.msrb.mxu3 %v3991_v27 }
 0x191   : > { %1482 = vmatpush.bf16.msrb.mxu0 %v3931_v30  ;;  %1501 = vmatpush.bf16.msrb.mxu1 %v3935_v10 }
 0x192   : > { %4516 = vmatpush.bf16.msrb.mxu2 %v3931_v30  ;;  %4524 = vmatpush.bf16.msrb.mxu3 %v3935_v10 }
 0x195   : > { %1483 = vmatpush.bf16.msrb.mxu0 %v3875_v37  ;;  %1502 = vmatpush.bf16.msrb.mxu1 %v3879_v39 }
 0x196   : > { %4517 = vmatpush.bf16.msrb.mxu2 %v3875_v37  ;;  %4525 = vmatpush.bf16.msrb.mxu3 %v3879_v39 }
 0x197   : > { %1341 = vmatmul.bf16.gmra.mxu0 %v5497_v36  ;;  %1360 = vmatmul.bf16.gmra.mxu1 %v5497_v36 }
 0x198   : > { %1379 = vmatmul.bf16.gmra.mxu2 %v5497_v36  ;;  %1398 = vmatmul.bf16.gmra.mxu3 %v5497_v36 }
 0x199   : > { %1484 = vmatpush.bf16.msrb.mxu0 %v3819_v31  ;;  %1503 = vmatpush.bf16.msrb.mxu1 %v3823_v46 }
 0x19a   : > { %4518 = vmatpush.bf16.msrb.mxu2 %v3819_v31  ;;  %4526 = vmatpush.bf16.msrb.mxu3 %v3823_v46 }
 0x19d   : > { %1485 = vmatpush.bf16.msrb.mxu0 %v3763_v47  ;;  %1504 = vmatpush.bf16.msrb.mxu1 %v3767_v51 }
 0x19e   : > { %4519 = vmatpush.bf16.msrb.mxu2 %v3763_v47  ;;  %4527 = vmatpush.bf16.msrb.mxu3 %v3767_v51 }
 0x1a1   : > { %1486 = vmatpush.bf16.msrb.mxu0 %v3707_v52  ;;  %1505 = vmatpush.bf16.msrb.mxu1 %v3711_v56 }
 0x1a2   : > { %4520 = vmatpush.bf16.msrb.mxu2 %v3707_v52  ;;  %4528 = vmatpush.bf16.msrb.mxu3 %v3711_v56 }
 0x1a5   : > { %1487 = vmatpush.bf16.msrb.mxu0 %v3651_v16  ;;  %1506 = vmatpush.bf16.msrb.mxu1 %v3655_v23 }
 0x1a6   : > { %4521 = vmatpush.bf16.msrb.mxu2 %v3651_v16  ;;  %4529 = vmatpush.bf16.msrb.mxu3 %v3655_v23 }
 0x1a7   : > { %1412 = vmatmul.bf16.vlgmr.msra.gmra.mxu0 %v5479_v34  ;;  %1431 = vmatmul.bf16.vlgmr.msra.gmra.mxu1 %v5479_v34 }
 0x1a8   : > { %1450 = vmatmul.bf16.vlgmr.msra.gmra.mxu2 %v5479_v34  ;;  %1469 = vmatmul.bf16.vlgmr.msra.gmra.mxu3 %v5479_v34 }
 0x1b7   : > { %1417 = vmatmul.bf16.gmra.mxu0 %v5497_v36  ;;  %1436 = vmatmul.bf16.gmra.mxu1 %v5497_v36 }
 0x1b8   : > { %1455 = vmatmul.bf16.gmra.mxu2 %v5497_v36  ;;  %1474 = vmatmul.bf16.gmra.mxu3 %v5497_v36 }
 0x1c7   : > { %1488 = vmatmul.bf16.vlgmr.msrb.gmra.mxu0 %v5479_v34  ;;  %1507 = vmatmul.bf16.vlgmr.msrb.gmra.mxu1 %v5479_v34  ;;  %v5527_v34 = vunpack.c.0.s8 %v1625_v1 }
 0x1c8   : > { %1493 = vmatmul.bf16.vlgmr.msrb.gmra.mxu2 %v5497_v36  ;;  %1512 = vmatmul.bf16.vlgmr.msrb.gmra.mxu3 %v5497_v36 }
 0x1e4   : > { %v1261_v62 = vpop.f32.mrf.mxu0  ;;  %v1280_v63 = vpop.f32.mrf.mxu1 }
 0x1e5   : > { %v1574_v2 = vrot.slane %v1280_v63, 6 }
 0x1e7   : > { %v1581_v36 = vsel %vm1580_vm13, %v1261_v62, %v1574_v2  ;;  %v1587_v28 = vsel %vm1586_vm0, %v1261_v62, %v1574_v2  ;;  %v1597_v33 = vsel %vm1588_vm1, %v1574_v2, %v1261_v62  ;;  %v1593_v48 = vsel %vm1582_vm15, %v1261_v62, %v1574_v2 }
 0x1eb   : > { %v1299_v4 = vpop.f32.mrf.mxu2  ;;  %v1318_v5 = vpop.f32.mrf.mxu3 }
 0x1ec   : > { %v1575_v6 = vrot.slane %v1299_v4, 4  ;;  %v1576_v8 = vrot.slane %v1318_v5, 2  ;;  %v5523_v9 = vpop.f32.mrf.mxu0  ;;  %v5525_v11 = vpop.f32.mrf.mxu1 }
 0x1ee   : > { %v1583_v15 = vsel %vm1582_vm15, %v1575_v6, %v1576_v8  ;;  %v1589_v22 = vsel %vm1588_vm1, %v1576_v8, %v1575_v6  ;;  %v1598_v31 = vsel %vm1586_vm0, %v1575_v6, %v1576_v8  ;;  %v1594_v44 = vsel %vm1580_vm13, %v1575_v6, %v1576_v8 }
 0x1ef   : > { %v1585_v12 = vsel %vm1584_vm14, %v1581_v36, %v1583_v15  ;;  %v1591_v10 = vsel %vm1590_vm2, %v1587_v28, %v1589_v22  ;;  %v1599_v51 = vsel %vm1590_vm2, %v1598_v31, %v1597_v33  ;;  %v1595_v52 = vsel %vm1584_vm14, %v1594_v44, %v1593_v48 }
 0x1f0   : > { %v5533_v13 = vperm.slane %v1585_v12, %v5527_v34  ;;  %v1592_v38 = vrot.slane %v1591_v10, 2  ;;  %v1600_v55 = vrot.slane %v1599_v51, 6  ;;  %v1596_v56 = vrot.slane %v1595_v52, 4 }
 0x1f1   : > { %v1577_v36 = vrot.slane %v5525_v11, 6 }
 0x1f2   : > { %1664 = vrot.lane.b32.xlu1 %v5533_v13, %s5139_s15  ;;  %v5581_v47 = vperm.slane %v1592_v38, %v5527_v34  ;;  %v5599_v62 = vperm.slane %v1600_v55, %v5527_v34  ;;  %v5602_v63 = vperm.slane %v1596_v56, %v5527_v34 }
 0x1f3   : > { %v1301_v14 = vpop.f32.mrf.mxu2  ;;  %v1320_v7 = vpop.f32.mrf.mxu3  ;;  %v1604_v11 = vsel %vm1586_vm0, %v5523_v9, %v1577_v36  ;;  %v1608_v51 = vsel %vm1582_vm15, %v5523_v9, %v1577_v36 }
 0x1f4   : > { %v5537_v17 = vpop.f32.mrf.mxu0  ;;  %v1285_v18 = vpop.f32.mrf.mxu1  ;;  %v1578_v4 = vrot.slane %v1301_v14, 4  ;;  %v1579_v5 = vrot.slane %v1320_v7, 2 }
 0x1f5   : > { %v1958_v16 = vrot.slane %v1285_v18, 6 }
 0x1f6   : > { %v1605_v7 = vsel %vm1588_vm1, %v1579_v5, %v1578_v4  ;;  %v1613_v31 = vsel %vm1586_vm0, %v1578_v4, %v1579_v5 }
 0x1f7   : > { %v1967_v2 = vsel %vm1586_vm0, %v5537_v17, %v1958_v16  ;;  %v1964_v15 = vsel %vm1580_vm13, %v5537_v17, %v1958_v16  ;;  %v1606_v28 = vsel %vm1590_vm2, %v1604_v11, %v1605_v7  ;;  %v1975_v52 = vsel %vm1588_vm1, %v1958_v16, %v5537_v17 }
 0x1fb   : > { %v1304_v19 = vpop.f32.mrf.mxu2  ;;  %v1323_v20 = vpop.f32.mrf.mxu3 }
 0x1fc   : > { %v5539_v24 = vpop.f32.mrf.mxu0  ;;  %v1287_v21 = vpop.f32.mrf.mxu1  ;;  %v1959_v53 = vrot.slane %v1304_v19, 4  ;;  %v1960_v54 = vrot.slane %v1323_v20, 2 }
 0x1fd   : > { %v5542_v25 = vrot.slane %v1287_v21, 6 }
 0x1fe   : > { %v1968_v58 = vsel %vm1588_vm1, %v1960_v54, %v1959_v53  ;;  %v1965_v6 = vsel %vm1582_vm15, %v1959_v53, %v1960_v54  ;;  %v1972_v18 = vsel %vm1580_vm13, %v1959_v53, %v1960_v54 }
 0x1ff   : > { %v1986_v35 = vsel %vm1582_vm15, %v5539_v24, %v5542_v25  ;;  %v1979_v37 = vsel %vm1580_vm13, %v5539_v24, %v5542_v25  ;;  %v1969_v8 = vsel %vm1590_vm2, %v1967_v2, %v1968_v58  ;;  %v1966_v12 = vsel %vm1584_vm14, %v1964_v15, %v1965_v6 }
 0x200   : > { %v1970_v14 = vrot.slane %v1969_v8, 2  ;;  %v5627_v21 = vperm.slane %v1966_v12, %v5527_v34  ;;  %v1982_v8 = vsel %vm1586_vm0, %v5539_v24, %v5542_v25 }
 0x203   : > { %v1306_v26 = vpop.f32.mrf.mxu2  ;;  %v1325_v27 = vpop.f32.mrf.mxu3 }
 0x204   : > { %v5545_v29 = vrot.slane %v1306_v26, 4  ;;  %v5547_v60 = vrot.slane %v1325_v27, 2  ;;  %v5549_v59 = vpop.f32.mrf.mxu0  ;;  %v1356_v30 = vpop.f32.mrf.mxu1  ;;  %v5634_v27 = vperm.slane %v1970_v14, %v5527_v34 }
 0x205   : > { %1698 = vrot.lane.b32.xlu2 %v5549_v59, %s5139_s15 }
 0x206   : > { %v1987_v32 = vsel %vm1580_vm13, %v5545_v29, %v5547_v60  ;;  %v1980_v57 = vsel %vm1582_vm15, %v5545_v29, %v5547_v60  ;;  %v1991_v11 = vsel %vm1586_vm0, %v5545_v29, %v5547_v60 }
 0x207   : > { %v1988_v39 = vsel %vm1584_vm14, %v1987_v32, %v1986_v35  ;;  %v1981_v40 = vsel %vm1584_vm14, %v1979_v37, %v1980_v57  ;;  %v1602_v32 = vsel %vm1582_vm15, %v1578_v4, %v1579_v5  ;;  %v1607_v37 = vrot.slane %v1606_v28, 2 }
 0x208   : > { %v1989_v41 = vrot.slane %v1988_v39, 4  ;;  %v5569_v43 = vperm.slane %v1981_v40, %v5527_v34  ;;  %v1601_v57 = vsel %vm1580_vm13, %v5523_v9, %v1577_v36  ;;  %v1609_v40 = vsel %vm1580_vm13, %v1578_v4, %v1579_v5 }
 0x209   : > { %v1603_v39 = vsel %vm1584_vm14, %v1601_v57, %v1602_v32  ;;  %v5658_v48 = vperm.slane %v1607_v37, %v5527_v34 }
 0x20a   : > { %v5574_v3 = vperm.slane %v1989_v41, %v5527_v34  ;;  %v1976_v41 = vsel %vm1586_vm0, %v1959_v53, %v1960_v54  ;;  %v1610_v53 = vsel %vm1584_vm14, %v1609_v40, %v1608_v51  ;;  %v1612_v54 = vsel %vm1588_vm1, %v1577_v36, %v5523_v9 }
 0x20b   : > { %v5576_v45 = vpop.f32.mrf.mxu2  ;;  %v5578_v46 = vpop.f32.mrf.mxu3  ;;  %v1977_v55 = vsel %vm1590_vm2, %v1976_v41, %v1975_v52  ;;  %v1614_v56 = vsel %vm1590_vm2, %v1613_v31, %v1612_v54  ;;  %v1983_v9 = vsel %vm1588_vm1, %v5547_v60, %v5545_v29 }
 0x20c   : > { %v5585_v49 = vpop.f32.mrf.mxu0  ;;  %v1358_v50 = vpop.f32.mrf.mxu1  ;;  %v1615_v58 = vrot.slane %v1614_v56, 6  ;;  %v1984_v14 = vsel %vm1590_vm2, %v1982_v8, %v1983_v9 }
 0x20d   : > { %v1833_v42 = vpack.c.bf16 %v1358_v50, %v1356_v30  ;;  %1666 = vrot.lane.b32.xlu2 %v5581_v47, %s5139_s15  ;;  %1700 = vrot.lane.b32.xlu0 %v5585_v49, %s5139_s15  ;;  %v1971_v30 = vsel %vm1582_vm15, %v5537_v17, %v1958_v16  ;;  %v5661_v50 = vperm.slane %v1603_v39, %v5527_v34  ;;  %v1611_v17 = vrot.slane %v1610_v53, 4 }
 0x20e   : > { %v1973_v35 = vsel %vm1584_vm14, %v1972_v18, %v1971_v30  ;;  %v1978_v16 = vrot.slane %v1977_v55, 6  ;;  %v5702_v12 = vperm.slane %v1615_v58, %v5527_v34  ;;  %v1985_v18 = vrot.slane %v1984_v14, 2 }
 0x20f   : > { %1853 = vmatpush.bf16.msra.mxu3 %v1833_v42  ;;  %v1974_v38 = vrot.slane %v1973_v35, 4  ;;  %v5691_v5 = vperm.slane %v1611_v17, %v5527_v34 }
 0x210   : > { %v5694_v6 = vperm.slane %v1978_v16, %v5527_v34  ;;  %v5721_v30 = vperm.slane %v1985_v18, %v5527_v34 }
 0x211   : > { %v5668_v42 = vperm.slane %v1974_v38, %v5527_v34 }
 0x213   : > { %v5594_v61 = vpop.f32.mrf.mxu2  ;;  %v5596_v23 = vpop.f32.mrf.mxu3 }
 0x214   : > { %v5604_v0 = vpop.f32.mrf.mxu0  ;;  %v1361_v1 = vpop.f32.mrf.mxu1 }
 0x215   : > { %1670 = vrot.lane.b32.xlu2 %v5599_v62, %s5139_s15  ;;  %1668 = vrot.lane.b32.xlu0 %v5602_v63, %s5139_s15 }
 0x216   : > { %2076 = vrot.lane.b32.xlu1 %v5604_v0, %s5139_s15 }
 0x21b   : > { %v5622_v19 = vpop.f32.mrf.mxu2  ;;  %v5624_v20 = vpop.f32.mrf.mxu3 }
 0x21c   : > { %v5631_v22 = vpop.f32.mrf.mxu0  ;;  %v1363_v26 = vpop.f32.mrf.mxu1 }
 0x21d   : > { %v2210_v10 = vpack.c.bf16 %v1363_v26, %v1361_v1  ;;  %2042 = vrot.lane.b32.xlu2 %v5627_v21, %s5139_s15  ;;  %2078 = vrot.lane.b32.xlu0 %v5631_v22, %s5139_s15 }
 0x21e   : > { %2044 = vrot.lane.b32.xlu1 %v5634_v27, %s5139_s15 }
 0x21f   : > { %2230 = vmatpush.bf16.msra.mxu1 %v2210_v10  ;;  %v1990_v10 = vsel %vm1588_vm1, %v5542_v25, %v5539_v24 }
 0x220   : > { %v1992_v37 = vsel %vm1590_vm2, %v1991_v11, %v1990_v10 }
 0x221   : > { %v1993_v25 = vrot.slane %v1992_v37, 6 }
 0x223   : > { %v5653_v44 = vpop.f32.mrf.mxu2  ;;  %v5655_v33 = vpop.f32.mrf.mxu3  ;;  %v5744_v31 = vperm.slane %v1993_v25, %v5527_v34 }
 0x224   : > { %v5684_v1 = vpop.f32.mrf.mxu0  ;;  %v5705_v7 = vpop.f32.mrf.mxu1 }
 0x225   : > { %1674 = vrot.lane.b32.xlu2 %v5658_v48, %s5139_s15  ;;  %1672 = vrot.lane.b32.xlu0 %v5661_v50, %s5139_s15 }
 0x226   : > { %2046 = vrot.lane.b32.xlu1 %v5668_v42, %s5139_s15 }
 0x22b   : > { %v5686_v2 = vpop.f32.mrf.mxu2  ;;  %v5688_v4 = vpop.f32.mrf.mxu3 }
 0x22c   : > { %v4056_v36 = vmul.f32 -1.442695, %v5686_v2  ;;  %v4057_v15 = vmul.f32 -1.442695, %v5688_v4  ;;  %v5728_v39 = vpop.f32.mrf.mxu0  ;;  %v5737_v24 = vpop.f32.mrf.mxu1 }
 0x22d   : > { %1676 = vrot.lane.b32.xlu2 %v5691_v5, %s5139_s15  ;;  %2048 = vrot.lane.b32.xlu0 %v5694_v6, %s5139_s15  ;;  %6346 = vst [vmem:[#allocation23_spill] sm:$0xff] %v5728_v39 }
 0x22e   : > { %4672 = vpow2.f32 %v4056_v36  ;;  %1678 = vrot.lane.b32.xlu1 %v5702_v12, %s5139_s15  ;;  %6347 = vst [vmem:[#allocation24_spill] sm:$0xff] %v5737_v24 }
 0x22f   : > { %4674 = vpow2.f32 %v4057_v15 }
 0x233   : > { %v5716_v26 = vpop.f32.mrf.mxu2  ;;  %v5718_v28 = vpop.f32.mrf.mxu3 }
 0x234   : > { %v4673_v35 = vpop.eup %4672  ;;  %v4060_v32 = vmul.f32 -1.442695, %v5716_v26  ;;  %v4061_v29 = vmul.f32 -1.442695, %v5718_v28  ;;  %v5753_v34 = vpop.f32.mrf.mxu0 }
 0x235   : > { %v4675_v57 = vpop.eup %4674  ;;  %v2415_v38 = vadd.f32 1.0, %v4673_v35  ;;  %2052 = vrot.lane.b32.xlu2 %v5721_v30, %s5139_s15  ;;  %2050 = vrot.lane.b32.xlu0 %v5569_v43, %s5139_s15  ;;  %v5757_v10 = vpop.f32.mrf.mxu1 }
 0x236   : > { %v2416_v60 = vadd.f32 1.0, %v4675_v57  ;;  %4676 = vpow2.f32 %v4060_v32  ;;  %2054 = vrot.lane.b32.xlu1 %v5574_v3, %s5139_s15 }
 0x237   : > { %4678 = vrcp.f32 %v2415_v38  ;;  %v2440_v58 = vand.u32 2147483647, %v2415_v38  ;;  %v2442_v9 = vand.u32 2147483648, %v2415_v38  ;;  %vm2436_vm3 = vweird.f32 %v2415_v38 }
 0x238   : > { %4680 = vrcp.f32 %v2416_v60  ;;  %v2455_v15 = vand.u32 2147483647, %v2416_v60  ;;  %v2457_v11 = vand.u32 2147483648, %v2416_v60  ;;  %vm2451_vm5 = vweird.f32 %v2416_v60 }
 0x239   : > { %4682 = vpow2.f32 %v4061_v29  ;;  %vm5760_vm6 = vcmp.eq.f32.partialorder %v2440_v58, 8.507059e+37  ;;  %v2443_v37 = vor.u32 1.1754944e-38, %v2442_v9 }
 0x23a   : > { %vm5766_vm8 = vcmp.eq.f32.partialorder %v2455_v15, 8.507059e+37 }
 0x23b   : > { %v5739_v40 = vpop.f32.mrf.mxu2  ;;  %v5741_v41 = vpop.f32.mrf.mxu3 }
 0x23c   : > { %v4677_v51 = vpop.eup %4676  ;;  %v4064_v52 = vmul.f32 -1.442695, %v5739_v40  ;;  %v4065_v55 = vmul.f32 -1.442695, %v5741_v41 }
 0x23d   : > { %v4679_v53 = vpop.eup %4678  ;;  %v5747_v54 = vadd.f32 1.0, %v4677_v51  ;;  %2056 = vrot.lane.b32.xlu0 %v5744_v31, %s5139_s15 }
 0x23e   : > { %v4681_v56 = vpop.eup %4680  ;;  %v2432_v17 = vmul.f32 %v4679_v53, %v2415_v38  ;;  %4684 = vpow2.f32 %v4064_v52  ;;  %vm2437_vm4 = vweird.f32 %v4679_v53 }
 0x23f   : > { %v4683_v16 = vpop.eup %4682  ;;  %v2447_v8 = vmul.f32 %v4681_v56, %v2416_v60  ;;  %4686 = vrcp.f32 %v5747_v54  ;;  %vm2452_vm7 = vweird.f32 %v4681_v56  ;;  %vm2438_vm9 = vmor %vm2436_vm3, %vm2437_vm4  ;;  %vm2496_vm11 = vweird.f32 %v5747_v54 }
 0x240   : > { %v2433_v36 = vsub.f32 1.0, %v2432_v17  ;;  %v5755_v14 = vadd.f32 1.0, %v4683_v16  ;;  %4688 = vpow2.f32 %v4065_v55  ;;  %v2500_v55 = vand.u32 2147483647, %v5747_v54  ;;  %vm2453_vm10 = vmor %vm2451_vm5, %vm2452_vm7 }
 0x241   : > { %v2448_v18 = vsub.f32 1.0, %v2447_v8  ;;  %v2458_v8 = vor.u32 1.1754944e-38, %v2457_v11 }
 0x242   : > { %v2434_v35 = vmul.f32 %v4679_v53, %v2433_v36  ;;  %4690 = vrcp.f32 %v5755_v14  ;;  %v2502_v36 = vand.u32 2147483648, %v5747_v54  ;;  %vm5790_vm12 = vcmp.eq.f32.partialorder %v2500_v55, 8.507059e+37 }
 0x243   : > { %v2449_v57 = vmul.f32 %v4681_v56, %v2448_v18  ;;  %v5764_v29 = vpop.f32.mrf.mxu2  ;;  %v5772_v16 = vpop.f32.mrf.mxu3  ;;  %vm2511_vm0 = vweird.f32 %v5755_v14 }
 0x244   : > { %v4685_v25 = vpop.eup %4684  ;;  %v2435_v51 = vadd.f32 %v4679_v53, %v2434_v35  ;;  %v4068_v17 = vmul.f32 -1.442695, %v5764_v29  ;;  %v4069_v11 = vmul.f32 -1.442695, %v5772_v16  ;;  %v2503_v32 = vor.u32 1.1754944e-38, %v2502_v36 }
 0x245   : > { %v4687_v58 = vpop.eup %4686  ;;  %v2450_v9 = vadd.f32 %v4681_v56, %v2449_v57  ;;  %v5777_v18 = vadd.f32 1.0, %v4685_v25 }
 0x246   : > { %v2439_v15 = vsel %vm2438_vm9, %v4679_v53, %v2435_v51  ;;  %v2492_v35 = vmul.f32 %v4687_v58, %v5747_v54  ;;  %4692 = vpow2.f32 %v4068_v17  ;;  %v4689_v24 = vpop.eup %4688  ;;  %vm2497_vm13 = vweird.f32 %v4687_v58 }
 0x247   : > { %v2444_v38 = vsel %vm5760_vm6, %v2443_v37, %v2439_v15  ;;  %v2454_v39 = vsel %vm2453_vm10, %v4681_v56, %v2450_v9  ;;  %4694 = vrcp.f32 %v5777_v18  ;;  %v2515_v37 = vand.u32 2147483647, %v5755_v14  ;;  %v5797_v9 = vpop.f32.mrf.mxu0  ;;  %vm2498_vm15 = vmor %vm2496_vm11, %vm2497_vm13 }
 0x248   : > { %v4691_v57 = vpop.eup %4690  ;;  %v2671_v53 = vmul.f32 %v2444_v38, %v5686_v2  ;;  %v2459_v60 = vsel %vm5766_vm8, %v2458_v8, %v2454_v39  ;;  %v2493_v25 = vsub.f32 1.0, %v2492_v35  ;;  %6354 = vst [vmem:[#allocation25_spill] sm:$0xff] %v5797_v9  ;;  %v5800_v52 = vadd.f32 1.0, %v4689_v24  ;;  %v5804_v35 = vpop.f32.mrf.mxu1 }
 0x249   : > { %v2672_v17 = vmul.f32 %v2459_v60, %v5688_v4  ;;  %v2507_v56 = vmul.f32 %v4691_v57, %v5755_v14  ;;  %v2517_v8 = vand.u32 2147483648, %v5755_v14  ;;  %6355 = vst [vmem:[#allocation26_spill] sm:$0xff] %v5804_v35  ;;  %4696 = vpow2.f32 %v4069_v11 }
 0x24a   : > { %v2687_v15 = vmul.f32 %v2671_v53, %v5576_v45  ;;  %v2494_v2 = vmul.f32 %v4687_v58, %v2493_v25  ;;  %vm2512_vm14 = vweird.f32 %v4691_v57  ;;  %v2560_v38 = vand.u32 2147483647, %v5777_v18 }
 0x24b   : > { %v2688_v39 = vmul.f32 %v2672_v17, %v5578_v46  ;;  %v2508_v55 = vsub.f32 1.0, %v2507_v56  ;;  %4698 = vrcp.f32 %v5800_v52  ;;  %v2562_v24 = vand.u32 2147483648, %v5777_v18  ;;  %vm2513_vm3 = vmor %vm2511_vm0, %vm2512_vm14 }
 0x24c   : > { %v4693_v4 = vpop.eup %4692  ;;  %v2495_v36 = vadd.f32 %v4687_v58, %v2494_v2  ;;  %vm5816_vm1 = vcmp.eq.f32.partialorder %v2515_v37, 8.507059e+37  ;;  %v2518_v54 = vor.u32 1.1754944e-38, %v2517_v8  ;;  %vm2556_vm2 = vweird.f32 %v5777_v18 }
 0x24d   : > { %v4695_v45 = vpop.eup %4694  ;;  %v5808_v53 = vpack.c.bf16 %v2688_v39, %v2687_v15  ;;  %v2509_v46 = vmul.f32 %v4691_v57, %v2508_v55  ;;  %v5813_v60 = vadd.f32 1.0, %v4693_v4  ;;  %v2575_v14 = vand.u32 2147483647, %v5800_v52 }
 0x24e   : > { %v2499_v25 = vsel %vm2498_vm15, %v4687_v58, %v2495_v36  ;;  %v2552_v17 = vmul.f32 %v4695_v45, %v5777_v18  ;;  %vm5828_vm4 = vcmp.eq.f32.partialorder %v2560_v38, 8.507059e+37  ;;  %v2563_v51 = vor.u32 1.1754944e-38, %v2562_v24 }
 0x24f   : > { %v2504_v56 = vsel %vm5790_vm12, %v2503_v32, %v2499_v25  ;;  %v2510_v15 = vadd.f32 %v4691_v57, %v2509_v46  ;;  %4700 = vrcp.f32 %v5813_v60  ;;  %v4697_v37 = vpop.eup %4696  ;;  %v2577_v32 = vand.u32 2147483648, %v5800_v52  ;;  %v5841_v38 = vpop.f32.mrf.mxu0 }
 0x250   : > { %v2675_v2 = vmul.f32 %v2504_v56, %v5716_v26  ;;  %v2553_v58 = vsub.f32 1.0, %v2552_v17  ;;  %vm2557_vm5 = vweird.f32 %v4695_v45  ;;  %v5835_v36 = vadd.f32 1.0, %v4697_v37 }
 0x251   : > { %v2514_v39 = vsel %vm2513_vm3, %v4691_v57, %v2510_v15  ;;  %v4699_v8 = vpop.eup %4698  ;;  %vm2571_vm6 = vweird.f32 %v5800_v52  ;;  %v2719_v24 = vunpack.c.l.b16 %v5808_v53  ;;  %vm5844_vm7 = vcmp.eq.f32.partialorder %v2575_v14, 8.507059e+37  ;;  %vm2558_vm8 = vmor %vm2556_vm2, %vm2557_vm5 }
 0x252   : > { %v2519_v26 = vsel %vm5816_vm1, %v2518_v54, %v2514_v39  ;;  %v2554_v4 = vmul.f32 %v4695_v45, %v2553_v58  ;;  %v2691_v46 = vmul.f32 %v2675_v2, %v5594_v61  ;;  %v2567_v57 = vmul.f32 %v4699_v8, %v5800_v52  ;;  %v5853_v54 = vpop.f32.mrf.mxu1  ;;  %v5855_v2 = vpop.f32.mrf.mxu2 }
 0x253   : > { %v2676_v25 = vmul.f32 %v2519_v26, %v5718_v28  ;;  %4702 = vrcp.f32 %v5835_v36  ;;  %v2720_v56 = vunpack.c.h.b16 %v5808_v53  ;;  %v2578_v15 = vor.u32 1.1754944e-38, %v2577_v32 }
 0x254   : > { %v2555_v17 = vadd.f32 %v4695_v45, %v2554_v4  ;;  %v2568_v28 = vsub.f32 1.0, %v2567_v57  ;;  %vm2572_vm9 = vweird.f32 %v4699_v8  ;;  %v2620_v37 = vand.u32 2147483647, %v5813_v60  ;;  %v5862_v4 = vpop.f32.mrf.mxu3 }
 0x255   : > { %v2692_v61 = vmul.f32 %v2676_v25, %v5596_v23  ;;  %v4701_v58 = vpop.eup %4700  ;;  %v4058_v39 = vmul.f32 -1.442695, %v5841_v38  ;;  %v2622_v25 = vand.u32 2147483648, %v5813_v60  ;;  %v4066_v57 = vmul.f32 -1.442695, %v5855_v2  ;;  %vm2573_vm10 = vmor %vm2571_vm6, %vm2572_vm9 }
 0x256   : > { %v2559_v14 = vsel %vm2558_vm8, %v4695_v45, %v2555_v17  ;;  %v2569_v53 = vmul.f32 %v4699_v8, %v2568_v28  ;;  %v2612_v18 = vmul.f32 %v4701_v58, %v5813_v60  ;;  %v4059_v45 = vmul.f32 -1.442695, %v5853_v54 }
 0x257   : > { %v2705_v26 = vpack.c.bf16 %v2692_v61, %v2691_v46  ;;  %v2564_v23 = vsel %vm5828_vm4, %v2563_v51, %v2559_v14  ;;  %vm2617_vm11 = vweird.f32 %v4701_v58  ;;  %4704 = vpow2.f32 %v4058_v39 }
 0x258   : > { %v2679_v32 = vmul.f32 %v2564_v23, %v5739_v40  ;;  %v2570_v9 = vadd.f32 %v4699_v8, %v2569_v53  ;;  %v2613_v46 = vsub.f32 1.0, %v2612_v18  ;;  %v4067_v40 = vmul.f32 -1.442695, %v5862_v4 }
 0x259   : > { %v2723_v17 = vunpack.c.l.b16 %v2705_v26  ;;  %v2724_v35 = vunpack.c.h.b16 %v2705_v26  ;;  %v4703_v61 = vpop.eup %4702  ;;  %4706 = vpow2.f32 %v4059_v45  ;;  %vm2616_vm12 = vweird.f32 %v5813_v60 }
 0x25a   : > { %v2695_v55 = vmul.f32 %v2679_v32, %v5622_v19  ;;  %v2574_v14 = vsel %vm2573_vm10, %v4699_v8, %v2570_v9  ;;  %v2614_v23 = vmul.f32 %v4701_v58, %v2613_v46  ;;  %v2627_v53 = vmul.f32 %v4703_v61, %v5835_v36  ;;  %vm2618_vm13 = vmor %vm2616_vm12, %vm2617_vm11 }
 0x25b   : > { %v5873_v51 = vpack.c.b16 %v2723_v17, %v2719_v24  ;;  %v5875_v28 = vpack.c.b16 %v2724_v35, %v2720_v56  ;;  %v2579_v26 = vsel %vm5844_vm7, %v2578_v15, %v2574_v14  ;;  %4708 = vpow2.f32 %v4066_v57 }
 0x25c   : > { %v2680_v19 = vmul.f32 %v2579_v26, %v5741_v41  ;;  %v2615_v52 = vadd.f32 %v4701_v58, %v2614_v23  ;;  %v2623_v39 = vor.u32 1.1754944e-38, %v2622_v25  ;;  %v2628_v24 = vsub.f32 1.0, %v2627_v53 }
 0x25d   : > { %4710 = vpow2.f32 %v4067_v40  ;;  %vm2621_vm14 = vcmp.eq.f32.partialorder %v2620_v37, 8.507059e+37  ;;  %v2637_v8 = vand.u32 2147483648, %v5835_v36  ;;  %v4705_v11 = vpop.eup %4704  ;;  %vm2632_vm15 = vweird.f32 %v4703_v61 }
 0x25e   : > { %v2696_v35 = vmul.f32 %v2680_v19, %v5624_v20  ;;  %v2619_v9 = vsel %vm2618_vm13, %v4701_v58, %v2615_v52  ;;  %v2629_v15 = vmul.f32 %v4703_v61, %v2628_v24  ;;  %v2635_v41 = vand.u32 2147483647, %v5835_v36 }
 0x25f   : > { %v2624_v56 = vsel %vm2621_vm14, %v2623_v39, %v2619_v9  ;;  %v2417_v32 = vadd.f32 1.0, %v4705_v11  ;;  %v4707_v25 = vpop.eup %4706  ;;  %vm2631_vm0 = vweird.f32 %v5835_v36  ;;  %v2638_v37 = vor.u32 1.1754944e-38, %v2637_v8  ;;  %v5891_v23 = vpop.permute.xlu2 %1698 }
 0x260   : > { %v5885_v18 = vpack.c.bf16 %v2696_v35, %v2695_v55  ;;  %v2683_v60 = vmul.f32 %v2624_v56, %v5764_v29  ;;  %v2630_v45 = vadd.f32 %v4703_v61, %v2629_v15  ;;  %vm2633_vm1 = vmor %vm2631_vm0, %vm2632_vm15  ;;  %vm2636_vm2 = vcmp.eq.f32.partialorder %v2635_v41, 8.507059e+37 }
 0x261   : > { %v4709_v20 = vpop.eup %4708  ;;  %4712 = vrcp.f32 %v2417_v32  ;;  %v2418_v46 = vadd.f32 1.0, %v4707_v25  ;;  %v2470_v26 = vand.u32 2147483647, %v2417_v32  ;;  %v2472_v53 = vand.u32 2147483648, %v2417_v32 }
 0x262   : > { %v2699_v58 = vmul.f32 %v2683_v60, %v5653_v44  ;;  %v2634_v17 = vsel %vm2633_vm1, %v4703_v61, %v2630_v45  ;;  %v2425_v40 = vadd.f32 1.0, %v4709_v20  ;;  %vm2466_vm3 = vweird.f32 %v2417_v32 }
 0x263   : > { %v4711_v57 = vpop.eup %4710  ;;  %v2639_v55 = vsel %vm2636_vm2, %v2638_v37, %v2634_v17  ;;  %4714 = vrcp.f32 %v2418_v46  ;;  %v2485_v24 = vand.u32 2147483647, %v2418_v46  ;;  %vm5896_vm4 = vcmp.eq.f32.partialorder %v2470_v26, 8.507059e+37 }
 0x264   : > { %v2426_v14 = vadd.f32 1.0, %v4711_v57  ;;  %v2684_v29 = vmul.f32 %v2639_v55, %v5772_v16  ;;  %4716 = vrcp.f32 %v2425_v40  ;;  %v2473_v9 = vor.u32 1.1754944e-38, %v2472_v53 }
 0x265   : > { %vm2481_vm5 = vweird.f32 %v2418_v46  ;;  %v2487_v56 = vand.u32 2147483648, %v2418_v46  ;;  %vm2586_vm7 = vweird.f32 %v2425_v40  ;;  %v2590_v60 = vand.u32 2147483647, %v2425_v40 }
 0x266   : > { %v2700_v36 = vmul.f32 %v2684_v29, %v5655_v33  ;;  %4718 = vrcp.f32 %v2426_v14  ;;  %vm5900_vm8 = vcmp.eq.f32.partialorder %v2485_v24, 8.507059e+37  ;;  %v2592_v37 = vand.u32 2147483648, %v2425_v40 }
 0x267   : > { %v4713_v44 = vpop.eup %4712  ;;  %v2605_v55 = vand.u32 2147483647, %v2426_v14  ;;  %v1667_v29 = vpop.permute.xlu2 %1666  ;;  %v2607_v53 = vand.u32 2147483648, %v2426_v14  ;;  %vm2601_vm14 = vweird.f32 %v2426_v14  ;;  %vm2591_vm0 = vcmp.eq.f32.partialorder %v2590_v60, 8.507059e+37 }
 0x268   : > { %v5894_v19 = vpack.c.bf16 %v2700_v36, %v2699_v58  ;;  %v2462_v61 = vmul.f32 %v4713_v44, %v2417_v32  ;;  %vm2467_vm6 = vweird.f32 %v4713_v44  ;;  %v2488_v32 = vor.u32 1.1754944e-38, %v2487_v56 }
 0x269   : > { %v4715_v52 = vpop.eup %4714  ;;  %vm2468_vm9 = vmor %vm2466_vm3, %vm2467_vm6  ;;  %vm2606_vm2 = vcmp.eq.f32.partialorder %v2605_v55, 8.507059e+37  ;;  %v1519_v55 = vld [vmem:[#allocation10 + $0x8] sm:$0xff] }
 0x26a   : > { %v2463_v39 = vsub.f32 1.0, %v2462_v61  ;;  %v4717_v35 = vpop.eup %4716  ;;  %v2477_v8 = vmul.f32 %v4715_v52, %v2418_v46  ;;  %vm2482_vm10 = vweird.f32 %v4715_v52 }
 0x26b   : > { %v2582_v15 = vmul.f32 %v4717_v35, %v2425_v40  ;;  %vm2587_vm11 = vweird.f32 %v4717_v35  ;;  %vm2483_vm13 = vmor %vm2481_vm5, %vm2482_vm10 }
 0x26c   : > { %v4719_v33 = vpop.eup %4718  ;;  %v2464_v11 = vmul.f32 %v4713_v44, %v2463_v39  ;;  %v2478_v41 = vsub.f32 1.0, %v2477_v8  ;;  %vm2588_vm15 = vmor %vm2586_vm7, %vm2587_vm11 }
 0x26d   : > { %v2597_v25 = vmul.f32 %v4719_v33, %v2426_v14  ;;  %v2583_v58 = vsub.f32 1.0, %v2582_v15  ;;  %vm2602_vm12 = vweird.f32 %v4719_v33 }
 0x26e   : > { %v2465_v45 = vadd.f32 %v4713_v44, %v2464_v11  ;;  %v2479_v57 = vmul.f32 %v4715_v52, %v2478_v41  ;;  %vm2603_vm1 = vmor %vm2601_vm14, %vm2602_vm12 }
 0x26f   : > { %v2598_v17 = vsub.f32 1.0, %v2597_v25  ;;  %v2584_v26 = vmul.f32 %v4717_v35, %v2583_v58  ;;  %v2608_v25 = vor.u32 1.1754944e-38, %v2607_v53  ;;  %v1534_v53 = vld [vmem:[#allocation13] sm:$0xff] }
 0x270   : > { %v2469_v36 = vsel %vm2468_vm9, %v4713_v44, %v2465_v45  ;;  %v2480_v39 = vadd.f32 %v4715_v52, %v2479_v57  ;;  %v2593_v44 = vor.u32 1.1754944e-38, %v2592_v37  ;;  %v1671_v37 = vpop.permute.xlu2 %1670  ;;  %v1526_v57 = vld [vmem:[#allocation11] sm:$0xff] }
 0x271   : > { %v2474_v61 = vsel %vm5896_vm4, %v2473_v9, %v2469_v36  ;;  %v2599_v24 = vmul.f32 %v4719_v33, %v2598_v17  ;;  %v2585_v11 = vadd.f32 %v4717_v35, %v2584_v26  ;;  %v1527_v17 = vld [vmem:[#allocation11 + $0x8] sm:$0xff]  ;;  %vm1740_vm4 = vcmask 130048  }
 0x272   : > { %v2673_v8 = vmul.f32 %v2474_v61, %v5841_v38  ;;  %v2484_v15 = vsel %vm2483_vm13, %v4715_v52, %v2480_v39  ;;  %v1681_v26 = vmul.f32 %v1667_v29, %v1527_v17  ;;  %v1535_v61 = vld [vmem:[#allocation13 + $0x8] sm:$0xff]  ;;  %v1537_v39 = vld [vmem:[#allocation14 + $0x8] sm:$0xff] }
 0x273   : > { %v2600_v41 = vadd.f32 %v4719_v33, %v2599_v24  ;;  %v2489_v16 = vsel %vm5900_vm8, %v2488_v32, %v2484_v15  ;;  %v2589_v9 = vsel %vm2588_vm15, %v4717_v35, %v2585_v11  ;;  %v1696_v32 = vmul.f32 %v1534_v53, %v5549_v59 }
 0x274   : > { %v2689_v38 = vmul.f32 %v2673_v8, %v5684_v1  ;;  %v2674_v46 = vmul.f32 %v2489_v16, %v5853_v54  ;;  %v2594_v56 = vsel %vm2591_vm0, %v2593_v44, %v2589_v9  ;;  %v1665_v1 = vpop.permute.xlu1 %1664  ;;  %v1697_v11 = vmul.f32 %v1535_v61, %v5585_v49  ;;  %v5928_v44 = vld [vmem:[#allocation11 + $0x18] sm:$0xff]  ;;  %v1520_v9 = vld [vmem:[#allocation10 + $0x10] sm:$0xff] }
 0x275   : > { %v2604_v45 = vsel %vm2603_vm1, %v4719_v33, %v2600_v41  ;;  %v2681_v14 = vmul.f32 %v2594_v56, %v5855_v2  ;;  %v1518_v33 = vld [vmem:[#allocation10] sm:$0xff]  ;;  %v1536_v2 = vld [vmem:[#allocation14] sm:$0xff]  ;;  %v1680_v36 = vmul.f32 %v1665_v1, %v1526_v57  ;;  %v2732_v49 = vunpack.c.h.b16 %v5894_v19 }
 0x276   : > { %v2609_v40 = vsel %vm2606_vm2, %v2608_v25, %v2604_v45  ;;  %v2690_v52 = vmul.f32 %v2674_v46, %v5705_v7  ;;  %v1528_v25 = vld [vmem:[#allocation11 + $0x10] sm:$0xff]  ;;  %v2731_v46 = vunpack.c.l.b16 %v5894_v19 }
 0x277   : > { %v2682_v60 = vmul.f32 %v2609_v40, %v5862_v4  ;;  %v2697_v20 = vmul.f32 %v2681_v14, %v5753_v34  ;;  %v1656_v4 = vmul.f32 %v5533_v13, %v1518_v33  ;;  %v1657_v34 = vmul.f32 %v5581_v47, %v1519_v55  ;;  %v5930_v13 = vld [vmem:[#allocation10 + $0x18] sm:$0xff] }
 0x278   : > { %v5918_v58 = vpack.c.bf16 %v2690_v52, %v2689_v38  ;;  %v2043_v41 = vpop.permute.xlu2 %2042  ;;  %v1683_v38 = vmul.f32 %v1671_v37, %v5928_v44  ;;  %v1659_v45 = vmul.f32 %v5599_v62, %v5930_v13  ;;  %v1658_v14 = vmul.f32 %v5602_v63, %v1520_v9 }
 0x279   : > { %v2698_v35 = vmul.f32 %v2682_v60, %v5757_v10  ;;  %v1702_v10 = vmul.f32 %v5891_v23, %v1536_v2  ;;  %v1688_v24 = vadd.f32 %v1680_v36, %v1656_v4  ;;  %v1689_v8 = vadd.f32 %v1681_v26, %v1657_v34 }
 0x27a   : > { %v2727_v52 = vunpack.c.l.b16 %v5885_v18  ;;  %v2728_v60 = vunpack.c.h.b16 %v5885_v18  ;;  %v2058_v19 = vmul.f32 %v2043_v41, %v1526_v57  ;;  %v2074_v62 = vmul.f32 %v1534_v53, %v5604_v0  ;;  %v1523_v41 = vld [vmem:[#allocation10 + $0x28] sm:$0xff]  ;;  %v1530_v0 = vld [vmem:[#allocation11 + $0x20] sm:$0xff] }
 0x27b   : > { %v5921_v54 = vpack.c.bf16 %v2698_v35, %v2697_v20  ;;  %v1706_v15 = vpack.c.bf16 %v1689_v8, %v1688_v24  ;;  %v1704_v16 = vadd.f32 %v1702_v10, %v1696_v32  ;;  %v1691_v20 = vadd.f32 %v1683_v38, %v1659_v45  ;;  %v1522_v38 = vld [vmem:[#allocation10 + $0x20] sm:$0xff] }
 0x27c   : > { %v5940_v37 = vpack.c.b16 %v2731_v46, %v2727_v52  ;;  %v5942_v1 = vpack.c.b16 %v2732_v49, %v2728_v60  ;;  %v2075_v63 = vmul.f32 %v1535_v61, %v5631_v22  ;;  %v2034_v24 = vmul.f32 %v5627_v21, %v1518_v33  ;;  %v1524_v46 = vld [vmem:[#allocation10 + $0x30] sm:$0xff]  ;;  %v1533_v49 = vld [vmem:[#allocation11 + $0x38] sm:$0xff] }
 0x27d   : > { %v2035_v18 = vmul.f32 %v5634_v27, %v1519_v55  ;;  %v1661_v61 = vmul.f32 %v5658_v48, %v1523_v41  ;;  %v1660_v33 = vmul.f32 %v5661_v50, %v1522_v38  ;;  %v2037_v48 = vmul.f32 %v5694_v6, %v5930_v13 }
 0x27e   : > { %v1662_v60 = vmul.f32 %v5691_v5, %v1524_v46  ;;  %v2038_v6 = vmul.f32 %v5569_v43, %v1522_v38  ;;  %v1538_v43 = vlaneseq }
 0x27f   : > { %v1701_v7 = vpop.permute.xlu0 %1700 }
 0x280   : > { %v1703_v29 = vmul.f32 %v1701_v7, %v1537_v39  ;;  %v1675_v7 = vpop.permute.xlu2 %1674 }
 0x282   : > { %v1705_v47 = vadd.f32 %v1703_v29, %v1697_v11  ;;  %v2066_v29 = vadd.f32 %v2058_v19, %v2034_v24 }
 0x284   : > { %v1710_v56 = vpack.c.bf16 %v1705_v47, %v1704_v16  ;;  %v1531_v16 = vld [vmem:[#allocation11 + $0x28] sm:$0xff] }
 0x285   : > { %v1685_v53 = vmul.f32 %v1675_v7, %v1531_v16 }
 0x286   : > { %1718 = vmatpush.bf16.xpose.msra.mxu2 %v1710_v56 }
 0x287   : > { %v1669_v23 = vpop.permute.xlu0 %1668  ;;  %v1693_v55 = vadd.f32 %v1685_v53, %v1661_v61 }
 0x288   : > { %v2077_v59 = vpop.permute.xlu1 %2076  ;;  %v1682_v40 = vmul.f32 %v1669_v23, %v1528_v25 }
 0x289   : > { %v2080_v26 = vmul.f32 %v2077_v59, %v1536_v2  ;;  %v1525_v59 = vld [vmem:[#allocation10 + $0x38] sm:$0xff] }
 0x28a   : > { %v1690_v35 = vadd.f32 %v1682_v40, %v1658_v14  ;;  %v2036_v40 = vmul.f32 %v5668_v42, %v1520_v9 }
 0x28b   : > { %v2082_v32 = vadd.f32 %v2080_v26, %v2074_v62 }
 0x28c   : > { %v1707_v36 = vpack.c.bf16 %v1691_v20, %v1690_v35  ;;  %v1663_v20 = vmul.f32 %v5702_v12, %v1525_v59 }
 0x28d   : > { %1719 = vmatmul.bf16.vlgmr.msra.gmra.mxu2 %v1706_v15  ;;  %v1532_v15 = vld [vmem:[#allocation11 + $0x30] sm:$0xff] }
 0x28f   : > { %v2079_v4 = vpop.permute.xlu0 %2078 }
 0x290   : > { %v2045_v34 = vpop.permute.xlu1 %2044  ;;  %v2081_v10 = vmul.f32 %v2079_v4, %v1537_v39 }
 0x291   : > { %v2059_v8 = vmul.f32 %v2045_v34, %v1527_v17  ;;  %v1677_v17 = vpop.permute.xlu2 %1676  ;;  %v2039_v34 = vmul.f32 %v5721_v30, %v1523_v41  ;;  %v1548_v30 = vand.u32 127, %v1538_v43  ;;  %v5964_v41 = vpop.f32.mrf.mxu2 }
 0x292   : > { %v2083_v11 = vadd.f32 %v2081_v10, %v2075_v63  ;;  %v1686_v45 = vmul.f32 %v1677_v17, %v1532_v15 }
 0x293   : > { %v2067_v2 = vadd.f32 %v2059_v8, %v2035_v18  ;;  %v2040_v18 = vmul.f32 %v5574_v3, %v1524_v46  ;;  %v2041_v8 = vmul.f32 %v5744_v31, %v1525_v59  ;;  %v5968_v3 = vpop.f32.mrf.mxu0  ;;  %v5140_v31 = vmov 0.0  }
 0x294   : > { %v2088_v57 = vpack.c.bf16 %v2083_v11, %v2082_v32  ;;  %v1694_v19 = vadd.f32 %v1686_v45, %v1662_v60 }
 0x295   : > { %v2084_v47 = vpack.c.bf16 %v2067_v2, %v2066_v29  ;;  %v5960_v2 = vshrl.u32 %v1538_v43, 7 }
 0x296   : > { %2096 = vmatpush.bf16.xpose.msra.mxu0 %v2088_v57  ;;  %v5962_v57 = vmul.u32 4, %v1548_v30 }
 0x297   : > { %v1673_v22 = vpop.permute.xlu0 %1672  ;;  %v1540_v38 = vadd.s32 8, %v5960_v2 }
 0x298   : > { %v2047_v21 = vpop.permute.xlu1 %2046  ;;  %v1684_v27 = vmul.f32 %v1673_v22, %v1530_v0  ;;  %vm1550_vm3 = vcmp.lt.s32.totalorder %v5960_v2, %v5962_v57 }
 0x299   : > { %v2060_v56 = vmul.f32 %v2047_v21, %v1528_v25  ;;  %v2053_v7 = vpop.permute.xlu2 %2052  ;;  %vm1551_vm5 = vcmp.lt.s32.totalorder %v1540_v38, %v5962_v57 }
 0x29a   : > { %v1692_v39 = vadd.f32 %v1684_v27, %v1660_v33  ;;  %v2063_v42 = vmul.f32 %v2053_v7, %v1531_v16  ;;  %v1559_v61 = vsel %vm1551_vm5, -1e+30, %v5140_v31  ;;  %v1541_v33 = vadd.s32 16, %v5960_v2 }
 0x29b   : > { %v2068_v26 = vadd.f32 %v2060_v56, %v2036_v40 }
 0x29c   : > { %v1708_v23 = vpack.c.bf16 %v1693_v55, %v1692_v39  ;;  %v2071_v13 = vadd.f32 %v2063_v42, %v2039_v34  ;;  %vm1552_vm6 = vcmp.lt.s32.totalorder %v1541_v33, %v5962_v57 }
 0x29d   : > { %2097 = vmatmul.bf16.vlgmr.msra.gmra.mxu0 %v2084_v47  ;;  %1724 = vmatmul.bf16.gmra.mxu2 %v1707_v36  ;;  %v1558_v47 = vsel %vm1550_vm3, -1e+30, %v5140_v31  ;;  %v1560_v39 = vsel %vm1552_vm6, -1e+30, %v5140_v31 }
 0x29f   : > { %v2049_v14 = vpop.permute.xlu0 %2048 }
 0x2a0   : > { %v1679_v52 = vpop.permute.xlu1 %1678  ;;  %v2061_v50 = vmul.f32 %v2049_v14, %v5928_v44 }
 0x2a1   : > { %v1687_v35 = vmul.f32 %v1679_v52, %v1533_v49  ;;  %v1543_v52 = vadd.s32 32, %v5960_v2 }
 0x2a2   : > { %v2069_v25 = vadd.f32 %v2061_v50, %v2037_v48 }
 0x2a3   : > { %v1695_v4 = vadd.f32 %v1687_v35, %v1663_v20  ;;  %vm1554_vm8 = vcmp.lt.s32.totalorder %v1543_v52, %v5962_v57 }
 0x2a4   : > { %v2085_v62 = vpack.c.bf16 %v2069_v25, %v2068_v26  ;;  %v1562_v26 = vsel %vm1554_vm8, -1e+30, %v5140_v31 }
 0x2a5   : > { %v1709_v63 = vpack.c.bf16 %v1695_v4, %v1694_v19  ;;  %v1544_v19 = vadd.s32 40, %v5960_v2 }
 0x2a7   : > { %v2051_v9 = vpop.permute.xlu0 %2050  ;;  %vm1555_vm9 = vcmp.lt.s32.totalorder %v1544_v19, %v5962_v57 }
 0x2a8   : > { %v2062_v44 = vmul.f32 %v2051_v9, %v1530_v0  ;;  %v2055_v36 = vpop.permute.xlu1 %2054  ;;  %v1563_v9 = vsel %vm1555_vm9, -1e+30, %v5140_v31 }
 0x2a9   : > { %v2064_v12 = vmul.f32 %v2055_v36, %v1532_v15 }
 0x2aa   : > { %v2070_v5 = vadd.f32 %v2062_v44, %v2038_v6  ;;  %v1545_v6 = vadd.s32 48, %v5960_v2 }
 0x2ab   : > { %v2072_v11 = vadd.f32 %v2064_v12, %v2040_v18  ;;  %v1546_v12 = vadd.s32 56, %v5960_v2 }
 0x2ac   : > { %v2086_v10 = vpack.c.bf16 %v2071_v13, %v2070_v5  ;;  %vm1556_vm10 = vcmp.lt.s32.totalorder %v1545_v6, %v5962_v57 }
 0x2ad   : > { %2102 = vmatmul.bf16.gmra.mxu0 %v2085_v62  ;;  %1729 = vmatmul.bf16.gmra.mxu2 %v1708_v23  ;;  %v1542_v23 = vadd.s32 24, %v5960_v2  ;;  %vm1557_vm11 = vcmp.lt.s32.totalorder %v1546_v12, %v5962_v57 }
 0x2af   : > { %v2057_v24 = vpop.permute.xlu0 %2056  ;;  %vm1553_vm7 = vcmp.lt.s32.totalorder %v1542_v23, %v5962_v57 }
 0x2b0   : > { %v2065_v32 = vmul.f32 %v2057_v24, %v1533_v49  ;;  %v1561_v14 = vsel %vm1553_vm7, -1e+30, %v5140_v31 }
 0x2b2   : > { %v2073_v29 = vadd.f32 %v2065_v32, %v2041_v8  ;;  %v1565_v32 = vsel %vm1557_vm11, -1e+30, %v5140_v31 }
 0x2b4   : > { %v2087_v16 = vpack.c.bf16 %v2073_v29, %v2072_v11 }
 0x2bd   : > { %2107 = vmatmul.bf16.gmra.mxu0 %v2086_v10  ;;  %1734 = vmatmul.bf16.gmra.mxu2 %v1709_v63  ;;  %v1564_v10 = vsel %vm1556_vm10, -1e+30, %v5140_v31 }
 0x2cd   : > { %2112 = vmatmul.bf16.gmra.mxu0 %v2087_v16 }
 0x310   : > { %v1720_v0 = vpop.f32.mrf.mxu2 }
 0x311   : > { %v5972_v53 = vadd.f32 %v1720_v0, %v1558_v47 }
 0x313   : > { %v1741_v22 = vsel %vm1740_vm4, %v5972_v53, -inf }
 0x314   : > { %1742 = vmax.xlane.f32.xlu2 %v1741_v22 }
 0x318   : > { %v1722_v27 = vpop.f32.mrf.mxu2 }
 0x319   : > { %v5979_v17 = vadd.f32 %v1722_v27, %v1559_v61 }
 0x31a   : > { %v2098_v21 = vpop.f32.mrf.mxu0 }
 0x31b   : > { %v1744_v55 = vsel %vm1740_vm4, %v5979_v17, -inf  ;;  %v5985_v15 = vadd.f32 %v2098_v21, %v1558_v47 }
 0x31c   : > { %1745 = vmax.xlane.f32.xlu1 %v1744_v55 }
 0x31d   : > { %v2118_v45 = vsel %vm1740_vm4, %v5985_v15, -inf }
 0x320   : > { %v1725_v46 = vpop.f32.mrf.mxu2 }
 0x321   : > { %v5988_v59 = vadd.f32 %v1725_v46, %v1560_v39 }
 0x322   : > { %v2100_v56 = vpop.f32.mrf.mxu0 }
 0x323   : > { %v1747_v49 = vsel %vm1740_vm4, %v5988_v59, -inf  ;;  %v5996_v40 = vadd.f32 %v2100_v56, %v1559_v61 }
 0x324   : > { %1748 = vmax.xlane.f32.xlu0 %v1747_v49  ;;  %2119 = vmax.xlane.f32.xlu1 %v2118_v45 }
 0x325   : > { %v2121_v35 = vsel %vm1740_vm4, %v5996_v40, -inf }
 0x328   : > { %v1727_v48 = vpop.f32.mrf.mxu2 }
 0x329   : > { %v5999_v50 = vadd.f32 %v1727_v48, %v1561_v14 }
 0x32a   : > { %v2103_v60 = vpop.f32.mrf.mxu0 }
 0x32b   : > { %v1750_v20 = vsel %vm1740_vm4, %v5999_v50, -inf  ;;  %v6007_v25 = vadd.f32 %v2103_v60, %v1560_v39 }
 0x32c   : > { %1751 = vmax.xlane.f32.xlu2 %v1750_v20  ;;  %2122 = vmax.xlane.f32.xlu0 %v2121_v35 }
 0x32d   : > { %v2124_v63 = vsel %vm1740_vm4, %v6007_v25, -inf }
 0x330   : > { %v1730_v7 = vpop.f32.mrf.mxu2 }
 0x331   : > { %v6010_v4 = vadd.f32 %v1730_v7, %v1562_v26 }
 0x332   : > { %v2105_v42 = vpop.f32.mrf.mxu0 }
 0x333   : > { %v1753_v62 = vsel %vm1740_vm4, %v6010_v4, -inf  ;;  %v6018_v34 = vadd.f32 %v2105_v42, %v1561_v14 }
 0x334   : > { %1754 = vmax.xlane.f32.xlu2 %v1753_v62  ;;  %2125 = vmax.xlane.f32.xlu0 %v2124_v63 }
 0x335   : > { %v2127_v5 = vsel %vm1740_vm4, %v6018_v34, -inf }
 0x338   : > { %v1732_v44 = vpop.f32.mrf.mxu2 }
 0x339   : > { %v6021_v13 = vadd.f32 %v1732_v44, %v1563_v9 }
 0x33a   : > { %v2108_v43 = vpop.f32.mrf.mxu0 }
 0x33b   : > { %v1756_v36 = vsel %vm1740_vm4, %v6021_v13, -inf  ;;  %v6040_v30 = vadd.f32 %v2108_v43, %v1562_v26 }
 0x33c   : > { %2128 = vmax.xlane.f32.xlu2 %v2127_v5  ;;  %1757 = vmax.xlane.f32.xlu1 %v1756_v36 }
 0x33d   : > { %v2130_v2 = vsel %vm1740_vm4, %v6040_v30, -inf }
 0x340   : > { %v1735_v24 = vpop.f32.mrf.mxu2 }
 0x341   : > { %v6030_v18 = vadd.f32 %v1735_v24, %v1564_v10 }
 0x342   : > { %v2110_v0 = vpop.f32.mrf.mxu0 }
 0x343   : > { %v1759_v8 = vsel %vm1740_vm4, %v6030_v18, -inf  ;;  %v6050_v27 = vadd.f32 %v2110_v0, %v1563_v9 }
 0x344   : > { %1760 = vmax.xlane.f32.xlu1 %v1759_v8 }
 0x348   : > { %v1737_v11 = vpop.f32.mrf.mxu2 }
 0x349   : > { %v6036_v29 = vadd.f32 %v1737_v11, %v1565_v32 }
 0x34a   : > { %v2113_v23 = vpop.f32.mrf.mxu0 }
 0x34b   : > { %v1762_v16 = vsel %vm1740_vm4, %v6036_v29, -inf  ;;  %v6059_v45 = vadd.f32 %v2113_v23, %v1564_v10 }
 0x34c   : > { %1763 = vmax.xlane.f32.xlu0 %v1762_v16 }
 0x34d   : > { %v2136_v19 = vsel %vm1740_vm4, %v6059_v45, -inf }
 0x352   : > { %v2115_v62 = vpop.f32.mrf.mxu0 }
 0x353   : > { %v6070_v63 = vadd.f32 %v2115_v62, %v1565_v32 }
 0x354   : > { %2131 = vmax.xlane.f32.xlu0 %v2130_v2 }
 0x355   : > { %v2139_v12 = vsel %vm1740_vm4, %v6070_v63, -inf }
 0x387   : > { %v1743_v47 = vpop.xlane.xlu2 %1742 }
 0x388   : > { %v1765_v57 = vsub.f32 %v5972_v53, %v1743_v47 }
 0x38a   : > { %v1773_v38 = vmul.f32 1.442695, %v1765_v57 }
 0x38c   : > { %4720 = vpow2.f32 %v1773_v38 }
 0x38f   : > { %v1746_v31 = vpop.xlane.xlu1 %1745 }
 0x390   : > { %v1766_v22 = vsub.f32 %v5979_v17, %v1746_v31  ;;  %v2133_v17 = vsel %vm1740_vm4, %v6050_v27, -inf }
 0x392   : > { %v6046_v61 = vpop.eup %4720  ;;  %v1775_v21 = vmul.f32 1.442695, %v1766_v22 }
 0x393   : > { %v1789_v33 = vsel %vm1740_vm4, %v6046_v61, 0.0 }
 0x394   : > { %4722 = vpow2.f32 %v1775_v21  ;;  %1790 = vadd.xlane.f32.xlu2 %v1789_v33 }
 0x397   : > { %v1749_v55 = vpop.xlane.xlu0 %1748  ;;  %v2120_v49 = vpop.xlane.xlu1 %2119 }
 0x398   : > { %v1767_v39 = vsub.f32 %v5988_v59, %v1749_v55  ;;  %v2142_v20 = vsub.f32 %v5985_v15, %v2120_v49 }
 0x39a   : > { %v6053_v53 = vpop.eup %4722  ;;  %v1777_v46 = vmul.f32 1.442695, %v1767_v39 }
 0x39b   : > { %v1792_v56 = vsel %vm1740_vm4, %v6053_v53, 0.0 }
 0x39c   : > { %4724 = vpow2.f32 %v1777_v46  ;;  %2134 = vmax.xlane.f32.xlu2 %v2133_v17  ;;  %1793 = vadd.xlane.f32.xlu1 %v1792_v56 }
 0x39f   : > { %v1752_v14 = vpop.xlane.xlu2 %1751  ;;  %v2123_v52 = vpop.xlane.xlu0 %2122 }
 0x3a0   : > { %v1768_v59 = vsub.f32 %v5999_v50, %v1752_v14  ;;  %v2143_v48 = vsub.f32 %v5996_v40, %v2123_v52  ;;  %v2150_v50 = vmul.f32 1.442695, %v2142_v20 }
 0x3a2   : > { %v6063_v60 = vpop.eup %4724  ;;  %v1779_v35 = vmul.f32 1.442695, %v1768_v59  ;;  %v2152_v26 = vmul.f32 1.442695, %v2143_v48 }
 0x3a3   : > { %v1795_v7 = vsel %vm1740_vm4, %v6063_v60, 0.0 }
 0x3a4   : > { %4726 = vpow2.f32 %v1779_v35  ;;  %2137 = vmax.xlane.f32.xlu2 %v2136_v19  ;;  %1796 = vadd.xlane.f32.xlu1 %v1795_v7 }
 0x3a5   : > { %4728 = vpow2.f32 %v2152_v26 }
 0x3a6   : > { %4730 = vpow2.f32 %v2150_v50 }
 0x3a7   : > { %v1755_v40 = vpop.xlane.xlu2 %1754  ;;  %v2126_v42 = vpop.xlane.xlu0 %2125 }
 0x3a8   : > { %v1769_v15 = vsub.f32 %v6010_v4, %v1755_v40  ;;  %v2144_v9 = vsub.f32 %v6007_v25, %v2126_v42 }
 0x3aa   : > { %v6074_v6 = vpop.eup %4726  ;;  %v1781_v44 = vmul.f32 1.442695, %v1769_v15  ;;  %v2154_v5 = vmul.f32 1.442695, %v2144_v9 }
 0x3ab   : > { %v6076_v36 = vpop.eup %4728  ;;  %v1798_v10 = vsel %vm1740_vm4, %v6074_v6, 0.0 }
 0x3ac   : > { %4732 = vpow2.f32 %v1781_v44  ;;  %1799 = vadd.xlane.f32.xlu0 %v1798_v10  ;;  %v2169_v4 = vsel %vm1740_vm4, %v6076_v36, 0.0  ;;  %2140 = vmax.xlane.f32.xlu1 %v2139_v12  ;;  %v6084_v8 = vpop.eup %4730 }
 0x3ad   : > { %4734 = vpow2.f32 %v2154_v5  ;;  %2170 = vadd.xlane.f32.xlu2 %v2169_v4  ;;  %v2166_v38 = vsel %vm1740_vm4, %v6084_v8, 0.0 }
 0x3af   : > { %v2129_v25 = vpop.xlane.xlu2 %2128  ;;  %v1758_v24 = vpop.xlane.xlu1 %1757 }
 0x3b0   : > { %v2145_v32 = vsub.f32 %v6018_v34, %v2129_v25  ;;  %v1770_v11 = vsub.f32 %v6021_v13, %v1758_v24 }
 0x3b2   : > { %v6088_v16 = vpop.eup %4732  ;;  %v2156_v43 = vmul.f32 1.442695, %v2145_v32  ;;  %v1783_v2 = vmul.f32 1.442695, %v1770_v11 }
 0x3b3   : > { %v6090_v47 = vpop.eup %4734  ;;  %v1801_v57 = vsel %vm1740_vm4, %v6088_v16, 0.0 }
 0x3b4   : > { %4736 = vpow2.f32 %v2156_v43  ;;  %v2172_v31 = vsel %vm1740_vm4, %v6090_v47, 0.0  ;;  %1802 = vadd.xlane.f32.xlu1 %v1801_v57  ;;  %2167 = vadd.xlane.f32.xlu0 %v2166_v38 }
 0x3b5   : > { %4738 = vpow2.f32 %v1783_v2  ;;  %2173 = vadd.xlane.f32.xlu2 %v2172_v31 }
 0x3b7   : > { %v1761_v34 = vpop.xlane.xlu1 %1760 }
 0x3b8   : > { %v1771_v13 = vsub.f32 %v6030_v18, %v1761_v34 }
 0x3ba   : > { %v6099_v0 = vpop.eup %4736  ;;  %v1785_v22 = vmul.f32 1.442695, %v1771_v13 }
 0x3bb   : > { %v6101_v21 = vpop.eup %4738  ;;  %v2175_v33 = vsel %vm1740_vm4, %v6099_v0, 0.0 }
 0x3bc   : > { %4740 = vpow2.f32 %v1785_v22  ;;  %2176 = vadd.xlane.f32.xlu1 %v2175_v33  ;;  %v1804_v55 = vsel %vm1740_vm4, %v6101_v21, 0.0 }
 0x3bd   : > { %1805 = vadd.xlane.f32.xlu0 %v1804_v55 }
 0x3bf   : > { %v1764_v39 = vpop.xlane.xlu0 %1763 }
 0x3c0   : > { %v1772_v23 = vsub.f32 %v6036_v29, %v1764_v39 }
 0x3c2   : > { %v6108_v46 = vpop.eup %4740  ;;  %v1787_v18 = vmul.f32 1.442695, %v1772_v23 }
 0x3c3   : > { %v1807_v17 = vsel %vm1740_vm4, %v6108_v46, 0.0 }
 0x3c4   : > { %4742 = vpow2.f32 %v1787_v18 }
 0x3c5   : > { %1808 = vadd.xlane.f32.xlu0 %v1807_v17 }
 0x3c7   : > { %v2132_v56 = vpop.xlane.xlu0 %2131 }
 0x3c8   : > { %v2146_v49 = vsub.f32 %v6040_v30, %v2132_v56 }
 0x3ca   : > { %v6113_v14 = vpop.eup %4742  ;;  %v2158_v52 = vmul.f32 1.442695, %v2146_v49 }
 0x3cb   : > { %v1810_v59 = vsel %vm1740_vm4, %v6113_v14, 0.0 }
 0x3cc   : > { %4744 = vpow2.f32 %v2158_v52  ;;  %1811 = vadd.xlane.f32.xlu2 %v1810_v59 }
 0x3d2   : > { %v6117_v29 = vpop.eup %4744 }
 0x3d3   : > { %v2178_v48 = vsel %vm1740_vm4, %v6117_v29, 0.0 }
 0x3d4   : > { %2179 = vadd.xlane.f32.xlu1 %v2178_v48 }
 0x407   : > { %v1791_v20 = vpop.xlane.xlu2 %1790 }
 0x408   : > { %4746 = vrcp.f32 %v1791_v20 }
 0x40e   : > { %v4747_v7 = vpop.eup %4746 }
 0x40f   : > { %v2135_v35 = vpop.xlane.xlu2 %2134  ;;  %v1794_v26 = vpop.xlane.xlu1 %1793  ;;  %v1821_v50 = vmul.f32 %v4747_v7, %v6046_v61 }
 0x410   : > { %v2147_v30 = vsub.f32 %v6050_v27, %v2135_v35  ;;  %4748 = vrcp.f32 %v1794_v26 }
 0x412   : > { %v2160_v19 = vmul.f32 1.442695, %v2147_v30 }
 0x414   : > { %4750 = vpow2.f32 %v2160_v19 }
 0x416   : > { %v4749_v62 = vpop.eup %4748 }
 0x417   : > { %v1822_v40 = vmul.f32 %v4749_v62, %v6053_v53  ;;  %v2138_v42 = vpop.xlane.xlu2 %2137  ;;  %v1797_v15 = vpop.xlane.xlu1 %1796 }
 0x418   : > { %v2148_v9 = vsub.f32 %v6059_v45, %v2138_v42 }
 0x419   : > { %v1829_v44 = vpack.c.bf16 %v1822_v40, %v1821_v50 }
 0x41a   : > { %v6125_v5 = vpop.eup %4750  ;;  %v2162_v10 = vmul.f32 1.442695, %v2148_v9  ;;  %v5141_v9 = vmov 1935823168  }
 0x41b   : > { %4048 = vmatmul.msk.bf16.vlgmr.msra.gmra.mxu3 %vm1740_vm4, %v1829_v44  ;;  %v2181_v27 = vsel %vm1740_vm4, %v6125_v5, 0.0  ;;  %v1876_v44 = vunpack.c.l.s4 %v5141_v9 }
 0x41c   : > { %4752 = vpow2.f32 %v2162_v10  ;;  %2182 = vadd.xlane.f32.xlu0 %v2181_v27 }
 0x41d   : > { %4754 = vrcp.f32 %v1797_v15 }
 0x41f   : > { %v1800_v12 = vpop.xlane.xlu0 %1799  ;;  %v2141_v61 = vpop.xlane.xlu1 %2140 }
 0x420   : > { %4756 = vrcp.f32 %v1800_v12  ;;  %v2149_v53 = vsub.f32 %v6070_v63, %v2141_v61  ;;  %v2171_v25 = vpop.xlane.xlu2 %2170 }
 0x422   : > { %v6131_v4 = vpop.eup %4752  ;;  %v2164_v45 = vmul.f32 1.442695, %v2149_v53 }
 0x423   : > { %v2184_v24 = vsel %vm1740_vm4, %v6131_v4, 0.0  ;;  %v4755_v32 = vpop.eup %4754 }
 0x424   : > { %4758 = vpow2.f32 %v2164_v45  ;;  %2185 = vadd.xlane.f32.xlu2 %v2184_v24  ;;  %v1823_v57 = vmul.f32 %v4755_v32, %v6063_v60  ;;  %v6165_v32 = vpop.f32.mrf.mxu1 }
 0x425   : > { %4760 = vrcp.f32 %v2171_v25 }
 0x426   : > { %v4757_v11 = vpop.eup %4756 }
 0x427   : > { %v2168_v43 = vpop.xlane.xlu0 %2167  ;;  %v1803_v2 = vpop.xlane.xlu1 %1802  ;;  %v1824_v38 = vmul.f32 %v4757_v11, %v6074_v6 }
 0x428   : > { %4762 = vrcp.f32 %v2168_v43  ;;  %v2174_v23 = vpop.xlane.xlu2 %2173  ;;  %v4455_v43 = vld [vmem:[#allocation8 + $0x38] sm:$0xff] }
 0x429   : > { %v1830_v63 = vpack.c.bf16 %v1824_v38, %v1823_v57  ;;  %4764 = vrcp.f32 %v1803_v2  ;;  %v4463_v2 = vld [vmem:[#allocation8 + $0x78] sm:$0xff]  ;;  %3263 = vmatpush.bf16.msrb.mxu2 %v4455_v43 }
 0x42a   : > { %v6137_v31 = vpop.eup %4758  ;;  %v4471_v57 = vld [vmem:[#allocation8 + $0xb8] sm:$0xff]  ;;  %3282 = vmatpush.bf16.msrb.mxu3 %v4463_v2 }
 0x42b   : > { %4049 = vmatmul.msk.bf16.gmra.mxu3 %vm1740_vm4, %v1830_v63  ;;  %v2187_v34 = vsel %vm1740_vm4, %v6137_v31, 0.0  ;;  %v4761_v13 = vpop.eup %4760  ;;  %v4479_v38 = vld [vmem:[#allocation8 + $0xf8] sm:$0xff]  ;;  %v4454_v63 = vld [vmem:[#allocation8 + $0x30] sm:$0xff]  ;;  %3301 = vmatpush.bf16.msrb.mxu0 %v4471_v57 }
 0x42c   : > { %2188 = vadd.xlane.f32.xlu1 %v2187_v34  ;;  %v2199_v33 = vmul.f32 %v4761_v13, %v6076_v36  ;;  %v4462_v34 = vld [vmem:[#allocation8 + $0x70] sm:$0xff]  ;;  %3320 = vmatpush.bf16.msrb.mxu1 %v4479_v38 }
 0x42d   : > { %v4470_v13 = vld [vmem:[#allocation8 + $0xb0] sm:$0xff]  ;;  %3264 = vmatpush.bf16.msrb.mxu2 %v4454_v63 }
 0x42e   : > { %v4763_v22 = vpop.eup %4762  ;;  %3283 = vmatpush.bf16.msrb.mxu3 %v4462_v34 }
 0x42f   : > { %v2198_v55 = vmul.f32 %v4763_v22, %v6084_v8  ;;  %v2177_v6 = vpop.xlane.xlu1 %2176  ;;  %v4765_v18 = vpop.eup %4764  ;;  %3302 = vmatpush.bf16.msrb.mxu0 %v4470_v13 }
 0x430   : > { %v1806_v60 = vpop.xlane.xlu0 %1805  ;;  %v1825_v56 = vmul.f32 %v4765_v18, %v6088_v16  ;;  %v4460_v18 = vld [vmem:[#allocation8 + $0x60] sm:$0xff] }
 0x431   : > { %v2206_v39 = vpack.c.bf16 %v2199_v33, %v2198_v55  ;;  %4766 = vrcp.f32 %v1806_v60  ;;  %v4453_v55 = vld [vmem:[#allocation8 + $0x28] sm:$0xff] }
 0x432   : > { %4768 = vrcp.f32 %v2177_v6  ;;  %v4461_v60 = vld [vmem:[#allocation8 + $0x68] sm:$0xff]  ;;  %3265 = vmatpush.bf16.msrb.mxu2 %v4453_v55 }
 0x433   : > { %4052 = vmatmul.msk.bf16.vlgmr.msra.gmra.mxu1 %vm1740_vm4, %v2206_v39  ;;  %4770 = vrcp.f32 %v2174_v23  ;;  %v4469_v39 = vld [vmem:[#allocation8 + $0xa8] sm:$0xff]  ;;  %3284 = vmatpush.bf16.msrb.mxu3 %v4461_v60  ;;  %v4452_v23 = vld [vmem:[#allocation8 + $0x20] sm:$0xff] }
 0x434   : > { %v4477_v6 = vld [vmem:[#allocation8 + $0xe8] sm:$0xff]  ;;  %3303 = vmatpush.bf16.msrb.mxu0 %v4469_v39 }
 0x436   : > { %3266 = vmatpush.bf16.msrb.mxu2 %v4452_v23 }
 0x437   : > { %v4767_v17 = vpop.eup %4766  ;;  %3285 = vmatpush.bf16.msrb.mxu3 %v4460_v18 }
 0x438   : > { %v1826_v49 = vmul.f32 %v4767_v17, %v6101_v21  ;;  %v4769_v52 = vpop.eup %4768  ;;  %v1809_v59 = vpop.xlane.xlu0 %1808  ;;  %v4468_v17 = vld [vmem:[#allocation8 + $0xa0] sm:$0xff] }
 0x439   : > { %v4771_v8 = vpop.eup %4770  ;;  %v2201_v48 = vmul.f32 %v4769_v52, %v6099_v0  ;;  %4772 = vrcp.f32 %v1809_v59  ;;  %3304 = vmatpush.bf16.msrb.mxu0 %v4468_v17  ;;  %v4451_v59 = vld [vmem:[#allocation8 + $0x18] sm:$0xff] }
 0x43a   : > { %v1831_v36 = vpack.c.bf16 %v1826_v49, %v1825_v56  ;;  %v2200_v35 = vmul.f32 %v4771_v8, %v6090_v47  ;;  %v6154_v47 = vpop.f32.mrf.mxu3  ;;  %v4476_v56 = vld [vmem:[#allocation8 + $0xe0] sm:$0xff]  ;;  %v4459_v8 = vld [vmem:[#allocation8 + $0x58] sm:$0xff]  ;;  %3267 = vmatpush.bf16.msrb.mxu2 %v4451_v59 }
 0x43b   : > { %3286 = vmatpush.bf16.msrb.mxu3 %v4459_v8  ;;  %v4062_v8 = vmul.f32 -1.442695, %v5968_v3 }
 0x43c   : > { %4050 = vmatmul.msk.bf16.gmra.mxu3 %vm1740_vm4, %v1831_v36  ;;  %v2207_v26 = vpack.c.bf16 %v2201_v48, %v2200_v35  ;;  %v4467_v48 = vld [vmem:[#allocation8 + $0x98] sm:$0xff]  ;;  %v4450_v35 = vld [vmem:[#allocation8 + $0x10] sm:$0xff] }
 0x43d   : > { %3305 = vmatpush.bf16.msrb.mxu0 %v4467_v48  ;;  %v4063_v48 = vmul.f32 -1.442695, %v6165_v32 }
 0x43e   : > { %3268 = vmatpush.bf16.msrb.mxu2 %v4450_v35  ;;  %v4495_v35 = vld [vmem:[#allocation8 + $0x178] sm:$0xff] }
 0x43f   : > { %v1812_v20 = vpop.xlane.xlu2 %1811  ;;  %v4773_v30 = vpop.eup %4772 }
 0x440   : > { %4774 = vrcp.f32 %v1812_v20  ;;  %v1827_v21 = vmul.f32 %v4773_v30, %v6108_v46  ;;  %v4475_v20 = vld [vmem:[#allocation8 + $0xd8] sm:$0xff]  ;;  %v4466_v30 = vld [vmem:[#allocation8 + $0x90] sm:$0xff] }
 0x441   : > { %3306 = vmatpush.bf16.msrb.mxu0 %v4466_v30  ;;  %v4511_v30 = vld [vmem:[#allocation8 + $0x1f8] sm:$0xff] }
 0x443   : > { %4053 = vmatmul.msk.bf16.gmra.mxu1 %vm1740_vm4, %v2207_v26  ;;  %v4458_v26 = vld [vmem:[#allocation8 + $0x50] sm:$0xff] }
 0x444   : > { %3287 = vmatpush.bf16.msrb.mxu3 %v4458_v26  ;;  %v4503_v26 = vld [vmem:[#allocation8 + $0x1b8] sm:$0xff] }
 0x446   : > { %v4775_v16 = vpop.eup %4774 }
 0x447   : > { %v1828_v19 = vmul.f32 %v4775_v16, %v6113_v14  ;;  %v2180_v62 = vpop.xlane.xlu1 %2179  ;;  %v6159_v14 = vunpack.c.0.s8 %v1876_v44  ;;  %v4474_v16 = vld [vmem:[#allocation8 + $0xd0] sm:$0xff] }
 0x448   : > { %4776 = vrcp.f32 %v2180_v62  ;;  %v4465_v62 = vld [vmem:[#allocation8 + $0x88] sm:$0xff] }
 0x449   : > { %v1832_v7 = vpack.c.bf16 %v1828_v19, %v1827_v21  ;;  %v4449_v21 = vld [vmem:[#allocation8 + $0x8] sm:$0xff]  ;;  %3307 = vmatpush.bf16.msrb.mxu0 %v4465_v62 }
 0x44a   : > { %3269 = vmatpush.bf16.msrb.mxu2 %v4449_v21  ;;  %v4494_v21 = vld [vmem:[#allocation8 + $0x170] sm:$0xff] }
 0x44c   : > { %4051 = vmatmul.msk.bf16.gmra.mxu3 %vm1740_vm4, %v1832_v7  ;;  %v4457_v7 = vld [vmem:[#allocation8 + $0x48] sm:$0xff] }
 0x44d   : > { %3288 = vmatpush.bf16.msrb.mxu3 %v4457_v7  ;;  %v4510_v7 = vld [vmem:[#allocation8 + $0x1f0] sm:$0xff] }
 0x44e   : > { %v4777_v50 = vpop.eup %4776 }
 0x44f   : > { %v2202_v42 = vmul.f32 %v4777_v50, %v6117_v29 }
 0x48f   : > { %v2183_v0 = vpop.xlane.xlu0 %2182 }
 0x490   : > { %4778 = vrcp.f32 %v2183_v0  ;;  %v4473_v0 = vld [vmem:[#allocation8 + $0xc8] sm:$0xff] }
 0x496   : > { %v4779_v40 = vpop.eup %4778 }
 0x497   : > { %v2203_v15 = vmul.f32 %v4779_v40, %v6125_v5  ;;  %v2186_v10 = vpop.xlane.xlu2 %2185 }
 0x498   : > { %4780 = vrcp.f32 %v2186_v10 }
 0x499   : > { %v2208_v46 = vpack.c.bf16 %v2203_v15, %v2202_v42 }
 0x49b   : > { %4054 = vmatmul.msk.bf16.gmra.mxu1 %vm1740_vm4, %v2208_v46 }
 0x49e   : > { %v1855_v27 = vpop.f32.mrf.mxu3  ;;  %v4781_v53 = vpop.eup %4780 }
 0x49f   : > { %v1878_v12 = vperm.slane %v1855_v27, %v6159_v14  ;;  %v2189_v61 = vpop.xlane.xlu1 %2188  ;;  %v2204_v25 = vmul.f32 %v4781_v53, %v6131_v4  ;;  %v4478_v4 = vld [vmem:[#allocation8 + $0xf0] sm:$0xff]  ;;  %v4464_v53 = vld [vmem:[#allocation8 + $0x80] sm:$0xff] }
 0x4a0   : > { %4782 = vrcp.f32 %v2189_v61  ;;  %3321 = vmatpush.bf16.msrb.mxu1 %v4478_v4  ;;  %v4456_v61 = vld [vmem:[#allocation8 + $0x40] sm:$0xff]  ;;  %3308 = vmatpush.bf16.msrb.mxu0 %v4464_v53  ;;  %v4071_v53 = vmul.f32 -1.442695, %v6154_v47 }
 0x4a1   : > { %1915 = vst [vmem:[#allocation1] ss:$4 sm:$0xff] %v1878_v12  ;;  %v4448_v12 = vld [vmem:[#allocation8] sm:$0xff]  ;;  %3289 = vmatpush.bf16.msrb.mxu3 %v4456_v61  ;;  %4784 = vpow2.f32 %v4062_v8 }
 0x4a2   : > { %3270 = vmatpush.bf16.msrb.mxu2 %v4448_v12  ;;  %4786 = vpow2.f32 %v4063_v48  ;;  %v4484_v12 = vld [vmem:[#allocation8 + $0x120] sm:$0xff] }
 0x4a3   : > { %v4492_v61 = vld [vmem:[#allocation8 + $0x160] sm:$0xff] }
 0x4a4   : > { %3322 = vmatpush.bf16.msrb.mxu1 %v4477_v6  ;;  %3377 = vmatpush.bf16.msra.mxu0 %v4503_v26  ;;  %v4488_v8 = vld [vmem:[#allocation8 + $0x140] sm:$0xff] }
 0x4a5   : > { %3358 = vmatpush.bf16.msra.mxu3 %v4495_v35  ;;  %v4496_v48 = vld [vmem:[#allocation8 + $0x180] sm:$0xff] }
 0x4a6   : > { %v4783_v45 = vpop.eup %4782  ;;  %v1857_v29 = vpop.f32.mrf.mxu3 }
 0x4a7   : > { %v1882_v5 = vperm.slane %v1857_v29, %v6159_v14  ;;  %v2205_v24 = vmul.f32 %v4783_v45, %v6137_v31  ;;  %v4472_v45 = vld [vmem:[#allocation8 + $0xc0] sm:$0xff]  ;;  %v4785_v62 = vpop.eup %4784 }
 0x4a8   : > { %3323 = vmatpush.bf16.msrb.mxu1 %v4476_v56 }
 0x4a9   : > { %1917 = vst [vmem:[#allocation1 + $0x1] ss:$4 sm:$0xff] %v1882_v5  ;;  %v2209_v11 = vpack.c.bf16 %v2205_v24, %v2204_v25  ;;  %3359 = vmatpush.bf16.msra.mxu3 %v4494_v21 }
 0x4ab   : > { %4055 = vmatmul.msk.bf16.gmra.mxu1 %vm1740_vm4, %v2209_v11 }
 0x4ac   : > { %3324 = vmatpush.bf16.msrb.mxu1 %v4475_v20  ;;  %v4487_v20 = vld [vmem:[#allocation8 + $0x138] sm:$0xff] }
 0x4ad   : > { %3339 = vmatpush.bf16.msra.mxu2 %v4487_v20  ;;  %v4504_v20 = vld [vmem:[#allocation8 + $0x1c0] sm:$0xff] }
 0x4ae   : > { %v1860_v22 = vpop.f32.mrf.mxu3 }
 0x4af   : > { %v1886_v31 = vperm.slane %v1860_v22, %v6159_v14 }
 0x4b0   : > { %v2232_v33 = vpop.f32.mrf.mxu1  ;;  %3325 = vmatpush.bf16.msrb.mxu1 %v4474_v16  ;;  %v4486_v16 = vld [vmem:[#allocation8 + $0x130] sm:$0xff] }
 0x4b1   : > { %1919 = vst [vmem:[#allocation1 + $0x2] ss:$4 sm:$0xff] %v1886_v31  ;;  %v2255_v9 = vperm.slane %v2232_v33, %v6159_v14  ;;  %3340 = vmatpush.bf16.msra.mxu2 %v4486_v16 }
 0x4b4   : > { %3326 = vmatpush.bf16.msrb.mxu1 %v4473_v0 }
 0x4b6   : > { %v1862_v49 = vpop.f32.mrf.mxu3 }
 0x4b7   : > { %v1890_v52 = vperm.slane %v1862_v49, %v6159_v14 }
 0x4b8   : > { %v2234_v36 = vpop.f32.mrf.mxu1  ;;  %3327 = vmatpush.bf16.msrb.mxu1 %v4472_v45  ;;  %v4500_v45 = vld [vmem:[#allocation8 + $0x1a0] sm:$0xff] }
 0x4b9   : > { %1921 = vst [vmem:[#allocation1 + $0x3] ss:$4 sm:$0xff] %v1890_v52  ;;  %v2259_v27 = vperm.slane %v2234_v36, %v6159_v14 }
 0x4bc   : > { %3396 = vmatpush.bf16.msra.mxu1 %v4511_v30 }
 0x4bf   : > { %v1865_v19 = vpop.f32.mrf.mxu3 }
 0x4c0   : > { %v1894_v50 = vperm.slane %v1865_v19, %v6159_v14  ;;  %v2237_v40 = vpop.f32.mrf.mxu1  ;;  %v1930_v42 = vld.sshfl [vmem:[#allocation1] sm:$0xff pattern:$0x73625140]  ;;  %v1931_v15 = vld.sshfl [vmem:[#allocation1 + $0x8] sm:$0xff pattern:$0x73625140]  ;;  %3397 = vmatpush.bf16.msra.mxu1 %v4510_v7 }
 0x4c1   : > { %v2263_v44 = vperm.slane %v2237_v40, %v6159_v14  ;;  %v1932_v46 = vld.sshfl [vmem:[#allocation1 + $0x10] sm:$0xff pattern:$0x73625140]  ;;  %v1933_v10 = vld.sshfl [vmem:[#allocation1 + $0x18] sm:$0xff pattern:$0x73625140]  ;;  %v1946_v38 = vpack.c.bf16 %v1931_v15, %v1930_v42 }
 0x4c2   : > { %1923 = vst [vmem:[#allocation1 + $0x20] ss:$4 sm:$0xff] %v1894_v50  ;;  %v1947_v13 = vpack.c.bf16 %v1933_v10, %v1932_v46  ;;  %v4502_v19 = vld [vmem:[#allocation8 + $0x1b0] sm:$0xff]  ;;  %v4787_v50 = vpop.eup %4786  ;;  %v4485_v42 = vld [vmem:[#allocation8 + $0x128] sm:$0xff]  ;;  %v6181_v46 = vadd.f32 1.0, %v4785_v62 }
 0x4c3   : > { %2292 = vst [vmem:[#allocation1] ss:$4 sm:$0xff] %v2255_v9  ;;  %v2331_v55 = vunpack.c.l.b16 %v1946_v38  ;;  %v2332_v39 = vunpack.c.h.b16 %v1946_v38  ;;  %v4493_v15 = vld [vmem:[#allocation8 + $0x168] sm:$0xff]  ;;  %3378 = vmatpush.bf16.msra.mxu0 %v4502_v19  ;;  %v6183_v10 = vadd.f32 1.0, %v4787_v50  ;;  %3341 = vmatpush.bf16.msra.mxu2 %v4485_v42  ;;  %v4482_v38 = vld [vmem:[#allocation8 + $0x110] sm:$0xff] }
 0x4c4   : > { %2294 = vst [vmem:[#allocation1 + $0x1] ss:$4 sm:$0xff] %v2259_v27  ;;  %v2333_v23 = vunpack.c.l.b16 %v1947_v13  ;;  %v2334_v17 = vunpack.c.h.b16 %v1947_v13  ;;  %v4501_v9 = vld [vmem:[#allocation8 + $0x1a8] sm:$0xff]  ;;  %v4070_v27 = vmul.f32 -1.442695, %v5964_v41  ;;  %3360 = vmatpush.bf16.msra.mxu3 %v4493_v15  ;;  %4788 = vrcp.f32 %v6181_v46  ;;  %v4498_v13 = vld [vmem:[#allocation8 + $0x190] sm:$0xff] }
 0x4c5   : > { %2296 = vst [vmem:[#allocation1 + $0x2] ss:$4 sm:$0xff] %v2263_v44  ;;  %v4509_v44 = vld [vmem:[#allocation8 + $0x1e8] sm:$0xff]  ;;  %4790 = vrcp.f32 %v6183_v10  ;;  %v2530_v26 = vand.u32 2147483647, %v6181_v46  ;;  %v2547_v42 = vand.u32 2147483648, %v6183_v10  ;;  %vm2526_vm15 = vweird.f32 %v6181_v46 }
 0x4c6   : > { %3398 = vmatpush.bf16.msra.mxu1 %v4509_v44  ;;  %4792 = vpow2.f32 %v4070_v27  ;;  %vm2541_vm1 = vweird.f32 %v6183_v10 }
 0x4c7   : > { %v1867_v29 = vpop.f32.mrf.mxu3  ;;  %3379 = vmatpush.bf16.msra.mxu0 %v4501_v9  ;;  %3342 = vmatpush.bf16.msra.mxu2 %v4484_v12  ;;  %4794 = vpow2.f32 %v4071_v53  ;;  %vm6213_vm13 = vcmp.eq.f32.partialorder %v2530_v26, 8.507059e+37 }
 0x4c8   : > { %v1898_v5 = vperm.slane %v1867_v29, %v6159_v14  ;;  %v2239_v25 = vpop.f32.mrf.mxu1  ;;  %v4508_v29 = vld [vmem:[#allocation8 + $0x1e0] sm:$0xff]  ;;  %3361 = vmatpush.bf16.msra.mxu3 %v4492_v61 }
 0x4c9   : > { %v2267_v24 = vperm.slane %v2239_v25, %v6159_v14 }
 0x4ca   : > { %1925 = vst [vmem:[#allocation1 + $0x21] ss:$4 sm:$0xff] %v1898_v5  ;;  %3399 = vmatpush.bf16.msra.mxu1 %v4508_v29 }
 0x4cb   : > { %2298 = vst [vmem:[#allocation1 + $0x3] ss:$4 sm:$0xff] %v2267_v24  ;;  %3380 = vmatpush.bf16.msra.mxu0 %v4500_v45  ;;  %v4483_v24 = vld [vmem:[#allocation8 + $0x118] sm:$0xff] }
 0x4cc   : > { %3343 = vmatpush.bf16.msra.mxu2 %v4483_v24 }
 0x4cf   : > { %v1870_v11 = vpop.f32.mrf.mxu3 }
 0x4d0   : > { %v1902_v43 = vperm.slane %v1870_v11, %v6159_v14  ;;  %v4491_v11 = vld [vmem:[#allocation8 + $0x158] sm:$0xff]  ;;  %3344 = vmatpush.bf16.msra.mxu2 %v4482_v38 }
 0x4d1   : > { %3362 = vmatpush.bf16.msra.mxu3 %v4491_v11 }
 0x4d2   : > { %1927 = vst [vmem:[#allocation1 + $0x22] ss:$4 sm:$0xff] %v1902_v43  ;;  %v4499_v43 = vld [vmem:[#allocation8 + $0x198] sm:$0xff]  ;;  %v2309_v27 = vld.sshfl [vmem:[#allocation1 + $0x10] sm:$0xff pattern:$0x73625140] }
 0x4d3   : > { %3381 = vmatpush.bf16.msra.mxu0 %v4499_v43  ;;  %v2307_v15 = vld.sshfl [vmem:[#allocation1] sm:$0xff pattern:$0x73625140]  ;;  %v2308_v9 = vld.sshfl [vmem:[#allocation1 + $0x8] sm:$0xff pattern:$0x73625140] }
 0x4d4   : > { %v2310_v12 = vld.sshfl [vmem:[#allocation1 + $0x18] sm:$0xff pattern:$0x73625140] }
 0x4d5   : > { %v2324_v11 = vpack.c.bf16 %v2310_v12, %v2309_v27 }
 0x4d7   : > { %v1872_v2 = vpop.f32.mrf.mxu3  ;;  %3382 = vmatpush.bf16.msra.mxu0 %v4498_v13 }
 0x4d8   : > { %v1906_v57 = vperm.slane %v1872_v2, %v6159_v14  ;;  %v4507_v2 = vld [vmem:[#allocation8 + $0x1d8] sm:$0xff] }
 0x4d9   : > { %3400 = vmatpush.bf16.msra.mxu1 %v4507_v2 }
 0x4da   : > { %1929 = vst [vmem:[#allocation1 + $0x23] ss:$4 sm:$0xff] %v1906_v57  ;;  %v6190_v57 = vpop.eup %4788 }
 0x4db   : > { %vm2527_vm12 = vweird.f32 %v6190_v57 }
 0x4dc   : > { %vm6225_vm0 = vmor %vm2526_vm15, %vm2527_vm12 }
 0x4e1   : > { %v1934_v63 = vld.sshfl [vmem:[#allocation1 + $0x20] sm:$0xff pattern:$0x73625140]  ;;  %v1935_v34 = vld.sshfl [vmem:[#allocation1 + $0x28] sm:$0xff pattern:$0x73625140] }
 0x4e2   : > { %v1948_v4 = vpack.c.bf16 %v1935_v34, %v1934_v63  ;;  %v1936_v22 = vld.sshfl [vmem:[#allocation1 + $0x30] sm:$0xff pattern:$0x73625140]  ;;  %v1937_v31 = vld.sshfl [vmem:[#allocation1 + $0x38] sm:$0xff pattern:$0x73625140]  ;;  %v6192_v34 = vpop.eup %4790 }
 0x4e3   : > { %v1949_v33 = vpack.c.bf16 %v1937_v31, %v1936_v22  ;;  %v4490_v63 = vld [vmem:[#allocation8 + $0x150] sm:$0xff]  ;;  %v4793_v22 = vpop.eup %4792  ;;  %vm2542_vm14 = vweird.f32 %v6192_v34 }
 0x4e4   : > { %v2335_v60 = vunpack.c.l.b16 %v1948_v4  ;;  %v2336_v6 = vunpack.c.h.b16 %v1948_v4  ;;  %v4506_v4 = vld [vmem:[#allocation8 + $0x1d0] sm:$0xff]  ;;  %v4795_v31 = vpop.eup %4794  ;;  %3363 = vmatpush.bf16.msra.mxu3 %v4490_v63  ;;  %vm2543_vm2 = vmor %vm2541_vm1, %vm2542_vm14 }
 0x4e5   : > { %v2337_v18 = vunpack.c.l.b16 %v1949_v33  ;;  %v2338_v56 = vunpack.c.h.b16 %v1949_v33  ;;  %v2522_v33 = vmul.f32 %v6190_v57, %v6181_v46  ;;  %3401 = vmatpush.bf16.msra.mxu1 %v4506_v4 }
 0x4e6   : > { %v2339_v49 = vpack.c.b16 %v2335_v60, %v2331_v55  ;;  %v2340_v52 = vpack.c.b16 %v2336_v6, %v2332_v39  ;;  %v2537_v60 = vmul.f32 %v6192_v34, %v6183_v10  ;;  %v4481_v6 = vld [vmem:[#allocation8 + $0x108] sm:$0xff] }
 0x4e7   : > { %v2341_v36 = vpack.c.b16 %v2337_v18, %v2333_v23  ;;  %v2342_v59 = vpack.c.b16 %v2338_v56, %v2334_v17  ;;  %v4489_v23 = vld [vmem:[#allocation8 + $0x148] sm:$0xff]  ;;  %v6199_v18 = vadd.f32 1.0, %v4793_v22  ;;  %3345 = vmatpush.bf16.msra.mxu2 %v4481_v6  ;;  %v2354_v6 = vunpack.c.h.b16 %v2324_v11 }
 0x4e8   : > { %3271 = vmatmul.bf16.vlgmr.msrb.gmra.mxu2 %v2339_v49  ;;  %3290 = vmatmul.bf16.vlgmr.msrb.gmra.mxu3 %v2340_v52  ;;  %v4497_v17 = vld [vmem:[#allocation8 + $0x188] sm:$0xff]  ;;  %v6201_v49 = vadd.f32 1.0, %v4795_v31  ;;  %v2523_v52 = vsub.f32 1.0, %v2522_v33 }
 0x4e9   : > { %3309 = vmatmul.bf16.vlgmr.msrb.gmra.mxu0 %v2341_v36  ;;  %3328 = vmatmul.bf16.vlgmr.msrb.gmra.mxu1 %v2342_v59  ;;  %v4505_v56 = vld [vmem:[#allocation8 + $0x1c8] sm:$0xff]  ;;  %v2538_v36 = vsub.f32 1.0, %v2537_v60  ;;  %v4480_v59 = vld [vmem:[#allocation8 + $0x100] sm:$0xff]  ;;  %4796 = vrcp.f32 %v6199_v18  ;;  %v2353_v60 = vunpack.c.l.b16 %v2324_v11  ;;  %vm2646_vm6 = vweird.f32 %v6199_v18 }
 0x4ea   : > { %3364 = vmatpush.bf16.msra.mxu3 %v4489_v23  ;;  %3383 = vmatpush.bf16.msra.mxu0 %v4497_v17  ;;  %4798 = vrcp.f32 %v6201_v49  ;;  %v2524_v35 = vmul.f32 %v6190_v57, %v2523_v52  ;;  %vm2661_vm8 = vweird.f32 %v6201_v49 }
 0x4eb   : > { %3402 = vmatpush.bf16.msra.mxu1 %v4505_v56  ;;  %v2539_v16 = vmul.f32 %v6192_v34, %v2538_v36  ;;  %3346 = vmatpush.bf16.msra.mxu2 %v4480_v59 }
 0x4ec   : > { %v2525_v7 = vadd.f32 %v6190_v57, %v2524_v35  ;;  %v6370_v35 = vld [vmem:[#allocation23_spill] sm:$0xff] }
 0x4ee   : > { %3365 = vmatpush.bf16.msra.mxu3 %v4488_v8  ;;  %3384 = vmatpush.bf16.msra.mxu0 %v4496_v48  ;;  %v2529_v61 = vsel %vm6225_vm0, %v6190_v57, %v2525_v7  ;;  %v2667_v7 = vand.u32 2147483648, %v6201_v49 }
 0x4ef   : > { %3403 = vmatpush.bf16.msra.mxu1 %v4504_v20  ;;  %v6209_v19 = vpop.eup %4796 }
 0x4f0   : > { %v6218_v50 = vpop.eup %4798  ;;  %v2642_v45 = vmul.f32 %v6209_v19, %v6199_v18  ;;  %vm2647_vm4 = vweird.f32 %v6209_v19 }
 0x4f1   : > { %vm2662_vm5 = vweird.f32 %v6218_v50  ;;  %vm2648_vm7 = vmor %vm2646_vm6, %vm2647_vm4 }
 0x4f2   : > { %v2643_v13 = vsub.f32 1.0, %v2642_v45  ;;  %vm2663_vm9 = vmor %vm2661_vm8, %vm2662_vm5 }
 0x4f4   : > { %v2644_v48 = vmul.f32 %v6209_v19, %v2643_v13 }
 0x518   : > { %v2242_v0 = vpop.f32.mrf.mxu1 }
 0x519   : > { %v2271_v40 = vperm.slane %v2242_v0, %v6159_v14  ;;  %v2532_v0 = vand.u32 2147483648, %v6181_v46  ;;  %v2657_v46 = vmul.f32 %v6218_v50, %v6201_v49 }
 0x51b   : > { %2300 = vst [vmem:[#allocation1 + $0x20] ss:$4 sm:$0xff] %v2271_v40  ;;  %v2545_v40 = vand.u32 2147483647, %v6183_v10  ;;  %v2533_v53 = vor.u32 1.1754944e-38, %v2532_v0  ;;  %v2658_v4 = vsub.f32 1.0, %v2657_v46 }
 0x51c   : > { %v2650_v0 = vand.u32 2147483647, %v6199_v18 }
 0x51d   : > { %vm2546_vm3 = vcmp.eq.f32.partialorder %v2545_v40, 8.507059e+37  ;;  %v2534_v43 = vsel %vm6213_vm13, %v2533_v53, %v2529_v61  ;;  %v2659_v20 = vmul.f32 %v6218_v50, %v2658_v4  ;;  %v2721_v53 = vunpack.c.l.b16 %v5918_v58 }
 0x51e   : > { %v2677_v52 = vmul.f32 %v2534_v43, %v5968_v3  ;;  %v2645_v3 = vadd.f32 %v6209_v19, %v2644_v48  ;;  %vm2651_vm10 = vcmp.eq.f32.partialorder %v2650_v0, 8.507059e+37  ;;  %v2730_v43 = vunpack.c.h.b16 %v5921_v54 }
 0x520   : > { %v2244_v5 = vpop.f32.mrf.mxu1  ;;  %v2693_v26 = vmul.f32 %v2677_v52, %v6370_v35  ;;  %v2649_v40 = vsel %vm2648_vm7, %v6209_v19, %v2645_v3 }
 0x521   : > { %v2275_v25 = vperm.slane %v2244_v5, %v6159_v14  ;;  %v2548_v5 = vor.u32 1.1754944e-38, %v2547_v42 }
 0x523   : > { %2302 = vst [vmem:[#allocation1 + $0x21] ss:$4 sm:$0xff] %v2275_v25  ;;  %v2323_v25 = vpack.c.bf16 %v2308_v9, %v2307_v15  ;;  %v2668_v9 = vor.u32 1.1754944e-38, %v2667_v7 }
 0x525   : > { %v2351_v31 = vunpack.c.l.b16 %v2323_v25 }
 0x528   : > { %v2247_v55 = vpop.f32.mrf.mxu1 }
 0x529   : > { %v2279_v39 = vperm.slane %v2247_v55, %v6159_v14  ;;  %v2352_v55 = vunpack.c.h.b16 %v2323_v25 }
 0x52b   : > { %2304 = vst [vmem:[#allocation1 + $0x22] ss:$4 sm:$0xff] %v2279_v39 }
 0x530   : > { %v2249_v30 = vpop.f32.mrf.mxu1 }
 0x531   : > { %v2283_v21 = vperm.slane %v2249_v30, %v6159_v14  ;;  %v2540_v14 = vadd.f32 %v6192_v34, %v2539_v16  ;;  %v6371_v30 = vld [vmem:[#allocation24_spill] sm:$0xff] }
 0x533   : > { %2306 = vst [vmem:[#allocation1 + $0x23] ss:$4 sm:$0xff] %v2283_v21  ;;  %v2544_v29 = vsel %vm2543_vm2, %v6192_v34, %v2540_v14  ;;  %v2652_v21 = vand.u32 2147483648, %v6199_v18  ;;  %v2665_v14 = vand.u32 2147483647, %v6201_v49  ;;  %v2722_v18 = vunpack.c.h.b16 %v5918_v58 }
 0x534   : > { %v2549_v63 = vsel %vm2546_vm3, %v2548_v5, %v2544_v29  ;;  %v6373_v5 = vld [vmem:[#allocation26_spill] sm:$0xff]  ;;  %v2729_v58 = vunpack.c.l.b16 %v5921_v54 }
 0x535   : > { %v2678_v36 = vmul.f32 %v2549_v63, %v6165_v32  ;;  %v2660_v32 = vadd.f32 %v6218_v50, %v2659_v20  ;;  %v2653_v15 = vor.u32 1.1754944e-38, %v2652_v21  ;;  %vm2666_vm11 = vcmp.eq.f32.partialorder %v2665_v14, 8.507059e+37 }
 0x537   : > { %v2694_v16 = vmul.f32 %v2678_v36, %v6371_v30  ;;  %v2664_v42 = vsel %vm2663_vm9, %v6218_v50, %v2660_v32  ;;  %v2654_v12 = vsel %vm2651_vm10, %v2653_v15, %v2649_v40  ;;  %v6372_v50 = vld [vmem:[#allocation25_spill] sm:$0xff] }
 0x538   : > { %v2669_v61 = vsel %vm2666_vm11, %v2668_v9, %v2664_v42  ;;  %v2685_v49 = vmul.f32 %v2654_v12, %v5964_v41 }
 0x539   : > { %v2706_v62 = vpack.c.bf16 %v2694_v16, %v2693_v26  ;;  %v2686_v19 = vmul.f32 %v2669_v61, %v6154_v47 }
 0x53a   : > { %v2311_v10 = vld.sshfl [vmem:[#allocation1 + $0x20] sm:$0xff pattern:$0x73625140]  ;;  %v2312_v24 = vld.sshfl [vmem:[#allocation1 + $0x28] sm:$0xff pattern:$0x73625140]  ;;  %v2701_v29 = vmul.f32 %v2685_v49, %v6372_v50 }
 0x53b   : > { %v2325_v2 = vpack.c.bf16 %v2312_v24, %v2311_v10  ;;  %v2313_v57 = vld.sshfl [vmem:[#allocation1 + $0x30] sm:$0xff pattern:$0x73625140]  ;;  %v2314_v38 = vld.sshfl [vmem:[#allocation1 + $0x38] sm:$0xff pattern:$0x73625140]  ;;  %v2725_v44 = vunpack.c.l.b16 %v2706_v62  ;;  %v2726_v27 = vunpack.c.h.b16 %v2706_v62  ;;  %v2702_v25 = vmul.f32 %v2686_v19, %v6373_v5 }
 0x53c   : > { %v2326_v22 = vpack.c.bf16 %v2314_v38, %v2313_v57 }
 0x53d   : > { %v2355_v33 = vunpack.c.l.b16 %v2325_v2  ;;  %v2356_v34 = vunpack.c.h.b16 %v2325_v2  ;;  %v2737_v45 = vpack.c.b16 %v2725_v44, %v2721_v53  ;;  %v2738_v46 = vpack.c.b16 %v2726_v27, %v2722_v18 }
 0x53e   : > { %v2357_v39 = vunpack.c.l.b16 %v2326_v22  ;;  %v2358_v23 = vunpack.c.h.b16 %v2326_v22  ;;  %v2710_v10 = vpack.c.bf16 %v2702_v25, %v2701_v29 }
 0x53f   : > { %v2359_v17 = vpack.c.b16 %v2355_v33, %v2351_v31  ;;  %v2360_v56 = vpack.c.b16 %v2356_v34, %v2352_v55 }
 0x540   : > { %v2361_v59 = vpack.c.b16 %v2357_v39, %v2353_v60  ;;  %v2362_v8 = vpack.c.b16 %v2358_v23, %v2354_v6  ;;  %v2733_v24 = vunpack.c.l.b16 %v2710_v10  ;;  %v2734_v11 = vunpack.c.h.b16 %v2710_v10 }
 0x541   : > { %3276 = vmatmul.bf16.gmra.mxu2 %v2359_v17  ;;  %3295 = vmatmul.bf16.gmra.mxu3 %v2360_v56 }
 0x542   : > { %3314 = vmatmul.bf16.gmra.mxu0 %v2361_v59  ;;  %3333 = vmatmul.bf16.gmra.mxu1 %v2362_v8  ;;  %v2741_v41 = vpack.c.b16 %v2733_v24, %v2729_v58  ;;  %v2742_v2 = vpack.c.b16 %v2734_v11, %v2730_v43 }
 0x551   : > { %3347 = vmatmul.bf16.vlgmr.msra.gmra.mxu2 %v5873_v51  ;;  %3366 = vmatmul.bf16.vlgmr.msra.gmra.mxu3 %v5875_v28 }
 0x552   : > { %3385 = vmatmul.bf16.vlgmr.msra.gmra.mxu0 %v2737_v45  ;;  %3404 = vmatmul.bf16.vlgmr.msra.gmra.mxu1 %v2738_v46 }
 0x561   : > { %3352 = vmatmul.bf16.gmra.mxu2 %v5940_v37  ;;  %3371 = vmatmul.bf16.gmra.mxu3 %v5942_v1 }
 0x562   : > { %3390 = vmatmul.bf16.gmra.mxu0 %v2741_v41  ;;  %3409 = vmatmul.bf16.gmra.mxu1 %v2742_v2 }
 0x566   : > { %v3310_v51 = vpop.f32.mrf.mxu0  ;;  %v3329_v28 = vpop.f32.mrf.mxu1 }
 0x56b   : > { %v3272_v47 = vpop.f32.mrf.mxu2  ;;  %v3291_v57 = vpop.f32.mrf.mxu3 }
 0x56c   : > { %v3292_v60 = vadd.f32 %v3291_v57, %v3272_v47 }
 0x56e   : > { %v3312_v38 = vpop.f32.mrf.mxu0  ;;  %v3331_v63 = vpop.f32.mrf.mxu1  ;;  %v3311_v1 = vadd.f32 %v3310_v51, %v3292_v60 }
 0x570   : > { %v3330_v56 = vadd.f32 %v3329_v28, %v3311_v1 }
 0x573   : > { %v3274_v13 = vpop.f32.mrf.mxu2  ;;  %v3293_v4 = vpop.f32.mrf.mxu3 }
 0x574   : > { %v3294_v23 = vadd.f32 %v3293_v4, %v3274_v13 }
 0x576   : > { %v3313_v8 = vadd.f32 %v3312_v38, %v3294_v23 }
 0x578   : > { %v3332_v16 = vadd.f32 %v3331_v63, %v3313_v8 }
 0x5bf   : > { %v3315_v22 = vpop.f32.mrf.mxu0  ;;  %v3334_v31 = vpop.f32.mrf.mxu1 }
 0x5c4   : > { %v3277_v33 = vpop.f32.mrf.mxu2  ;;  %v3296_v54 = vpop.f32.mrf.mxu3 }
 0x5c5   : > { %v3297_v35 = vadd.f32 %v3296_v54, %v3277_v33 }
 0x5c7   : > { %v3317_v55 = vpop.f32.mrf.mxu0  ;;  %v3336_v34 = vpop.f32.mrf.mxu1  ;;  %v3316_v62 = vadd.f32 %v3315_v22, %v3297_v35 }
 0x5c9   : > { %v3335_v15 = vadd.f32 %v3334_v31, %v3316_v62 }
 0x5cc   : > { %v3279_v37 = vpop.f32.mrf.mxu2  ;;  %v3298_v39 = vpop.f32.mrf.mxu3 }
 0x5cd   : > { %v3299_v40 = vadd.f32 %v3298_v39, %v3279_v37 }
 0x5cf   : > { %v3386_v6 = vpop.f32.mrf.mxu0  ;;  %v3405_v17 = vpop.f32.mrf.mxu1  ;;  %v3318_v61 = vadd.f32 %v3317_v55, %v3299_v40 }
 0x5d1   : > { %v3337_v49 = vadd.f32 %v3336_v34, %v3318_v61 }
 0x5d4   : > { %v3348_v52 = vpop.f32.mrf.mxu2  ;;  %v3367_v36 = vpop.f32.mrf.mxu3 }
 0x5d5   : > { %v3349_v59 = vadd.f32 %v3348_v52, %v3330_v56 }
 0x5d7   : > { %v3368_v48 = vadd.f32 %v3367_v36, %v3349_v59  ;;  %v3388_v30 = vpop.f32.mrf.mxu0  ;;  %v3407_v7 = vpop.f32.mrf.mxu1 }
 0x5d9   : > { %v3387_v20 = vadd.f32 %v3386_v6, %v3368_v48 }
 0x5db   : > { %v3406_v26 = vadd.f32 %v3405_v17, %v3387_v20 }
 0x5dc   : > { %v3350_v3 = vpop.f32.mrf.mxu2  ;;  %v3369_v32 = vpop.f32.mrf.mxu3 }
 0x5dd   : > { %3415 = vst [vmem:[%s6272_s23] sm:$0xff] %v3406_v26  ;;  %v3351_v21 = vadd.f32 %v3350_v3, %v3332_v16 }
 0x5df   : > { %v3370_v0 = vadd.f32 %v3369_v32, %v3351_v21  ;;  %v3391_v12 = vpop.f32.mrf.mxu0  ;;  %v3410_v18 = vpop.f32.mrf.mxu1 }
 0x5e1   : > { %v3389_v14 = vadd.f32 %v3388_v30, %v3370_v0 }
 0x5e3   : > { %v3408_v42 = vadd.f32 %v3407_v7, %v3389_v14 }
 0x5e4   : > { %v3353_v9 = vpop.f32.mrf.mxu2  ;;  %v3372_v44 = vpop.f32.mrf.mxu3 }
 0x5e5   : > { %3416 = vst [vmem:[%s6272_s23 + $0x8] sm:$0xff] %v3408_v42  ;;  %v3354_v27 = vadd.f32 %v3353_v9, %v3335_v15 }
 0x5e7   : > { %v3373_v53 = vadd.f32 %v3372_v44, %v3354_v27  ;;  %v3393_v25 = vpop.f32.mrf.mxu0  ;;  %v3412_v24 = vpop.f32.mrf.mxu1 }
 0x5e9   : > { %v3392_v45 = vadd.f32 %v3391_v12, %v3373_v53 }
 0x5eb   : > { %v3411_v46 = vadd.f32 %v3410_v18, %v3392_v45 }
 0x5ec   : > { %v3355_v19 = vpop.f32.mrf.mxu2  ;;  %v3374_v29 = vpop.f32.mrf.mxu3 }
 0x5ed   : > { %3417 = vst [vmem:[%s6272_s23 + $0x10] sm:$0xff] %v3411_v46  ;;  %v3356_v50 = vadd.f32 %v3355_v19, %v3337_v49 }
 0x5ef   : > { %v3375_v5 = vadd.f32 %v3374_v29, %v3356_v50 }
 0x5f1   : > { %v3394_v10 = vadd.f32 %v3393_v25, %v3375_v5 }
 0x5f3   : > { %v3413_v11 = vadd.f32 %v3412_v24, %v3394_v10 }
 0x5f5   : > { %3418 = vst [vmem:[%s6272_s23 + $0x18] sm:$0xff] %v3413_v11 }
 0x5f6   : > { %5067 = shalt.err (!%p5064_p9)
}
 0x5f7   : > { %s5142_s25 = smov 128   ;;  %s5143_s23 = smov 8  }
 0x5f8   : > { %4560 = dma.vmem_to_hbm [thread:$0]  (%p5302_p13), %s3434_s28, 512, %s3436_s24, %s3420_s16, %s5142_s25, %s5142_s25, %s5143_s23  }
 0x5f9 PF: > { %s3450_s20 = sand.u32 1, %s5110_s30   ;;  %p6374_p10 = scmp.ge.s32.totalorder %s5122_s12, 2 }
 0x5fa   : > { %s3451_s29 = scalar_lea.sflag [#allocation4], %s3450_s20 }
 0x5fb   : > { %p4589_p11 = pnand %p6374_p10, %p5307_p5 }
 0x5fd   : > { %p4590_p0 = pneg %p4589_p11 }
 0x5ff   : > { %5105 = dma.done.wait (%p4590_p0), %s3451_s29, 512  }
 0x600   : > { %5107 = vsyncadd (%p4590_p0), %s3451_s29, 4294966784  ;;  %p26_p2 = scmp.ge.s32.totalorder %s5282_s14, 4   ;;  %s6375_s30 = smov %s5114_s10 }
 0x601   : > { %s6376_s10 = smov %s5118_s11  ;;  %s6377_s11 = smov %s5294_s18 }
 0x602   : > { %s6378_s12 = smov %s5282_s14  ;;  %28 = sbr.rel (!%p26_p2) target bundleno = 13 (0xd), region = 143 }
 0x607   :  { %3457 = vsyncpa [#allocation3], 1 }
 0x608   :  { %3459 = vsyncpa [#allocation3 + $0x1], 1 }
 0x609   :  { %3460 = vsyncpa [#allocation6], 1 }
 0x60a   :  { %3461 = vsyncpa [#allocation9], 1 }
 0x60b   :  { %3462 = vsyncpa [#allocation12], 1 }
 0x60c   :  { %3463 = vsyncpa [#allocation15], 1 }
 0x60d   :  { %3464 = vsyncpa [#allocation4], 1 }
 0x60e   :  { %3466 = vsyncpa [#allocation4 + $0x1], 1 }

</bundles_post_ra>
